<compile_context>
chip_gen: v7x
topology: tpu7x:2x2x1
jax: 0.10.0
libtpu: 0.0.40
codegen_flags: <defaults>
</compile_context>

<pallas_src>
import math

import jax
import jax.numpy as jnp
from jax.experimental import pallas as pl
from jax.experimental.pallas import tpu as pltpu

# ----------------------------- model hyper-params ----------------------------------
D_MODEL = 64
D_K = 16
D_V = 16
H = 4
HD = H * D_K                # 64
D_FF = 128
N_VISUAL = 99               # hard-coded split point, exactly as in the PyTorch forward
EPS = 1e-5                  # nn.LayerNorm default
NEG_INF = -1e30             # finite additive mask value (avoids -inf -> NaN in softmax)
SCALE = 1.0 / math.sqrt(D_K)  # 0.25 -> exactly representable, folded into Q weights

# bias-slab rows (6, 192): fused projection biases (zero padded to 192 lanes)
_B_SA, _B_KV1, _B_KV2, _B_Q1, _B_Q2, _B_FF1 = 0, 1, 2, 3, 4, 5

# vec-slab rows (16, 64): output-proj biases / LayerNorm params / FFN b2
_V_SA_BO, _V_SA_LNW, _V_SA_LNB = 0, 1, 2
_V_E1_BO, _V_E1_LNW, _V_E1_LNB = 3, 4, 5
_V_E2_BO, _V_E2_LNW, _V_E2_LNB = 6, 7, 8
_V_LN1W, _V_LN1B = 9, 10
_V_LN3W, _V_LN3B = 11, 12
_V_FF_LNW, _V_FF_LNB = 13, 14
_V_B2 = 15


# ----------------------------- Pallas kernel (one batch element per grid step) -----
def _decoder_layer_kernel(x_ref, vis_ref, ctx_ref, hid_ref, mpad_ref,
                          msa_ref, cmask_ref, vmask_ref,
                          wsa_ref, wq1_ref, wkv1_ref, wq2h_ref, wkv2_ref,
                          wo_ref, w1_ref, w2_ref, bias_ref, vec_ref,
                          out_ref):
    f32, bf16 = jnp.float32, jnp.bfloat16

    x = x_ref[...]                       # (nq, 64) f32
    hid = hid_ref[...]                   # (nq, 64) f32
    mpad = mpad_ref[...]                 # (nq, 64) f32
    vec = vec_ref[...]                   # (16, 64) f32
    bias = bias_ref[...]                 # (6, 192) f32

    def vrow(i):                         # (1, 64) parameter row
        return vec[i:i + 1, :]

    def brow(i, w):                      # (1, w) fused projection bias
        return bias[i:i + 1, :w]

    def layer_norm(v, w, b):
        mu = jnp.mean(v, axis=-1, keepdims=True)
        var = jnp.mean(jnp.square(v - mu), axis=-1, keepdims=True)
        return (v - mu) * jax.lax.rsqrt(var + EPS) * w + b

    def matmul(a, w):                    # bf16 operands, f32 accumulation
        return jnp.dot(a.astype(bf16), w, preferred_element_type=f32)

    def attention(q2d, k2d, v2d, mask_add, wo, bo, ln_w, ln_b, q_in):
        # q2d: (nq, 64) already scaled by 1/sqrt(dk); k2d/v2d: (nk, 64); mask: additive
        mask = mask_add.astype(f32)
        qb, kb, vb = q2d.astype(bf16), k2d.astype(bf16), v2d.astype(bf16)
        heads = []
        for h in range(H):                                   # static lane slices
            qh = qb[:, h * D_K:(h + 1) * D_K]
            kh = kb[:, h * D_K:(h + 1) * D_K]
            vh = vb[:, h * D_V:(h + 1) * D_V]
            s = jax.lax.dot_general(qh, kh, (((1,), (1,)), ((), ())),
                                    preferred_element_type=f32)   # (nq, nk)
            s = s + mask
            m = jnp.max(s, axis=-1, keepdims=True)
            p = jnp.exp(s - m)
            denom = jnp.sum(p, axis=-1, keepdims=True)
            att = p * pl.reciprocal(denom, approx=True)            # divide on EUP
            heads.append(jnp.dot(att.astype(bf16), vh, preferred_element_type=f32))
        o2d = jnp.concatenate(heads, axis=-1)                # (nq, 64)
        out = matmul(o2d, wo) + bo                           # single fused out-proj
        return layer_norm(q_in + out, ln_w, ln_b)

    # ---- self attention: fused (64,192) QKV projection -----------------------------
    qkv = matmul(x, wsa_ref[...]) + brow(_B_SA, 3 * HD)      # (nq, 192)
    sa = attention(qkv[:, 0:HD], qkv[:, HD:2 * HD], qkv[:, 2 * HD:3 * HD],
                   msa_ref[...], wo_ref[0],
                   vrow(_V_SA_BO), vrow(_V_SA_LNW), vrow(_V_SA_LNB), x)
    sa = layer_norm(x + sa, vrow(_V_LN1W), vrow(_V_LN1B))
    sa = sa * mpad

    # ---- enc-att 1 over context features (fused KV projection) ---------------------
    q1 = matmul(sa, wq1_ref[...]) + brow(_B_Q1, HD)          # (nq, 64)
    kv1 = matmul(ctx_ref[...], wkv1_ref[...]) + brow(_B_KV1, 2 * HD)   # (n_ctx, 128)
    e1 = attention(q1, kv1[:, 0:HD], kv1[:, HD:2 * HD],
                   cmask_ref[...], wo_ref[1],
                   vrow(_V_E1_BO), vrow(_V_E1_LNW), vrow(_V_E1_LNB), sa)

    # ---- enc-att 2 over visual features, hidden fused into the query ---------------
    hid_new = (hid + e1) * 0.5
    # TODO(synk): exact MultiHeadAttentionWithHidden definition not provided; the
    # hidden state is fused into the query projection (q = Wq*q + Wh*hidden).
    q2 = (matmul(jnp.concatenate([sa, hid_new], axis=-1), wq2h_ref[...])
          + brow(_B_Q2, HD))                                  # (nq,128)@(128,64)
    kv2 = matmul(vis_ref[...], wkv2_ref[...]) + brow(_B_KV2, 2 * HD)   # (99, 128)
    e2 = attention(q2, kv2[:, 0:HD], kv2[:, HD:2 * HD],
                   vmask_ref[...], wo_ref[2],
                   vrow(_V_E2_BO), vrow(_V_E2_LNW), vrow(_V_E2_LNB), sa)

    ea = (e1 + e2) * 0.5
    ea = layer_norm(sa + ea, vrow(_V_LN3W), vrow(_V_LN3B))
    ea = ea * mpad

    # ---- position-wise feed-forward -------------------------------------------------
    hdn = jnp.maximum(matmul(ea, w1_ref[...]) + brow(_B_FF1, D_FF), 0.0)
    ff = matmul(hdn, w2_ref[...]) + vrow(_V_B2)
    ff = layer_norm(ea + ff, vrow(_V_FF_LNW), vrow(_V_FF_LNB))
    out_ref[...] = ff * mpad


# ----------------------------- parameter packing (done ONCE, outside the call) -----
def pack_params(params):
    s = SCALE
    sa, e1, e2, pw = (params["self_att"], params["enc_att1"],
                      params["enc_att2"], params["pwff"])
    bf16, f32 = jnp.bfloat16, jnp.float32

    wsa = jnp.concatenate([sa["wq"] * s, sa["wk"], sa["wv"]], axis=1).astype(bf16)
    wq1 = (e1["wq"] * s).astype(bf16)
    wkv1 = jnp.concatenate([e1["wk"], e1["wv"]], axis=1).astype(bf16)
    wq2h = jnp.concatenate([e2["wq"] * s, e2["wh"] * s], axis=0).astype(bf16)
    wkv2 = jnp.concatenate([e2["wk"], e2["wv"]], axis=1).astype(bf16)
    wo3 = jnp.stack([sa["wo"], e1["wo"], e2["wo"]], axis=0).astype(bf16)   # (3,64,64)
    w1 = pw["w1"].astype(bf16)
    w2 = pw["w2"].astype(bf16)

    def padrow(b, width=3 * HD):
        return jnp.pad(b, ((0, 0), (0, width - b.shape[1])))

    bias = jnp.concatenate([
        padrow(jnp.concatenate([sa["bq"] * s, sa["bk"], sa["bv"]], axis=1)),  # _B_SA
        padrow(jnp.concatenate([e1["bk"], e1["bv"]], axis=1)),                # _B_KV1
        padrow(jnp.concatenate([e2["bk"], e2["bv"]], axis=1)),                # _B_KV2
        padrow(e1["bq"] * s),                                                  # _B_Q1
        padrow((e2["bq"] + e2["bh"]) * s),                                     # _B_Q2
        padrow(pw["b1"]),                                                      # _B_FF1
    ], axis=0).astype(f32)                                                     # (6,192)

    vec = jnp.concatenate([
        sa["bo"], sa["ln_w"], sa["ln_b"],
        e1["bo"], e1["ln_w"], e1["ln_b"],
        e2["bo"], e2["ln_w"], e2["ln_b"],
        params["lnorm1"]["w"], params["lnorm1"]["b"],
        params["lnorm3"]["w"], params["lnorm3"]["b"],
        pw["ln_w"], pw["ln_b"], pw["b2"],
    ], axis=0).astype(f32)                                                     # (16,64)
    return (wsa, wq1, wkv1, wq2h, wkv2, wo3, w1, w2, bias, vec)


# ----------------------------- wrapper (jitted) -------------------------------------
def decoder_layer_pallas(inp, enc_output, hidden_visual, hidden_ctx,
                         mask_pad, mask_self_att, mask_enc_att, packed):
    del hidden_visual  # present in the torch signature but unused in its forward
    B, nq, dm = inp.shape
    nk = enc_output.shape[1]
    n_ctx = nk - N_VISUAL

    x = inp.astype(jnp.float32)
    hid = hidden_ctx.astype(jnp.float32)
    vis = enc_output[:, :N_VISUAL].astype(jnp.bfloat16)     # consumed in bf16 only
    ctx = enc_output[:, N_VISUAL:].astype(jnp.bfloat16)
    mpad = jnp.broadcast_to(mask_pad.astype(jnp.float32), (B, nq, dm))

    # per-batch additive masks (1 = masked) in bf16 (-1e30 is representable)
    msa_add = (mask_self_att[:, 0].astype(jnp.float32) * NEG_INF
               ).astype(jnp.bfloat16)                                        # (B,nq,nq)
    menc = mask_enc_att[:, 0, 0, :].astype(jnp.float32) * NEG_INF            # (B,nk)
    vmask_add = jnp.broadcast_to(menc[:, None, :N_VISUAL],
                                 (B, nq, N_VISUAL)).astype(jnp.bfloat16)
    cmask_add = jnp.broadcast_to(menc[:, None, N_VISUAL:],
                                 (B, nq, n_ctx)).astype(jnp.bfloat16)

    (wsa, wq1, wkv1, wq2h, wkv2, wo3, w1, w2, bias, vec) = packed

    def dspec(shape):       # per-batch data block, batch dim squeezed
        return pl.BlockSpec((None,) + shape, lambda b: (b,) + (0,) * len(shape))

    def wspec(arr):         # whole weight array, same block every grid step
        return pl.BlockSpec(arr.shape, lambda b: (0,) * arr.ndim)

    out = pl.pallas_call(
        _decoder_layer_kernel,
        grid=(B,),
        in_specs=[
            dspec((nq, dm)), dspec((N_VISUAL, dm)), dspec((n_ctx, dm)),
            dspec((nq, dm)), dspec((nq, dm)),
            dspec((nq, nq)), dspec((nq, n_ctx)), dspec((nq, N_VISUAL)),
            wspec(wsa), wspec(wq1), wspec(wkv1), wspec(wq2h), wspec(wkv2),
            wspec(wo3), wspec(w1), wspec(w2), wspec(bias), wspec(vec),
        ],
        out_specs=dspec((nq, dm)),
        out_shape=jax.ShapeDtypeStruct((B, nq, dm), jnp.float32),
        compiler_params=pltpu.CompilerParams(
            dimension_semantics=("parallel",)),
    )(x, vis, ctx, hid, mpad, msa_add, cmask_add, vmask_add,
      wsa, wq1, wkv1, wq2h, wkv2, wo3, w1, w2, bias, vec)
    return out


decoder_layer_pallas_jit = jax.jit(decoder_layer_pallas)


# ----------------------------- pure-JAX reference ----------------------------------
def _linear(x, w, b):
    return jnp.dot(x.astype(jnp.bfloat16), w.astype(jnp.bfloat16),
                   preferred_element_type=jnp.float32) + b


def _layer_norm(x, w, b):
    mu = jnp.mean(x, axis=-1, keepdims=True)
    var = jnp.mean(jnp.square(x - mu), axis=-1, keepdims=True)
    return (x - mu) * jax.lax.rsqrt(var + EPS) * w + b


def _mha_ref(q_in, kv_in, mask_add, p, hidden=None):
    q = _linear(q_in, p["wq"], p["bq"])
    if hidden is not None:
        q = q + _linear(hidden, p["wh"], p["bh"])
    k = _linear(kv_in, p["wk"], p["bk"])
    v = _linear(kv_in, p["wv"], p["bv"])
    outs = []
    for i in range(H):
        qi = q[:, i * D_K:(i + 1) * D_K]
        ki = k[:, i * D_K:(i + 1) * D_K]
        vi = v[:, i * D_V:(i + 1) * D_V]
        att = jnp.dot(qi.astype(jnp.bfloat16), ki.astype(jnp.bfloat16).T,
                      preferred_element_type=jnp.float32) * SCALE + mask_add
        att = jax.nn.softmax(att, axis=-1)
        outs.append(jnp.dot(att.astype(jnp.bfloat16), vi.astype(jnp.bfloat16),
                            preferred_element_type=jnp.float32))
    out = jnp.concatenate(outs, axis=-1)
    out = _linear(out, p["wo"], p["bo"])
    return _layer_norm(q_in + out, p["ln_w"], p["ln_b"])


def _decoder_layer_math(x, vis, ctx, hid, mpad, msa_add, vmask_add, cmask_add, params):
    sa = _mha_ref(x, x, msa_add, params["self_att"])
    sa = _layer_norm(x + sa, params["lnorm1"]["w"], params["lnorm1"]["b"])
    sa = sa * mpad
    e1 = _mha_ref(sa, ctx, cmask_add, params["enc_att1"])
    hid_new = (hid + e1) * 0.5
    e2 = _mha_ref(sa, vis, vmask_add, params["enc_att2"], hidden=hid_new)
    ea = (e1 + e2) * 0.5
    ea = _layer_norm(sa + ea, params["lnorm3"]["w"], params["lnorm3"]["b"])
    ea = ea * mpad
    pw = params["pwff"]
    hdn = jnp.maximum(_linear(ea, pw["w1"], pw["b1"]), 0.0)
    ff = _linear(hdn, pw["w2"], pw["b2"])
    ff = _layer_norm(ea + ff, pw["ln_w"], pw["ln_b"])
    return ff * mpad


def decoder_layer_ref(inp, enc_output, hidden_visual, hidden_ctx,
                      mask_pad, mask_self_att, mask_enc_att, params):
    del hidden_visual
    vis = enc_output[:, :N_VISUAL]
    ctx = enc_output[:, N_VISUAL:]
    menc = mask_enc_att[:, 0].astype(jnp.float32)                      # (B, 1, nk)
    vmask_add = menc[:, :, :N_VISUAL] * NEG_INF
    cmask_add = menc[:, :, N_VISUAL:] * NEG_INF
    msa_add = mask_self_att[:, 0].astype(jnp.float32) * NEG_INF        # (B, nq, nq)
    mpad = mask_pad.astype(jnp.float32)
    f = lambda x, v, c, h, mp, ms, vm, cm: _decoder_layer_math(
        x, v, c, h, mp, ms, vm, cm, params)
    return jax.vmap(f)(inp, vis, ctx, hidden_ctx, mpad, msa_add, vmask_add, cmask_add)


# ----------------------------- deterministic parameter init ------------------------
def init_params(key):
    def dense(k, fan_in, fan_out):
        k1, k2 = jax.random.split(k)
        w = jax.random.normal(k1, (fan_in, fan_out), jnp.float32) / math.sqrt(fan_in)
        b = jax.random.normal(k2, (1, fan_out), jnp.float32) * 0.01
        return w, b

    def ln():
        return jnp.ones((1, D_MODEL), jnp.float32), jnp.zeros((1, D_MODEL), jnp.float32)

    def mha_params(k, with_hidden=False):
        ks = jax.random.split(k, 5)
        wq, bq = dense(ks[0], D_MODEL, H * D_K)
        wk, bk = dense(ks[1], D_MODEL, H * D_K)
        wv, bv = dense(ks[2], D_MODEL, H * D_V)
        wo, bo = dense(ks[3], H * D_V, D_MODEL)
        ln_w, ln_b = ln()
        p = dict(wq=wq, bq=bq, wk=wk, bk=bk, wv=wv, bv=bv, wo=wo, bo=bo,
                 ln_w=ln_w, ln_b=ln_b)
        if with_hidden:
            wh, bh = dense(ks[4], D_MODEL, H * D_K)
            p.update(wh=wh, bh=bh)
        return p

    ks = jax.random.split(key, 8)
    w1, b1 = dense(ks[3], D_MODEL, D_FF)
    w2, b2 = dense(ks[4], D_FF, D_MODEL)
    ln1_w, ln1_b = ln()
    ln3_w, ln3_b = ln()
    pw_ln_w, pw_ln_b = ln()
    return {
        "self_att": mha_params(ks[0]),
        "enc_att1": mha_params(ks[1]),
        "enc_att2": mha_params(ks[2], with_hidden=True),
        "pwff": dict(w1=w1, b1=b1, w2=w2, b2=b2, ln_w=pw_ln_w, ln_b=pw_ln_b),
        "lnorm1": {"w": ln1_w, "b": ln1_b},
        "lnorm3": {"w": ln3_w, "b": ln3_b},
    }


# ----------------------------- main -------------------------------------------------
if __name__ == "__main__":
    key = jax.random.PRNGKey(0)
    kx, ke, khv, khc, kp = jax.random.split(key, 5)

    B, NQ = 2, 8
    N_CTX = 13
    NK = N_VISUAL + N_CTX  # 112 encoder tokens (99 visual + 13 context)

    x = jax.random.normal(kx, (B, NQ, D_MODEL), jnp.float32)
    enc = jax.random.normal(ke, (B, NK, D_MODEL), jnp.float32)
    hidden_visual = jax.random.normal(khv, (B, NQ, D_MODEL), jnp.float32)  # unused
    hidden_ctx = jax.random.normal(khc, (B, NQ, D_MODEL), jnp.float32)

    # causal self-attention mask (1.0 above diagonal = masked)
    causal = jnp.triu(jnp.ones((NQ, NQ), jnp.float32), k=1)
    mask_self_att = jnp.broadcast_to(causal[None, None], (B, 1, NQ, NQ))

    # encoder padding mask: batch 1 has its last 3 (context) tokens padded
    enc_valid = jnp.arange(NK)[None, :] < jnp.array([NK, NK - 3])[:, None]
    mask_enc_att = (~enc_valid)[:, None, None, :].astype(jnp.float32)

    # decoder padding mask: batch 1 has its last 2 query positions padded
    q_valid = jnp.arange(NQ)[None, :] < jnp.array([NQ, NQ - 2])[:, None]
    mask_pad = q_valid[:, :, None].astype(jnp.float32)

    params = init_params(kp)
    packed = pack_params(params)           # packed ONCE, reused across calls

    out = decoder_layer_pallas_jit(x, enc, hidden_visual, hidden_ctx,
                                   mask_pad, mask_self_att, mask_enc_att, packed)
    out = jax.block_until_ready(out)

    ref = decoder_layer_ref(x, enc, hidden_visual, hidden_ctx,
                            mask_pad, mask_self_att, mask_enc_att, params)
    ref = jax.block_until_ready(ref)

    assert out.shape == (B, NQ, D_MODEL), out.shape
    assert bool(jnp.all(jnp.isfinite(out))), "non-finite values in kernel output"
    max_err = float(jnp.max(jnp.abs(out - ref)))
    assert max_err < 2e-2, f"kernel/reference mismatch, max abs err = {max_err}"
    print("KERNEL_OK")
</pallas_src>

<mosaic_0001>
module attributes {stable_mosaic.version = 11 : i64} {
  func.func @_decoder_layer_kernel(%arg0: i32, %arg1: memref<1x8x64xf32, #tpu.memory_space<vmem>>, %arg2: memref<1x99x64xbf16, #tpu.memory_space<vmem>>, %arg3: memref<1x13x64xbf16, #tpu.memory_space<vmem>>, %arg4: memref<1x8x64xf32, #tpu.memory_space<vmem>>, %arg5: memref<1x8x64xf32, #tpu.memory_space<vmem>>, %arg6: memref<1x8x8xbf16, #tpu.memory_space<vmem>>, %arg7: memref<1x8x13xbf16, #tpu.memory_space<vmem>>, %arg8: memref<1x8x99xbf16, #tpu.memory_space<vmem>>, %arg9: memref<64x192xbf16, #tpu.memory_space<vmem>>, %arg10: memref<64x64xbf16, #tpu.memory_space<vmem>>, %arg11: memref<64x128xbf16, #tpu.memory_space<vmem>>, %arg12: memref<128x64xbf16, #tpu.memory_space<vmem>>, %arg13: memref<64x128xbf16, #tpu.memory_space<vmem>>, %arg14: memref<3x64x64xbf16, #tpu.memory_space<vmem>>, %arg15: memref<64x128xbf16, #tpu.memory_space<vmem>>, %arg16: memref<128x64xbf16, #tpu.memory_space<vmem>>, %arg17: memref<6x192xf32, #tpu.memory_space<vmem>>, %arg18: memref<16x64xf32, #tpu.memory_space<vmem>>, %arg19: memref<1x8x64xf32, #tpu.memory_space<vmem>>) attributes {dimension_semantics = [#tpu.dimension_semantics<parallel>], iteration_bounds = array<i64: 2>, scalar_prefetch = 0 : i64, scratch_operands = 0 : i64, tpu.core_type = #tpu.core_type<tc>, window_params = [{transform_indices = @transform_0, window_bounds = array<i64: 1, 8, 64>}, {transform_indices = @transform_1, window_bounds = array<i64: 1, 99, 64>}, {transform_indices = @transform_2, window_bounds = array<i64: 1, 13, 64>}, {transform_indices = @transform_3, window_bounds = array<i64: 1, 8, 64>}, {transform_indices = @transform_4, window_bounds = array<i64: 1, 8, 64>}, {transform_indices = @transform_5, window_bounds = array<i64: 1, 8, 8>}, {transform_indices = @transform_6, window_bounds = array<i64: 1, 8, 13>}, {transform_indices = @transform_7, window_bounds = array<i64: 1, 8, 99>}, {pipeline_mode = #tpu.pipeline_mode<synchronous>, transform_indices = @transform_8, window_bounds = array<i64: 64, 192>}, {pipeline_mode = #tpu.pipeline_mode<synchronous>, transform_indices = @transform_9, window_bounds = array<i64: 64, 64>}, {pipeline_mode = #tpu.pipeline_mode<synchronous>, transform_indices = @transform_10, window_bounds = array<i64: 64, 128>}, {pipeline_mode = #tpu.pipeline_mode<synchronous>, transform_indices = @transform_11, window_bounds = array<i64: 128, 64>}, {pipeline_mode = #tpu.pipeline_mode<synchronous>, transform_indices = @transform_12, window_bounds = array<i64: 64, 128>}, {pipeline_mode = #tpu.pipeline_mode<synchronous>, transform_indices = @transform_13, window_bounds = array<i64: 3, 64, 64>}, {pipeline_mode = #tpu.pipeline_mode<synchronous>, transform_indices = @transform_14, window_bounds = array<i64: 64, 128>}, {pipeline_mode = #tpu.pipeline_mode<synchronous>, transform_indices = @transform_15, window_bounds = array<i64: 128, 64>}, {pipeline_mode = #tpu.pipeline_mode<synchronous>, transform_indices = @transform_16, window_bounds = array<i64: 6, 192>}, {pipeline_mode = #tpu.pipeline_mode<synchronous>, transform_indices = @transform_17, window_bounds = array<i64: 16, 64>}, {transform_indices = @transform_18, window_bounds = array<i64: 1, 8, 64>}]} {
    %c0 = arith.constant 0 : index
    %c0_0 = arith.constant 0 : index
    %c0_1 = arith.constant 0 : index
    %0 = vector.load %arg1[%c0, %c0_0, %c0_1] : memref<1x8x64xf32, #tpu.memory_space<vmem>>, vector<1x8x64xf32>
    %1 = vector.shape_cast %0 : vector<1x8x64xf32> to vector<8x64xf32>
    %c0_2 = arith.constant 0 : index
    %c0_3 = arith.constant 0 : index
    %c0_4 = arith.constant 0 : index
    %2 = vector.load %arg4[%c0_2, %c0_3, %c0_4] : memref<1x8x64xf32, #tpu.memory_space<vmem>>, vector<1x8x64xf32>
    %3 = vector.shape_cast %2 : vector<1x8x64xf32> to vector<8x64xf32>
    %c0_5 = arith.constant 0 : index
    %c0_6 = arith.constant 0 : index
    %c0_7 = arith.constant 0 : index
    %4 = vector.load %arg5[%c0_5, %c0_6, %c0_7] : memref<1x8x64xf32, #tpu.memory_space<vmem>>, vector<1x8x64xf32>
    %5 = vector.shape_cast %4 : vector<1x8x64xf32> to vector<8x64xf32>
    %c0_8 = arith.constant 0 : index
    %c0_9 = arith.constant 0 : index
    %6 = vector.load %arg18[%c0_8, %c0_9] : memref<16x64xf32, #tpu.memory_space<vmem>>, vector<16x64xf32>
    %c0_10 = arith.constant 0 : index
    %c0_11 = arith.constant 0 : index
    %7 = vector.load %arg17[%c0_10, %c0_11] : memref<6x192xf32, #tpu.memory_space<vmem>>, vector<6x192xf32>
    %c0_12 = arith.constant 0 : index
    %c0_13 = arith.constant 0 : index
    %8 = vector.load %arg9[%c0_12, %c0_13] : memref<64x192xbf16, #tpu.memory_space<vmem>>, vector<64x192xbf16>
    %9 = arith.truncf %1 : vector<8x64xf32> to vector<8x64xbf16>
    %cst = arith.constant dense<0.000000e+00> : vector<8x192xf32>
    %10 = tpu.matmul %9, %8, %cst {dimension_numbers = #tpu.dot_dimension_numbers<[1], [0], [0], [1], [0, 0, 1, 1], [], []>} : vector<8x64xbf16>, vector<64x192xbf16>, vector<8x192xf32> -> vector<8x192xf32>
    %11 = vector.extract_strided_slice %7 {offsets = [0, 0], sizes = [1, 192], strides = [1, 1]} : vector<6x192xf32> to vector<1x192xf32>
    %12 = vector.broadcast %11 : vector<1x192xf32> to vector<8x192xf32>
    %13 = arith.addf %10, %12 : vector<8x192xf32>
    %14 = vector.extract_strided_slice %13 {offsets = [0, 0], sizes = [8, 64], strides = [1, 1]} : vector<8x192xf32> to vector<8x64xf32>
    %15 = vector.extract_strided_slice %13 {offsets = [0, 64], sizes = [8, 64], strides = [1, 1]} : vector<8x192xf32> to vector<8x64xf32>
    %16 = vector.extract_strided_slice %13 {offsets = [0, 128], sizes = [8, 64], strides = [1, 1]} : vector<8x192xf32> to vector<8x64xf32>
    %c0_14 = arith.constant 0 : index
    %c0_15 = arith.constant 0 : index
    %c0_16 = arith.constant 0 : index
    %17 = vector.load %arg6[%c0_14, %c0_15, %c0_16] : memref<1x8x8xbf16, #tpu.memory_space<vmem>>, vector<1x8x8xbf16>
    %18 = vector.shape_cast %17 : vector<1x8x8xbf16> to vector<8x8xbf16>
    %c0_17 = arith.constant 0 : index
    %c0_18 = arith.constant 0 : index
    %c0_19 = arith.constant 0 : index
    %19 = vector.load %arg14[%c0_17, %c0_18, %c0_19] : memref<3x64x64xbf16, #tpu.memory_space<vmem>>, vector<1x64x64xbf16>
    %20 = vector.shape_cast %19 : vector<1x64x64xbf16> to vector<64x64xbf16>
    %21 = vector.extract_strided_slice %6 {offsets = [0, 0], sizes = [1, 64], strides = [1, 1]} : vector<16x64xf32> to vector<1x64xf32>
    %22 = vector.extract_strided_slice %6 {offsets = [1, 0], sizes = [1, 64], strides = [1, 1]} : vector<16x64xf32> to vector<1x64xf32>
    %23 = vector.extract_strided_slice %6 {offsets = [2, 0], sizes = [1, 64], strides = [1, 1]} : vector<16x64xf32> to vector<1x64xf32>
    %24 = arith.extf %18 : vector<8x8xbf16> to vector<8x8xf32>
    %25 = arith.truncf %14 : vector<8x64xf32> to vector<8x64xbf16>
    %26 = arith.truncf %15 : vector<8x64xf32> to vector<8x64xbf16>
    %27 = arith.truncf %16 : vector<8x64xf32> to vector<8x64xbf16>
    %28 = vector.extract_strided_slice %25 {offsets = [0, 0], sizes = [8, 16], strides = [1, 1]} : vector<8x64xbf16> to vector<8x16xbf16>
    %29 = vector.extract_strided_slice %26 {offsets = [0, 0], sizes = [8, 16], strides = [1, 1]} : vector<8x64xbf16> to vector<8x16xbf16>
    %30 = vector.extract_strided_slice %27 {offsets = [0, 0], sizes = [8, 16], strides = [1, 1]} : vector<8x64xbf16> to vector<8x16xbf16>
    %cst_20 = arith.constant dense<0.000000e+00> : vector<8x8xf32>
    %31 = tpu.matmul %28, %29, %cst_20 {dimension_numbers = #tpu.dot_dimension_numbers<[1], [1], [0], [0], [0, 0, 1, 0], [], []>} : vector<8x16xbf16>, vector<8x16xbf16>, vector<8x8xf32> -> vector<8x8xf32>
    %32 = arith.addf %31, %24 : vector<8x8xf32>
    %cst_21 = arith.constant dense<0xFF800000> : vector<8xf32>
    %33 = vector.multi_reduction <maximumf>, %32, %cst_21 [1] : vector<8x8xf32> to vector<8xf32>
    %34 = vector.shape_cast %33 : vector<8xf32> to vector<8x1xf32>
    %35 = vector.broadcast %34 : vector<8x1xf32> to vector<8x8xf32>
    %36 = arith.subf %32, %35 : vector<8x8xf32>
    %37 = math.exp %36 : vector<8x8xf32>
    %cst_22 = arith.constant dense<0.000000e+00> : vector<8xf32>
    %38 = vector.multi_reduction <add>, %37, %cst_22 [1] : vector<8x8xf32> to vector<8xf32>
    %39 = vector.shape_cast %38 : vector<8xf32> to vector<8x1xf32>
    %40 = tpu.reciprocal %39 {approx = true} : vector<8x1xf32> -> vector<8x1xf32>
    %41 = vector.broadcast %40 : vector<8x1xf32> to vector<8x8xf32>
    %42 = arith.mulf %37, %41 : vector<8x8xf32>
    %43 = arith.truncf %42 : vector<8x8xf32> to vector<8x8xbf16>
    %cst_23 = arith.constant dense<0.000000e+00> : vector<8x16xf32>
    %44 = tpu.matmul %43, %30, %cst_23 {dimension_numbers = #tpu.dot_dimension_numbers<[1], [0], [0], [1], [0, 0, 1, 1], [], []>} : vector<8x8xbf16>, vector<8x16xbf16>, vector<8x16xf32> -> vector<8x16xf32>
    %45 = vector.extract_strided_slice %25 {offsets = [0, 16], sizes = [8, 16], strides = [1, 1]} : vector<8x64xbf16> to vector<8x16xbf16>
    %46 = vector.extract_strided_slice %26 {offsets = [0, 16], sizes = [8, 16], strides = [1, 1]} : vector<8x64xbf16> to vector<8x16xbf16>
    %47 = vector.extract_strided_slice %27 {offsets = [0, 16], sizes = [8, 16], strides = [1, 1]} : vector<8x64xbf16> to vector<8x16xbf16>
    %cst_24 = arith.constant dense<0.000000e+00> : vector<8x8xf32>
    %48 = tpu.matmul %45, %46, %cst_24 {dimension_numbers = #tpu.dot_dimension_numbers<[1], [1], [0], [0], [0, 0, 1, 0], [], []>} : vector<8x16xbf16>, vector<8x16xbf16>, vector<8x8xf32> -> vector<8x8xf32>
    %49 = arith.addf %48, %24 : vector<8x8xf32>
    %cst_25 = arith.constant dense<0xFF800000> : vector<8xf32>
    %50 = vector.multi_reduction <maximumf>, %49, %cst_25 [1] : vector<8x8xf32> to vector<8xf32>
    %51 = vector.shape_cast %50 : vector<8xf32> to vector<8x1xf32>
    %52 = vector.broadcast %51 : vector<8x1xf32> to vector<8x8xf32>
    %53 = arith.subf %49, %52 : vector<8x8xf32>
    %54 = math.exp %53 : vector<8x8xf32>
    %cst_26 = arith.constant dense<0.000000e+00> : vector<8xf32>
    %55 = vector.multi_reduction <add>, %54, %cst_26 [1] : vector<8x8xf32> to vector<8xf32>
    %56 = vector.shape_cast %55 : vector<8xf32> to vector<8x1xf32>
    %57 = tpu.reciprocal %56 {approx = true} : vector<8x1xf32> -> vector<8x1xf32>
    %58 = vector.broadcast %57 : vector<8x1xf32> to vector<8x8xf32>
    %59 = arith.mulf %54, %58 : vector<8x8xf32>
    %60 = arith.truncf %59 : vector<8x8xf32> to vector<8x8xbf16>
    %cst_27 = arith.constant dense<0.000000e+00> : vector<8x16xf32>
    %61 = tpu.matmul %60, %47, %cst_27 {dimension_numbers = #tpu.dot_dimension_numbers<[1], [0], [0], [1], [0, 0, 1, 1], [], []>} : vector<8x8xbf16>, vector<8x16xbf16>, vector<8x16xf32> -> vector<8x16xf32>
    %62 = vector.extract_strided_slice %25 {offsets = [0, 32], sizes = [8, 16], strides = [1, 1]} : vector<8x64xbf16> to vector<8x16xbf16>
    %63 = vector.extract_strided_slice %26 {offsets = [0, 32], sizes = [8, 16], strides = [1, 1]} : vector<8x64xbf16> to vector<8x16xbf16>
    %64 = vector.extract_strided_slice %27 {offsets = [0, 32], sizes = [8, 16], strides = [1, 1]} : vector<8x64xbf16> to vector<8x16xbf16>
    %cst_28 = arith.constant dense<0.000000e+00> : vector<8x8xf32>
    %65 = tpu.matmul %62, %63, %cst_28 {dimension_numbers = #tpu.dot_dimension_numbers<[1], [1], [0], [0], [0, 0, 1, 0], [], []>} : vector<8x16xbf16>, vector<8x16xbf16>, vector<8x8xf32> -> vector<8x8xf32>
    %66 = arith.addf %65, %24 : vector<8x8xf32>
    %cst_29 = arith.constant dense<0xFF800000> : vector<8xf32>
    %67 = vector.multi_reduction <maximumf>, %66, %cst_29 [1] : vector<8x8xf32> to vector<8xf32>
    %68 = vector.shape_cast %67 : vector<8xf32> to vector<8x1xf32>
    %69 = vector.broadcast %68 : vector<8x1xf32> to vector<8x8xf32>
    %70 = arith.subf %66, %69 : vector<8x8xf32>
    %71 = math.exp %70 : vector<8x8xf32>
    %cst_30 = arith.constant dense<0.000000e+00> : vector<8xf32>
    %72 = vector.multi_reduction <add>, %71, %cst_30 [1] : vector<8x8xf32> to vector<8xf32>
    %73 = vector.shape_cast %72 : vector<8xf32> to vector<8x1xf32>
    %74 = tpu.reciprocal %73 {approx = true} : vector<8x1xf32> -> vector<8x1xf32>
    %75 = vector.broadcast %74 : vector<8x1xf32> to vector<8x8xf32>
    %76 = arith.mulf %71, %75 : vector<8x8xf32>
    %77 = arith.truncf %76 : vector<8x8xf32> to vector<8x8xbf16>
    %cst_31 = arith.constant dense<0.000000e+00> : vector<8x16xf32>
    %78 = tpu.matmul %77, %64, %cst_31 {dimension_numbers = #tpu.dot_dimension_numbers<[1], [0], [0], [1], [0, 0, 1, 1], [], []>} : vector<8x8xbf16>, vector<8x16xbf16>, vector<8x16xf32> -> vector<8x16xf32>
    %79 = vector.extract_strided_slice %25 {offsets = [0, 48], sizes = [8, 16], strides = [1, 1]} : vector<8x64xbf16> to vector<8x16xbf16>
    %80 = vector.extract_strided_slice %26 {offsets = [0, 48], sizes = [8, 16], strides = [1, 1]} : vector<8x64xbf16> to vector<8x16xbf16>
    %81 = vector.extract_strided_slice %27 {offsets = [0, 48], sizes = [8, 16], strides = [1, 1]} : vector<8x64xbf16> to vector<8x16xbf16>
    %cst_32 = arith.constant dense<0.000000e+00> : vector<8x8xf32>
    %82 = tpu.matmul %79, %80, %cst_32 {dimension_numbers = #tpu.dot_dimension_numbers<[1], [1], [0], [0], [0, 0, 1, 0], [], []>} : vector<8x16xbf16>, vector<8x16xbf16>, vector<8x8xf32> -> vector<8x8xf32>
    %83 = arith.addf %82, %24 : vector<8x8xf32>
    %cst_33 = arith.constant dense<0xFF800000> : vector<8xf32>
    %84 = vector.multi_reduction <maximumf>, %83, %cst_33 [1] : vector<8x8xf32> to vector<8xf32>
    %85 = vector.shape_cast %84 : vector<8xf32> to vector<8x1xf32>
    %86 = vector.broadcast %85 : vector<8x1xf32> to vector<8x8xf32>
    %87 = arith.subf %83, %86 : vector<8x8xf32>
    %88 = math.exp %87 : vector<8x8xf32>
    %cst_34 = arith.constant dense<0.000000e+00> : vector<8xf32>
    %89 = vector.multi_reduction <add>, %88, %cst_34 [1] : vector<8x8xf32> to vector<8xf32>
    %90 = vector.shape_cast %89 : vector<8xf32> to vector<8x1xf32>
    %91 = tpu.reciprocal %90 {approx = true} : vector<8x1xf32> -> vector<8x1xf32>
    %92 = vector.broadcast %91 : vector<8x1xf32> to vector<8x8xf32>
    %93 = arith.mulf %88, %92 : vector<8x8xf32>
    %94 = arith.truncf %93 : vector<8x8xf32> to vector<8x8xbf16>
    %cst_35 = arith.constant dense<0.000000e+00> : vector<8x16xf32>
    %95 = tpu.matmul %94, %81, %cst_35 {dimension_numbers = #tpu.dot_dimension_numbers<[1], [0], [0], [1], [0, 0, 1, 1], [], []>} : vector<8x8xbf16>, vector<8x16xbf16>, vector<8x16xf32> -> vector<8x16xf32>
    %96 = tpu.concatenate %44, %61, %78, %95 in 1 : vector<8x16xf32>, vector<8x16xf32>, vector<8x16xf32>, vector<8x16xf32> -> vector<8x64xf32>
    %97 = arith.truncf %96 : vector<8x64xf32> to vector<8x64xbf16>
    %cst_36 = arith.constant dense<0.000000e+00> : vector<8x64xf32>
    %98 = tpu.matmul %97, %20, %cst_36 {dimension_numbers = #tpu.dot_dimension_numbers<[1], [0], [0], [1], [0, 0, 1, 1], [], []>} : vector<8x64xbf16>, vector<64x64xbf16>, vector<8x64xf32> -> vector<8x64xf32>
    %99 = vector.broadcast %21 : vector<1x64xf32> to vector<8x64xf32>
    %100 = arith.addf %98, %99 : vector<8x64xf32>
    %101 = arith.addf %1, %100 : vector<8x64xf32>
    %cst_37 = arith.constant dense<0.000000e+00> : vector<8xf32>
    %102 = vector.multi_reduction <add>, %101, %cst_37 [1] : vector<8x64xf32> to vector<8xf32>
    %103 = vector.shape_cast %102 : vector<8xf32> to vector<8x1xf32>
    %cst_38 = arith.constant 6.400000e+01 : f32
    %104 = vector.broadcast %cst_38 : f32 to vector<8x1xf32>
    %105 = arith.divf %103, %104 : vector<8x1xf32>
    %106 = vector.broadcast %105 : vector<8x1xf32> to vector<8x64xf32>
    %107 = arith.subf %101, %106 : vector<8x64xf32>
    %108 = arith.mulf %107, %107 : vector<8x64xf32>
    %cst_39 = arith.constant dense<0.000000e+00> : vector<8xf32>
    %109 = vector.multi_reduction <add>, %108, %cst_39 [1] : vector<8x64xf32> to vector<8xf32>
    %110 = vector.shape_cast %109 : vector<8xf32> to vector<8x1xf32>
    %cst_40 = arith.constant 6.400000e+01 : f32
    %111 = vector.broadcast %cst_40 : f32 to vector<8x1xf32>
    %112 = arith.divf %110, %111 : vector<8x1xf32>
    %113 = vector.broadcast %105 : vector<8x1xf32> to vector<8x64xf32>
    %114 = arith.subf %101, %113 : vector<8x64xf32>
    %cst_41 = arith.constant 9.99999974E-6 : f32
    %115 = vector.broadcast %cst_41 : f32 to vector<8x1xf32>
    %116 = arith.addf %112, %115 : vector<8x1xf32>
    %117 = math.rsqrt %116 : vector<8x1xf32>
    %118 = vector.broadcast %117 : vector<8x1xf32> to vector<8x64xf32>
    %119 = arith.mulf %114, %118 : vector<8x64xf32>
    %120 = vector.broadcast %22 : vector<1x64xf32> to vector<8x64xf32>
    %121 = arith.mulf %119, %120 : vector<8x64xf32>
    %122 = vector.broadcast %23 : vector<1x64xf32> to vector<8x64xf32>
    %123 = arith.addf %121, %122 : vector<8x64xf32>
    %124 = arith.addf %1, %123 : vector<8x64xf32>
    %125 = vector.extract_strided_slice %6 {offsets = [9, 0], sizes = [1, 64], strides = [1, 1]} : vector<16x64xf32> to vector<1x64xf32>
    %126 = vector.extract_strided_slice %6 {offsets = [10, 0], sizes = [1, 64], strides = [1, 1]} : vector<16x64xf32> to vector<1x64xf32>
    %cst_42 = arith.constant dense<0.000000e+00> : vector<8xf32>
    %127 = vector.multi_reduction <add>, %124, %cst_42 [1] : vector<8x64xf32> to vector<8xf32>
    %128 = vector.shape_cast %127 : vector<8xf32> to vector<8x1xf32>
    %cst_43 = arith.constant 6.400000e+01 : f32
    %129 = vector.broadcast %cst_43 : f32 to vector<8x1xf32>
    %130 = arith.divf %128, %129 : vector<8x1xf32>
    %131 = vector.broadcast %130 : vector<8x1xf32> to vector<8x64xf32>
    %132 = arith.subf %124, %131 : vector<8x64xf32>
    %133 = arith.mulf %132, %132 : vector<8x64xf32>
    %cst_44 = arith.constant dense<0.000000e+00> : vector<8xf32>
    %134 = vector.multi_reduction <add>, %133, %cst_44 [1] : vector<8x64xf32> to vector<8xf32>
    %135 = vector.shape_cast %134 : vector<8xf32> to vector<8x1xf32>
    %cst_45 = arith.constant 6.400000e+01 : f32
    %136 = vector.broadcast %cst_45 : f32 to vector<8x1xf32>
    %137 = arith.divf %135, %136 : vector<8x1xf32>
    %138 = vector.broadcast %130 : vector<8x1xf32> to vector<8x64xf32>
    %139 = arith.subf %124, %138 : vector<8x64xf32>
    %cst_46 = arith.constant 9.99999974E-6 : f32
    %140 = vector.broadcast %cst_46 : f32 to vector<8x1xf32>
    %141 = arith.addf %137, %140 : vector<8x1xf32>
    %142 = math.rsqrt %141 : vector<8x1xf32>
    %143 = vector.broadcast %142 : vector<8x1xf32> to vector<8x64xf32>
    %144 = arith.mulf %139, %143 : vector<8x64xf32>
    %145 = vector.broadcast %125 : vector<1x64xf32> to vector<8x64xf32>
    %146 = arith.mulf %144, %145 : vector<8x64xf32>
    %147 = vector.broadcast %126 : vector<1x64xf32> to vector<8x64xf32>
    %148 = arith.addf %146, %147 : vector<8x64xf32>
    %149 = arith.mulf %148, %5 : vector<8x64xf32>
    %c0_47 = arith.constant 0 : index
    %c0_48 = arith.constant 0 : index
    %150 = vector.load %arg10[%c0_47, %c0_48] : memref<64x64xbf16, #tpu.memory_space<vmem>>, vector<64x64xbf16>
    %151 = arith.truncf %149 : vector<8x64xf32> to vector<8x64xbf16>
    %cst_49 = arith.constant dense<0.000000e+00> : vector<8x64xf32>
    %152 = tpu.matmul %151, %150, %cst_49 {dimension_numbers = #tpu.dot_dimension_numbers<[1], [0], [0], [1], [0, 0, 1, 1], [], []>} : vector<8x64xbf16>, vector<64x64xbf16>, vector<8x64xf32> -> vector<8x64xf32>
    %153 = vector.extract_strided_slice %7 {offsets = [3, 0], sizes = [1, 64], strides = [1, 1]} : vector<6x192xf32> to vector<1x64xf32>
    %154 = vector.broadcast %153 : vector<1x64xf32> to vector<8x64xf32>
    %155 = arith.addf %152, %154 : vector<8x64xf32>
    %c0_50 = arith.constant 0 : index
    %c0_51 = arith.constant 0 : index
    %c0_52 = arith.constant 0 : index
    %156 = vector.load %arg3[%c0_50, %c0_51, %c0_52] : memref<1x13x64xbf16, #tpu.memory_space<vmem>>, vector<1x13x64xbf16>
    %157 = vector.shape_cast %156 : vector<1x13x64xbf16> to vector<13x64xbf16>
    %c0_53 = arith.constant 0 : index
    %c0_54 = arith.constant 0 : index
    %158 = vector.load %arg11[%c0_53, %c0_54] : memref<64x128xbf16, #tpu.memory_space<vmem>>, vector<64x128xbf16>
    %cst_55 = arith.constant dense<0.000000e+00> : vector<13x128xf32>
    %159 = tpu.matmul %157, %158, %cst_55 {dimension_numbers = #tpu.dot_dimension_numbers<[1], [0], [0], [1], [0, 0, 1, 1], [], []>} : vector<13x64xbf16>, vector<64x128xbf16>, vector<13x128xf32> -> vector<13x128xf32>
    %160 = vector.extract_strided_slice %7 {offsets = [1, 0], sizes = [1, 128], strides = [1, 1]} : vector<6x192xf32> to vector<1x128xf32>
    %161 = vector.broadcast %160 : vector<1x128xf32> to vector<13x128xf32>
    %162 = arith.addf %159, %161 : vector<13x128xf32>
    %163 = vector.extract_strided_slice %162 {offsets = [0, 0], sizes = [13, 64], strides = [1, 1]} : vector<13x128xf32> to vector<13x64xf32>
    %164 = vector.extract_strided_slice %162 {offsets = [0, 64], sizes = [13, 64], strides = [1, 1]} : vector<13x128xf32> to vector<13x64xf32>
    %c0_56 = arith.constant 0 : index
    %c0_57 = arith.constant 0 : index
    %c0_58 = arith.constant 0 : index
    %165 = vector.load %arg7[%c0_56, %c0_57, %c0_58] : memref<1x8x13xbf16, #tpu.memory_space<vmem>>, vector<1x8x13xbf16>
    %166 = vector.shape_cast %165 : vector<1x8x13xbf16> to vector<8x13xbf16>
    %c1 = arith.constant 1 : index
    %c0_59 = arith.constant 0 : index
    %c0_60 = arith.constant 0 : index
    %167 = vector.load %arg14[%c1, %c0_59, %c0_60] : memref<3x64x64xbf16, #tpu.memory_space<vmem>>, vector<1x64x64xbf16>
    %168 = vector.shape_cast %167 : vector<1x64x64xbf16> to vector<64x64xbf16>
    %169 = vector.extract_strided_slice %6 {offsets = [3, 0], sizes = [1, 64], strides = [1, 1]} : vector<16x64xf32> to vector<1x64xf32>
    %170 = vector.extract_strided_slice %6 {offsets = [4, 0], sizes = [1, 64], strides = [1, 1]} : vector<16x64xf32> to vector<1x64xf32>
    %171 = vector.extract_strided_slice %6 {offsets = [5, 0], sizes = [1, 64], strides = [1, 1]} : vector<16x64xf32> to vector<1x64xf32>
    %172 = arith.extf %166 : vector<8x13xbf16> to vector<8x13xf32>
    %173 = arith.truncf %155 : vector<8x64xf32> to vector<8x64xbf16>
    %174 = arith.truncf %163 : vector<13x64xf32> to vector<13x64xbf16>
    %175 = arith.truncf %164 : vector<13x64xf32> to vector<13x64xbf16>
    %176 = vector.extract_strided_slice %173 {offsets = [0, 0], sizes = [8, 16], strides = [1, 1]} : vector<8x64xbf16> to vector<8x16xbf16>
    %177 = vector.extract_strided_slice %174 {offsets = [0, 0], sizes = [13, 16], strides = [1, 1]} : vector<13x64xbf16> to vector<13x16xbf16>
    %178 = vector.extract_strided_slice %175 {offsets = [0, 0], sizes = [13, 16], strides = [1, 1]} : vector<13x64xbf16> to vector<13x16xbf16>
    %cst_61 = arith.constant dense<0.000000e+00> : vector<8x13xf32>
    %179 = tpu.matmul %176, %177, %cst_61 {dimension_numbers = #tpu.dot_dimension_numbers<[1], [1], [0], [0], [0, 0, 1, 0], [], []>} : vector<8x16xbf16>, vector<13x16xbf16>, vector<8x13xf32> -> vector<8x13xf32>
    %180 = arith.addf %179, %172 : vector<8x13xf32>
    %cst_62 = arith.constant dense<0xFF800000> : vector<8xf32>
    %181 = vector.multi_reduction <maximumf>, %180, %cst_62 [1] : vector<8x13xf32> to vector<8xf32>
    %182 = vector.shape_cast %181 : vector<8xf32> to vector<8x1xf32>
    %183 = vector.broadcast %182 : vector<8x1xf32> to vector<8x13xf32>
    %184 = arith.subf %180, %183 : vector<8x13xf32>
    %185 = math.exp %184 : vector<8x13xf32>
    %cst_63 = arith.constant dense<0.000000e+00> : vector<8xf32>
    %186 = vector.multi_reduction <add>, %185, %cst_63 [1] : vector<8x13xf32> to vector<8xf32>
    %187 = vector.shape_cast %186 : vector<8xf32> to vector<8x1xf32>
    %188 = tpu.reciprocal %187 {approx = true} : vector<8x1xf32> -> vector<8x1xf32>
    %189 = vector.broadcast %188 : vector<8x1xf32> to vector<8x13xf32>
    %190 = arith.mulf %185, %189 : vector<8x13xf32>
    %191 = arith.truncf %190 : vector<8x13xf32> to vector<8x13xbf16>
    %cst_64 = arith.constant dense<0.000000e+00> : vector<8x16xf32>
    %192 = tpu.matmul %191, %178, %cst_64 {dimension_numbers = #tpu.dot_dimension_numbers<[1], [0], [0], [1], [0, 0, 1, 1], [], []>} : vector<8x13xbf16>, vector<13x16xbf16>, vector<8x16xf32> -> vector<8x16xf32>
    %193 = vector.extract_strided_slice %173 {offsets = [0, 16], sizes = [8, 16], strides = [1, 1]} : vector<8x64xbf16> to vector<8x16xbf16>
    %194 = vector.extract_strided_slice %174 {offsets = [0, 16], sizes = [13, 16], strides = [1, 1]} : vector<13x64xbf16> to vector<13x16xbf16>
    %195 = vector.extract_strided_slice %175 {offsets = [0, 16], sizes = [13, 16], strides = [1, 1]} : vector<13x64xbf16> to vector<13x16xbf16>
    %cst_65 = arith.constant dense<0.000000e+00> : vector<8x13xf32>
    %196 = tpu.matmul %193, %194, %cst_65 {dimension_numbers = #tpu.dot_dimension_numbers<[1], [1], [0], [0], [0, 0, 1, 0], [], []>} : vector<8x16xbf16>, vector<13x16xbf16>, vector<8x13xf32> -> vector<8x13xf32>
    %197 = arith.addf %196, %172 : vector<8x13xf32>
    %cst_66 = arith.constant dense<0xFF800000> : vector<8xf32>
    %198 = vector.multi_reduction <maximumf>, %197, %cst_66 [1] : vector<8x13xf32> to vector<8xf32>
    %199 = vector.shape_cast %198 : vector<8xf32> to vector<8x1xf32>
    %200 = vector.broadcast %199 : vector<8x1xf32> to vector<8x13xf32>
    %201 = arith.subf %197, %200 : vector<8x13xf32>
    %202 = math.exp %201 : vector<8x13xf32>
    %cst_67 = arith.constant dense<0.000000e+00> : vector<8xf32>
    %203 = vector.multi_reduction <add>, %202, %cst_67 [1] : vector<8x13xf32> to vector<8xf32>
    %204 = vector.shape_cast %203 : vector<8xf32> to vector<8x1xf32>
    %205 = tpu.reciprocal %204 {approx = true} : vector<8x1xf32> -> vector<8x1xf32>
    %206 = vector.broadcast %205 : vector<8x1xf32> to vector<8x13xf32>
    %207 = arith.mulf %202, %206 : vector<8x13xf32>
    %208 = arith.truncf %207 : vector<8x13xf32> to vector<8x13xbf16>
    %cst_68 = arith.constant dense<0.000000e+00> : vector<8x16xf32>
    %209 = tpu.matmul %208, %195, %cst_68 {dimension_numbers = #tpu.dot_dimension_numbers<[1], [0], [0], [1], [0, 0, 1, 1], [], []>} : vector<8x13xbf16>, vector<13x16xbf16>, vector<8x16xf32> -> vector<8x16xf32>
    %210 = vector.extract_strided_slice %173 {offsets = [0, 32], sizes = [8, 16], strides = [1, 1]} : vector<8x64xbf16> to vector<8x16xbf16>
    %211 = vector.extract_strided_slice %174 {offsets = [0, 32], sizes = [13, 16], strides = [1, 1]} : vector<13x64xbf16> to vector<13x16xbf16>
    %212 = vector.extract_strided_slice %175 {offsets = [0, 32], sizes = [13, 16], strides = [1, 1]} : vector<13x64xbf16> to vector<13x16xbf16>
    %cst_69 = arith.constant dense<0.000000e+00> : vector<8x13xf32>
    %213 = tpu.matmul %210, %211, %cst_69 {dimension_numbers = #tpu.dot_dimension_numbers<[1], [1], [0], [0], [0, 0, 1, 0], [], []>} : vector<8x16xbf16>, vector<13x16xbf16>, vector<8x13xf32> -> vector<8x13xf32>
    %214 = arith.addf %213, %172 : vector<8x13xf32>
    %cst_70 = arith.constant dense<0xFF800000> : vector<8xf32>
    %215 = vector.multi_reduction <maximumf>, %214, %cst_70 [1] : vector<8x13xf32> to vector<8xf32>
    %216 = vector.shape_cast %215 : vector<8xf32> to vector<8x1xf32>
    %217 = vector.broadcast %216 : vector<8x1xf32> to vector<8x13xf32>
    %218 = arith.subf %214, %217 : vector<8x13xf32>
    %219 = math.exp %218 : vector<8x13xf32>
    %cst_71 = arith.constant dense<0.000000e+00> : vector<8xf32>
    %220 = vector.multi_reduction <add>, %219, %cst_71 [1] : vector<8x13xf32> to vector<8xf32>
    %221 = vector.shape_cast %220 : vector<8xf32> to vector<8x1xf32>
    %222 = tpu.reciprocal %221 {approx = true} : vector<8x1xf32> -> vector<8x1xf32>
    %223 = vector.broadcast %222 : vector<8x1xf32> to vector<8x13xf32>
    %224 = arith.mulf %219, %223 : vector<8x13xf32>
    %225 = arith.truncf %224 : vector<8x13xf32> to vector<8x13xbf16>
    %cst_72 = arith.constant dense<0.000000e+00> : vector<8x16xf32>
    %226 = tpu.matmul %225, %212, %cst_72 {dimension_numbers = #tpu.dot_dimension_numbers<[1], [0], [0], [1], [0, 0, 1, 1], [], []>} : vector<8x13xbf16>, vector<13x16xbf16>, vector<8x16xf32> -> vector<8x16xf32>
    %227 = vector.extract_strided_slice %173 {offsets = [0, 48], sizes = [8, 16], strides = [1, 1]} : vector<8x64xbf16> to vector<8x16xbf16>
    %228 = vector.extract_strided_slice %174 {offsets = [0, 48], sizes = [13, 16], strides = [1, 1]} : vector<13x64xbf16> to vector<13x16xbf16>
    %229 = vector.extract_strided_slice %175 {offsets = [0, 48], sizes = [13, 16], strides = [1, 1]} : vector<13x64xbf16> to vector<13x16xbf16>
    %cst_73 = arith.constant dense<0.000000e+00> : vector<8x13xf32>
    %230 = tpu.matmul %227, %228, %cst_73 {dimension_numbers = #tpu.dot_dimension_numbers<[1], [1], [0], [0], [0, 0, 1, 0], [], []>} : vector<8x16xbf16>, vector<13x16xbf16>, vector<8x13xf32> -> vector<8x13xf32>
    %231 = arith.addf %230, %172 : vector<8x13xf32>
    %cst_74 = arith.constant dense<0xFF800000> : vector<8xf32>
    %232 = vector.multi_reduction <maximumf>, %231, %cst_74 [1] : vector<8x13xf32> to vector<8xf32>
    %233 = vector.shape_cast %232 : vector<8xf32> to vector<8x1xf32>
    %234 = vector.broadcast %233 : vector<8x1xf32> to vector<8x13xf32>
    %235 = arith.subf %231, %234 : vector<8x13xf32>
    %236 = math.exp %235 : vector<8x13xf32>
    %cst_75 = arith.constant dense<0.000000e+00> : vector<8xf32>
    %237 = vector.multi_reduction <add>, %236, %cst_75 [1] : vector<8x13xf32> to vector<8xf32>
    %238 = vector.shape_cast %237 : vector<8xf32> to vector<8x1xf32>
    %239 = tpu.reciprocal %238 {approx = true} : vector<8x1xf32> -> vector<8x1xf32>
    %240 = vector.broadcast %239 : vector<8x1xf32> to vector<8x13xf32>
    %241 = arith.mulf %236, %240 : vector<8x13xf32>
    %242 = arith.truncf %241 : vector<8x13xf32> to vector<8x13xbf16>
    %cst_76 = arith.constant dense<0.000000e+00> : vector<8x16xf32>
    %243 = tpu.matmul %242, %229, %cst_76 {dimension_numbers = #tpu.dot_dimension_numbers<[1], [0], [0], [1], [0, 0, 1, 1], [], []>} : vector<8x13xbf16>, vector<13x16xbf16>, vector<8x16xf32> -> vector<8x16xf32>
    %244 = tpu.concatenate %192, %209, %226, %243 in 1 : vector<8x16xf32>, vector<8x16xf32>, vector<8x16xf32>, vector<8x16xf32> -> vector<8x64xf32>
    %245 = arith.truncf %244 : vector<8x64xf32> to vector<8x64xbf16>
    %cst_77 = arith.constant dense<0.000000e+00> : vector<8x64xf32>
    %246 = tpu.matmul %245, %168, %cst_77 {dimension_numbers = #tpu.dot_dimension_numbers<[1], [0], [0], [1], [0, 0, 1, 1], [], []>} : vector<8x64xbf16>, vector<64x64xbf16>, vector<8x64xf32> -> vector<8x64xf32>
    %247 = vector.broadcast %169 : vector<1x64xf32> to vector<8x64xf32>
    %248 = arith.addf %246, %247 : vector<8x64xf32>
    %249 = arith.addf %149, %248 : vector<8x64xf32>
    %cst_78 = arith.constant dense<0.000000e+00> : vector<8xf32>
    %250 = vector.multi_reduction <add>, %249, %cst_78 [1] : vector<8x64xf32> to vector<8xf32>
    %251 = vector.shape_cast %250 : vector<8xf32> to vector<8x1xf32>
    %cst_79 = arith.constant 6.400000e+01 : f32
    %252 = vector.broadcast %cst_79 : f32 to vector<8x1xf32>
    %253 = arith.divf %251, %252 : vector<8x1xf32>
    %254 = vector.broadcast %253 : vector<8x1xf32> to vector<8x64xf32>
    %255 = arith.subf %249, %254 : vector<8x64xf32>
    %256 = arith.mulf %255, %255 : vector<8x64xf32>
    %cst_80 = arith.constant dense<0.000000e+00> : vector<8xf32>
    %257 = vector.multi_reduction <add>, %256, %cst_80 [1] : vector<8x64xf32> to vector<8xf32>
    %258 = vector.shape_cast %257 : vector<8xf32> to vector<8x1xf32>
    %cst_81 = arith.constant 6.400000e+01 : f32
    %259 = vector.broadcast %cst_81 : f32 to vector<8x1xf32>
    %260 = arith.divf %258, %259 : vector<8x1xf32>
    %261 = vector.broadcast %253 : vector<8x1xf32> to vector<8x64xf32>
    %262 = arith.subf %249, %261 : vector<8x64xf32>
    %cst_82 = arith.constant 9.99999974E-6 : f32
    %263 = vector.broadcast %cst_82 : f32 to vector<8x1xf32>
    %264 = arith.addf %260, %263 : vector<8x1xf32>
    %265 = math.rsqrt %264 : vector<8x1xf32>
    %266 = vector.broadcast %265 : vector<8x1xf32> to vector<8x64xf32>
    %267 = arith.mulf %262, %266 : vector<8x64xf32>
    %268 = vector.broadcast %170 : vector<1x64xf32> to vector<8x64xf32>
    %269 = arith.mulf %267, %268 : vector<8x64xf32>
    %270 = vector.broadcast %171 : vector<1x64xf32> to vector<8x64xf32>
    %271 = arith.addf %269, %270 : vector<8x64xf32>
    %272 = arith.addf %3, %271 : vector<8x64xf32>
    %cst_83 = arith.constant 5.000000e-01 : f32
    %273 = vector.broadcast %cst_83 : f32 to vector<8x64xf32>
    %274 = arith.mulf %272, %273 : vector<8x64xf32>
    %275 = tpu.concatenate %149, %274 in 1 : vector<8x64xf32>, vector<8x64xf32> -> vector<8x128xf32>
    %c0_84 = arith.constant 0 : index
    %c0_85 = arith.constant 0 : index
    %276 = vector.load %arg12[%c0_84, %c0_85] : memref<128x64xbf16, #tpu.memory_space<vmem>>, vector<128x64xbf16>
    %277 = arith.truncf %275 : vector<8x128xf32> to vector<8x128xbf16>
    %cst_86 = arith.constant dense<0.000000e+00> : vector<8x64xf32>
    %278 = tpu.matmul %277, %276, %cst_86 {dimension_numbers = #tpu.dot_dimension_numbers<[1], [0], [0], [1], [0, 0, 1, 1], [], []>} : vector<8x128xbf16>, vector<128x64xbf16>, vector<8x64xf32> -> vector<8x64xf32>
    %279 = vector.extract_strided_slice %7 {offsets = [4, 0], sizes = [1, 64], strides = [1, 1]} : vector<6x192xf32> to vector<1x64xf32>
    %280 = vector.broadcast %279 : vector<1x64xf32> to vector<8x64xf32>
    %281 = arith.addf %278, %280 : vector<8x64xf32>
    %c0_87 = arith.constant 0 : index
    %c0_88 = arith.constant 0 : index
    %c0_89 = arith.constant 0 : index
    %282 = vector.load %arg2[%c0_87, %c0_88, %c0_89] : memref<1x99x64xbf16, #tpu.memory_space<vmem>>, vector<1x99x64xbf16>
    %283 = vector.shape_cast %282 : vector<1x99x64xbf16> to vector<99x64xbf16>
    %c0_90 = arith.constant 0 : index
    %c0_91 = arith.constant 0 : index
    %284 = vector.load %arg13[%c0_90, %c0_91] : memref<64x128xbf16, #tpu.memory_space<vmem>>, vector<64x128xbf16>
    %cst_92 = arith.constant dense<0.000000e+00> : vector<99x128xf32>
    %285 = tpu.matmul %283, %284, %cst_92 {dimension_numbers = #tpu.dot_dimension_numbers<[1], [0], [0], [1], [0, 0, 1, 1], [], []>} : vector<99x64xbf16>, vector<64x128xbf16>, vector<99x128xf32> -> vector<99x128xf32>
    %286 = vector.extract_strided_slice %7 {offsets = [2, 0], sizes = [1, 128], strides = [1, 1]} : vector<6x192xf32> to vector<1x128xf32>
    %287 = vector.broadcast %286 : vector<1x128xf32> to vector<99x128xf32>
    %288 = arith.addf %285, %287 : vector<99x128xf32>
    %289 = vector.extract_strided_slice %288 {offsets = [0, 0], sizes = [99, 64], strides = [1, 1]} : vector<99x128xf32> to vector<99x64xf32>
    %290 = vector.extract_strided_slice %288 {offsets = [0, 64], sizes = [99, 64], strides = [1, 1]} : vector<99x128xf32> to vector<99x64xf32>
    %c0_93 = arith.constant 0 : index
    %c0_94 = arith.constant 0 : index
    %c0_95 = arith.constant 0 : index
    %291 = vector.load %arg8[%c0_93, %c0_94, %c0_95] : memref<1x8x99xbf16, #tpu.memory_space<vmem>>, vector<1x8x99xbf16>
    %292 = vector.shape_cast %291 : vector<1x8x99xbf16> to vector<8x99xbf16>
    %c2 = arith.constant 2 : index
    %c0_96 = arith.constant 0 : index
    %c0_97 = arith.constant 0 : index
    %293 = vector.load %arg14[%c2, %c0_96, %c0_97] : memref<3x64x64xbf16, #tpu.memory_space<vmem>>, vector<1x64x64xbf16>
    %294 = vector.shape_cast %293 : vector<1x64x64xbf16> to vector<64x64xbf16>
    %295 = vector.extract_strided_slice %6 {offsets = [6, 0], sizes = [1, 64], strides = [1, 1]} : vector<16x64xf32> to vector<1x64xf32>
    %296 = vector.extract_strided_slice %6 {offsets = [7, 0], sizes = [1, 64], strides = [1, 1]} : vector<16x64xf32> to vector<1x64xf32>
    %297 = vector.extract_strided_slice %6 {offsets = [8, 0], sizes = [1, 64], strides = [1, 1]} : vector<16x64xf32> to vector<1x64xf32>
    %298 = arith.extf %292 : vector<8x99xbf16> to vector<8x99xf32>
    %299 = arith.truncf %281 : vector<8x64xf32> to vector<8x64xbf16>
    %300 = arith.truncf %289 : vector<99x64xf32> to vector<99x64xbf16>
    %301 = arith.truncf %290 : vector<99x64xf32> to vector<99x64xbf16>
    %302 = vector.extract_strided_slice %299 {offsets = [0, 0], sizes = [8, 16], strides = [1, 1]} : vector<8x64xbf16> to vector<8x16xbf16>
    %303 = vector.extract_strided_slice %300 {offsets = [0, 0], sizes = [99, 16], strides = [1, 1]} : vector<99x64xbf16> to vector<99x16xbf16>
    %304 = vector.extract_strided_slice %301 {offsets = [0, 0], sizes = [99, 16], strides = [1, 1]} : vector<99x64xbf16> to vector<99x16xbf16>
    %cst_98 = arith.constant dense<0.000000e+00> : vector<8x99xf32>
    %305 = tpu.matmul %302, %303, %cst_98 {dimension_numbers = #tpu.dot_dimension_numbers<[1], [1], [0], [0], [0, 0, 1, 0], [], []>} : vector<8x16xbf16>, vector<99x16xbf16>, vector<8x99xf32> -> vector<8x99xf32>
    %306 = arith.addf %305, %298 : vector<8x99xf32>
    %cst_99 = arith.constant dense<0xFF800000> : vector<8xf32>
    %307 = vector.multi_reduction <maximumf>, %306, %cst_99 [1] : vector<8x99xf32> to vector<8xf32>
    %308 = vector.shape_cast %307 : vector<8xf32> to vector<8x1xf32>
    %309 = vector.broadcast %308 : vector<8x1xf32> to vector<8x99xf32>
    %310 = arith.subf %306, %309 : vector<8x99xf32>
    %311 = math.exp %310 : vector<8x99xf32>
    %cst_100 = arith.constant dense<0.000000e+00> : vector<8xf32>
    %312 = vector.multi_reduction <add>, %311, %cst_100 [1] : vector<8x99xf32> to vector<8xf32>
    %313 = vector.shape_cast %312 : vector<8xf32> to vector<8x1xf32>
    %314 = tpu.reciprocal %313 {approx = true} : vector<8x1xf32> -> vector<8x1xf32>
    %315 = vector.broadcast %314 : vector<8x1xf32> to vector<8x99xf32>
    %316 = arith.mulf %311, %315 : vector<8x99xf32>
    %317 = arith.truncf %316 : vector<8x99xf32> to vector<8x99xbf16>
    %cst_101 = arith.constant dense<0.000000e+00> : vector<8x16xf32>
    %318 = tpu.matmul %317, %304, %cst_101 {dimension_numbers = #tpu.dot_dimension_numbers<[1], [0], [0], [1], [0, 0, 1, 1], [], []>} : vector<8x99xbf16>, vector<99x16xbf16>, vector<8x16xf32> -> vector<8x16xf32>
    %319 = vector.extract_strided_slice %299 {offsets = [0, 16], sizes = [8, 16], strides = [1, 1]} : vector<8x64xbf16> to vector<8x16xbf16>
    %320 = vector.extract_strided_slice %300 {offsets = [0, 16], sizes = [99, 16], strides = [1, 1]} : vector<99x64xbf16> to vector<99x16xbf16>
    %321 = vector.extract_strided_slice %301 {offsets = [0, 16], sizes = [99, 16], strides = [1, 1]} : vector<99x64xbf16> to vector<99x16xbf16>
    %cst_102 = arith.constant dense<0.000000e+00> : vector<8x99xf32>
    %322 = tpu.matmul %319, %320, %cst_102 {dimension_numbers = #tpu.dot_dimension_numbers<[1], [1], [0], [0], [0, 0, 1, 0], [], []>} : vector<8x16xbf16>, vector<99x16xbf16>, vector<8x99xf32> -> vector<8x99xf32>
    %323 = arith.addf %322, %298 : vector<8x99xf32>
    %cst_103 = arith.constant dense<0xFF800000> : vector<8xf32>
    %324 = vector.multi_reduction <maximumf>, %323, %cst_103 [1] : vector<8x99xf32> to vector<8xf32>
    %325 = vector.shape_cast %324 : vector<8xf32> to vector<8x1xf32>
    %326 = vector.broadcast %325 : vector<8x1xf32> to vector<8x99xf32>
    %327 = arith.subf %323, %326 : vector<8x99xf32>
    %328 = math.exp %327 : vector<8x99xf32>
    %cst_104 = arith.constant dense<0.000000e+00> : vector<8xf32>
    %329 = vector.multi_reduction <add>, %328, %cst_104 [1] : vector<8x99xf32> to vector<8xf32>
    %330 = vector.shape_cast %329 : vector<8xf32> to vector<8x1xf32>
    %331 = tpu.reciprocal %330 {approx = true} : vector<8x1xf32> -> vector<8x1xf32>
    %332 = vector.broadcast %331 : vector<8x1xf32> to vector<8x99xf32>
    %333 = arith.mulf %328, %332 : vector<8x99xf32>
    %334 = arith.truncf %333 : vector<8x99xf32> to vector<8x99xbf16>
    %cst_105 = arith.constant dense<0.000000e+00> : vector<8x16xf32>
    %335 = tpu.matmul %334, %321, %cst_105 {dimension_numbers = #tpu.dot_dimension_numbers<[1], [0], [0], [1], [0, 0, 1, 1], [], []>} : vector<8x99xbf16>, vector<99x16xbf16>, vector<8x16xf32> -> vector<8x16xf32>
    %336 = vector.extract_strided_slice %299 {offsets = [0, 32], sizes = [8, 16], strides = [1, 1]} : vector<8x64xbf16> to vector<8x16xbf16>
    %337 = vector.extract_strided_slice %300 {offsets = [0, 32], sizes = [99, 16], strides = [1, 1]} : vector<99x64xbf16> to vector<99x16xbf16>
    %338 = vector.extract_strided_slice %301 {offsets = [0, 32], sizes = [99, 16], strides = [1, 1]} : vector<99x64xbf16> to vector<99x16xbf16>
    %cst_106 = arith.constant dense<0.000000e+00> : vector<8x99xf32>
    %339 = tpu.matmul %336, %337, %cst_106 {dimension_numbers = #tpu.dot_dimension_numbers<[1], [1], [0], [0], [0, 0, 1, 0], [], []>} : vector<8x16xbf16>, vector<99x16xbf16>, vector<8x99xf32> -> vector<8x99xf32>
    %340 = arith.addf %339, %298 : vector<8x99xf32>
    %cst_107 = arith.constant dense<0xFF800000> : vector<8xf32>
    %341 = vector.multi_reduction <maximumf>, %340, %cst_107 [1] : vector<8x99xf32> to vector<8xf32>
    %342 = vector.shape_cast %341 : vector<8xf32> to vector<8x1xf32>
    %343 = vector.broadcast %342 : vector<8x1xf32> to vector<8x99xf32>
    %344 = arith.subf %340, %343 : vector<8x99xf32>
    %345 = math.exp %344 : vector<8x99xf32>
    %cst_108 = arith.constant dense<0.000000e+00> : vector<8xf32>
    %346 = vector.multi_reduction <add>, %345, %cst_108 [1] : vector<8x99xf32> to vector<8xf32>
    %347 = vector.shape_cast %346 : vector<8xf32> to vector<8x1xf32>
    %348 = tpu.reciprocal %347 {approx = true} : vector<8x1xf32> -> vector<8x1xf32>
    %349 = vector.broadcast %348 : vector<8x1xf32> to vector<8x99xf32>
    %350 = arith.mulf %345, %349 : vector<8x99xf32>
    %351 = arith.truncf %350 : vector<8x99xf32> to vector<8x99xbf16>
    %cst_109 = arith.constant dense<0.000000e+00> : vector<8x16xf32>
    %352 = tpu.matmul %351, %338, %cst_109 {dimension_numbers = #tpu.dot_dimension_numbers<[1], [0], [0], [1], [0, 0, 1, 1], [], []>} : vector<8x99xbf16>, vector<99x16xbf16>, vector<8x16xf32> -> vector<8x16xf32>
    %353 = vector.extract_strided_slice %299 {offsets = [0, 48], sizes = [8, 16], strides = [1, 1]} : vector<8x64xbf16> to vector<8x16xbf16>
    %354 = vector.extract_strided_slice %300 {offsets = [0, 48], sizes = [99, 16], strides = [1, 1]} : vector<99x64xbf16> to vector<99x16xbf16>
    %355 = vector.extract_strided_slice %301 {offsets = [0, 48], sizes = [99, 16], strides = [1, 1]} : vector<99x64xbf16> to vector<99x16xbf16>
    %cst_110 = arith.constant dense<0.000000e+00> : vector<8x99xf32>
    %356 = tpu.matmul %353, %354, %cst_110 {dimension_numbers = #tpu.dot_dimension_numbers<[1], [1], [0], [0], [0, 0, 1, 0], [], []>} : vector<8x16xbf16>, vector<99x16xbf16>, vector<8x99xf32> -> vector<8x99xf32>
    %357 = arith.addf %356, %298 : vector<8x99xf32>
    %cst_111 = arith.constant dense<0xFF800000> : vector<8xf32>
    %358 = vector.multi_reduction <maximumf>, %357, %cst_111 [1] : vector<8x99xf32> to vector<8xf32>
    %359 = vector.shape_cast %358 : vector<8xf32> to vector<8x1xf32>
    %360 = vector.broadcast %359 : vector<8x1xf32> to vector<8x99xf32>
    %361 = arith.subf %357, %360 : vector<8x99xf32>
    %362 = math.exp %361 : vector<8x99xf32>
    %cst_112 = arith.constant dense<0.000000e+00> : vector<8xf32>
    %363 = vector.multi_reduction <add>, %362, %cst_112 [1] : vector<8x99xf32> to vector<8xf32>
    %364 = vector.shape_cast %363 : vector<8xf32> to vector<8x1xf32>
    %365 = tpu.reciprocal %364 {approx = true} : vector<8x1xf32> -> vector<8x1xf32>
    %366 = vector.broadcast %365 : vector<8x1xf32> to vector<8x99xf32>
    %367 = arith.mulf %362, %366 : vector<8x99xf32>
    %368 = arith.truncf %367 : vector<8x99xf32> to vector<8x99xbf16>
    %cst_113 = arith.constant dense<0.000000e+00> : vector<8x16xf32>
    %369 = tpu.matmul %368, %355, %cst_113 {dimension_numbers = #tpu.dot_dimension_numbers<[1], [0], [0], [1], [0, 0, 1, 1], [], []>} : vector<8x99xbf16>, vector<99x16xbf16>, vector<8x16xf32> -> vector<8x16xf32>
    %370 = tpu.concatenate %318, %335, %352, %369 in 1 : vector<8x16xf32>, vector<8x16xf32>, vector<8x16xf32>, vector<8x16xf32> -> vector<8x64xf32>
    %371 = arith.truncf %370 : vector<8x64xf32> to vector<8x64xbf16>
    %cst_114 = arith.constant dense<0.000000e+00> : vector<8x64xf32>
    %372 = tpu.matmul %371, %294, %cst_114 {dimension_numbers = #tpu.dot_dimension_numbers<[1], [0], [0], [1], [0, 0, 1, 1], [], []>} : vector<8x64xbf16>, vector<64x64xbf16>, vector<8x64xf32> -> vector<8x64xf32>
    %373 = vector.broadcast %295 : vector<1x64xf32> to vector<8x64xf32>
    %374 = arith.addf %372, %373 : vector<8x64xf32>
    %375 = arith.addf %149, %374 : vector<8x64xf32>
    %cst_115 = arith.constant dense<0.000000e+00> : vector<8xf32>
    %376 = vector.multi_reduction <add>, %375, %cst_115 [1] : vector<8x64xf32> to vector<8xf32>
    %377 = vector.shape_cast %376 : vector<8xf32> to vector<8x1xf32>
    %cst_116 = arith.constant 6.400000e+01 : f32
    %378 = vector.broadcast %cst_116 : f32 to vector<8x1xf32>
    %379 = arith.divf %377, %378 : vector<8x1xf32>
    %380 = vector.broadcast %379 : vector<8x1xf32> to vector<8x64xf32>
    %381 = arith.subf %375, %380 : vector<8x64xf32>
    %382 = arith.mulf %381, %381 : vector<8x64xf32>
    %cst_117 = arith.constant dense<0.000000e+00> : vector<8xf32>
    %383 = vector.multi_reduction <add>, %382, %cst_117 [1] : vector<8x64xf32> to vector<8xf32>
    %384 = vector.shape_cast %383 : vector<8xf32> to vector<8x1xf32>
    %cst_118 = arith.constant 6.400000e+01 : f32
    %385 = vector.broadcast %cst_118 : f32 to vector<8x1xf32>
    %386 = arith.divf %384, %385 : vector<8x1xf32>
    %387 = vector.broadcast %379 : vector<8x1xf32> to vector<8x64xf32>
    %388 = arith.subf %375, %387 : vector<8x64xf32>
    %cst_119 = arith.constant 9.99999974E-6 : f32
    %389 = vector.broadcast %cst_119 : f32 to vector<8x1xf32>
    %390 = arith.addf %386, %389 : vector<8x1xf32>
    %391 = math.rsqrt %390 : vector<8x1xf32>
    %392 = vector.broadcast %391 : vector<8x1xf32> to vector<8x64xf32>
    %393 = arith.mulf %388, %392 : vector<8x64xf32>
    %394 = vector.broadcast %296 : vector<1x64xf32> to vector<8x64xf32>
    %395 = arith.mulf %393, %394 : vector<8x64xf32>
    %396 = vector.broadcast %297 : vector<1x64xf32> to vector<8x64xf32>
    %397 = arith.addf %395, %396 : vector<8x64xf32>
    %398 = arith.addf %271, %397 : vector<8x64xf32>
    %cst_120 = arith.constant 5.000000e-01 : f32
    %399 = vector.broadcast %cst_120 : f32 to vector<8x64xf32>
    %400 = arith.mulf %398, %399 : vector<8x64xf32>
    %401 = arith.addf %149, %400 : vector<8x64xf32>
    %402 = vector.extract_strided_slice %6 {offsets = [11, 0], sizes = [1, 64], strides = [1, 1]} : vector<16x64xf32> to vector<1x64xf32>
    %403 = vector.extract_strided_slice %6 {offsets = [12, 0], sizes = [1, 64], strides = [1, 1]} : vector<16x64xf32> to vector<1x64xf32>
    %cst_121 = arith.constant dense<0.000000e+00> : vector<8xf32>
    %404 = vector.multi_reduction <add>, %401, %cst_121 [1] : vector<8x64xf32> to vector<8xf32>
    %405 = vector.shape_cast %404 : vector<8xf32> to vector<8x1xf32>
    %cst_122 = arith.constant 6.400000e+01 : f32
    %406 = vector.broadcast %cst_122 : f32 to vector<8x1xf32>
    %407 = arith.divf %405, %406 : vector<8x1xf32>
    %408 = vector.broadcast %407 : vector<8x1xf32> to vector<8x64xf32>
    %409 = arith.subf %401, %408 : vector<8x64xf32>
    %410 = arith.mulf %409, %409 : vector<8x64xf32>
    %cst_123 = arith.constant dense<0.000000e+00> : vector<8xf32>
    %411 = vector.multi_reduction <add>, %410, %cst_123 [1] : vector<8x64xf32> to vector<8xf32>
    %412 = vector.shape_cast %411 : vector<8xf32> to vector<8x1xf32>
    %cst_124 = arith.constant 6.400000e+01 : f32
    %413 = vector.broadcast %cst_124 : f32 to vector<8x1xf32>
    %414 = arith.divf %412, %413 : vector<8x1xf32>
    %415 = vector.broadcast %407 : vector<8x1xf32> to vector<8x64xf32>
    %416 = arith.subf %401, %415 : vector<8x64xf32>
    %cst_125 = arith.constant 9.99999974E-6 : f32
    %417 = vector.broadcast %cst_125 : f32 to vector<8x1xf32>
    %418 = arith.addf %414, %417 : vector<8x1xf32>
    %419 = math.rsqrt %418 : vector<8x1xf32>
    %420 = vector.broadcast %419 : vector<8x1xf32> to vector<8x64xf32>
    %421 = arith.mulf %416, %420 : vector<8x64xf32>
    %422 = vector.broadcast %402 : vector<1x64xf32> to vector<8x64xf32>
    %423 = arith.mulf %421, %422 : vector<8x64xf32>
    %424 = vector.broadcast %403 : vector<1x64xf32> to vector<8x64xf32>
    %425 = arith.addf %423, %424 : vector<8x64xf32>
    %426 = arith.mulf %425, %5 : vector<8x64xf32>
    %c0_126 = arith.constant 0 : index
    %c0_127 = arith.constant 0 : index
    %427 = vector.load %arg15[%c0_126, %c0_127] : memref<64x128xbf16, #tpu.memory_space<vmem>>, vector<64x128xbf16>
    %428 = arith.truncf %426 : vector<8x64xf32> to vector<8x64xbf16>
    %cst_128 = arith.constant dense<0.000000e+00> : vector<8x128xf32>
    %429 = tpu.matmul %428, %427, %cst_128 {dimension_numbers = #tpu.dot_dimension_numbers<[1], [0], [0], [1], [0, 0, 1, 1], [], []>} : vector<8x64xbf16>, vector<64x128xbf16>, vector<8x128xf32> -> vector<8x128xf32>
    %430 = vector.extract_strided_slice %7 {offsets = [5, 0], sizes = [1, 128], strides = [1, 1]} : vector<6x192xf32> to vector<1x128xf32>
    %431 = vector.broadcast %430 : vector<1x128xf32> to vector<8x128xf32>
    %432 = arith.addf %429, %431 : vector<8x128xf32>
    %cst_129 = arith.constant 0.000000e+00 : f32
    %433 = vector.broadcast %cst_129 : f32 to vector<8x128xf32>
    %434 = arith.maximumf %432, %433 : vector<8x128xf32>
    %c0_130 = arith.constant 0 : index
    %c0_131 = arith.constant 0 : index
    %435 = vector.load %arg16[%c0_130, %c0_131] : memref<128x64xbf16, #tpu.memory_space<vmem>>, vector<128x64xbf16>
    %436 = arith.truncf %434 : vector<8x128xf32> to vector<8x128xbf16>
    %cst_132 = arith.constant dense<0.000000e+00> : vector<8x64xf32>
    %437 = tpu.matmul %436, %435, %cst_132 {dimension_numbers = #tpu.dot_dimension_numbers<[1], [0], [0], [1], [0, 0, 1, 1], [], []>} : vector<8x128xbf16>, vector<128x64xbf16>, vector<8x64xf32> -> vector<8x64xf32>
    %438 = vector.extract_strided_slice %6 {offsets = [15, 0], sizes = [1, 64], strides = [1, 1]} : vector<16x64xf32> to vector<1x64xf32>
    %439 = vector.broadcast %438 : vector<1x64xf32> to vector<8x64xf32>
    %440 = arith.addf %437, %439 : vector<8x64xf32>
    %441 = arith.addf %426, %440 : vector<8x64xf32>
    %442 = vector.extract_strided_slice %6 {offsets = [13, 0], sizes = [1, 64], strides = [1, 1]} : vector<16x64xf32> to vector<1x64xf32>
    %443 = vector.extract_strided_slice %6 {offsets = [14, 0], sizes = [1, 64], strides = [1, 1]} : vector<16x64xf32> to vector<1x64xf32>
    %cst_133 = arith.constant dense<0.000000e+00> : vector<8xf32>
    %444 = vector.multi_reduction <add>, %441, %cst_133 [1] : vector<8x64xf32> to vector<8xf32>
    %445 = vector.shape_cast %444 : vector<8xf32> to vector<8x1xf32>
    %cst_134 = arith.constant 6.400000e+01 : f32
    %446 = vector.broadcast %cst_134 : f32 to vector<8x1xf32>
    %447 = arith.divf %445, %446 : vector<8x1xf32>
    %448 = vector.broadcast %447 : vector<8x1xf32> to vector<8x64xf32>
    %449 = arith.subf %441, %448 : vector<8x64xf32>
    %450 = arith.mulf %449, %449 : vector<8x64xf32>
    %cst_135 = arith.constant dense<0.000000e+00> : vector<8xf32>
    %451 = vector.multi_reduction <add>, %450, %cst_135 [1] : vector<8x64xf32> to vector<8xf32>
    %452 = vector.shape_cast %451 : vector<8xf32> to vector<8x1xf32>
    %cst_136 = arith.constant 6.400000e+01 : f32
    %453 = vector.broadcast %cst_136 : f32 to vector<8x1xf32>
    %454 = arith.divf %452, %453 : vector<8x1xf32>
    %455 = vector.broadcast %447 : vector<8x1xf32> to vector<8x64xf32>
    %456 = arith.subf %441, %455 : vector<8x64xf32>
    %cst_137 = arith.constant 9.99999974E-6 : f32
    %457 = vector.broadcast %cst_137 : f32 to vector<8x1xf32>
    %458 = arith.addf %454, %457 : vector<8x1xf32>
    %459 = math.rsqrt %458 : vector<8x1xf32>
    %460 = vector.broadcast %459 : vector<8x1xf32> to vector<8x64xf32>
    %461 = arith.mulf %456, %460 : vector<8x64xf32>
    %462 = vector.broadcast %442 : vector<1x64xf32> to vector<8x64xf32>
    %463 = arith.mulf %461, %462 : vector<8x64xf32>
    %464 = vector.broadcast %443 : vector<1x64xf32> to vector<8x64xf32>
    %465 = arith.addf %463, %464 : vector<8x64xf32>
    %466 = arith.mulf %465, %5 : vector<8x64xf32>
    %c0_138 = arith.constant 0 : index
    %c0_139 = arith.constant 0 : index
    %c0_140 = arith.constant 0 : index
    %467 = vector.load %arg19[%c0_138, %c0_139, %c0_140] : memref<1x8x64xf32, #tpu.memory_space<vmem>>, vector<1x8x64xf32>
    %468 = vector.shape_cast %467 : vector<1x8x64xf32> to vector<8x64xf32>
    %469 = vector.shape_cast %466 : vector<8x64xf32> to vector<1x8x64xf32>
    tpu.vector_store %arg19[%c0_138, %c0_139, %c0_140], %469 {strides = array<i32>} : memref<1x8x64xf32, #tpu.memory_space<vmem>>, vector<1x8x64xf32>,
    return
  }
  func.func @transform_0(%arg0: i32) -> (i32, i32, i32) {
    %c0_i32 = arith.constant 0 : i32
    %c0_i32_0 = arith.constant 0 : i32
    %c0_i32_1 = arith.constant 0 : i32
    return %arg0, %c0_i32, %c0_i32_0 : i32, i32, i32
  }
  func.func @transform_1(%arg0: i32) -> (i32, i32, i32) {
    %c0_i32 = arith.constant 0 : i32
    %c0_i32_0 = arith.constant 0 : i32
    %c0_i32_1 = arith.constant 0 : i32
    return %arg0, %c0_i32, %c0_i32_0 : i32, i32, i32
  }
  func.func @transform_2(%arg0: i32) -> (i32, i32, i32) {
    %c0_i32 = arith.constant 0 : i32
    %c0_i32_0 = arith.constant 0 : i32
    %c0_i32_1 = arith.constant 0 : i32
    return %arg0, %c0_i32, %c0_i32_0 : i32, i32, i32
  }
  func.func @transform_3(%arg0: i32) -> (i32, i32, i32) {
    %c0_i32 = arith.constant 0 : i32
    %c0_i32_0 = arith.constant 0 : i32
    %c0_i32_1 = arith.constant 0 : i32
    return %arg0, %c0_i32, %c0_i32_0 : i32, i32, i32
  }
  func.func @transform_4(%arg0: i32) -> (i32, i32, i32) {
    %c0_i32 = arith.constant 0 : i32
    %c0_i32_0 = arith.constant 0 : i32
    %c0_i32_1 = arith.constant 0 : i32
    return %arg0, %c0_i32, %c0_i32_0 : i32, i32, i32
  }
  func.func @transform_5(%arg0: i32) -> (i32, i32, i32) {
    %c0_i32 = arith.constant 0 : i32
    %c0_i32_0 = arith.constant 0 : i32
    %c0_i32_1 = arith.constant 0 : i32
    return %arg0, %c0_i32, %c0_i32_0 : i32, i32, i32
  }
  func.func @transform_6(%arg0: i32) -> (i32, i32, i32) {
    %c0_i32 = arith.constant 0 : i32
    %c0_i32_0 = arith.constant 0 : i32
    %c0_i32_1 = arith.constant 0 : i32
    return %arg0, %c0_i32, %c0_i32_0 : i32, i32, i32
  }
  func.func @transform_7(%arg0: i32) -> (i32, i32, i32) {
    %c0_i32 = arith.constant 0 : i32
    %c0_i32_0 = arith.constant 0 : i32
    %c0_i32_1 = arith.constant 0 : i32
    return %arg0, %c0_i32, %c0_i32_0 : i32, i32, i32
  }
  func.func @transform_8(%arg0: i32) -> (i32, i32) {
    %c0_i32 = arith.constant 0 : i32
    %c0_i32_0 = arith.constant 0 : i32
    %c0_i32_1 = arith.constant 0 : i32
    return %c0_i32, %c0_i32_0 : i32, i32
  }
  func.func @transform_9(%arg0: i32) -> (i32, i32) {
    %c0_i32 = arith.constant 0 : i32
    %c0_i32_0 = arith.constant 0 : i32
    %c0_i32_1 = arith.constant 0 : i32
    return %c0_i32, %c0_i32_0 : i32, i32
  }
  func.func @transform_10(%arg0: i32) -> (i32, i32) {
    %c0_i32 = arith.constant 0 : i32
    %c0_i32_0 = arith.constant 0 : i32
    %c0_i32_1 = arith.constant 0 : i32
    return %c0_i32, %c0_i32_0 : i32, i32
  }
  func.func @transform_11(%arg0: i32) -> (i32, i32) {
    %c0_i32 = arith.constant 0 : i32
    %c0_i32_0 = arith.constant 0 : i32
    %c0_i32_1 = arith.constant 0 : i32
    return %c0_i32, %c0_i32_0 : i32, i32
  }
  func.func @transform_12(%arg0: i32) -> (i32, i32) {
    %c0_i32 = arith.constant 0 : i32
    %c0_i32_0 = arith.constant 0 : i32
    %c0_i32_1 = arith.constant 0 : i32
    return %c0_i32, %c0_i32_0 : i32, i32
  }
  func.func @transform_13(%arg0: i32) -> (i32, i32, i32) {
    %c0_i32 = arith.constant 0 : i32
    %c0_i32_0 = arith.constant 0 : i32
    %c0_i32_1 = arith.constant 0 : i32
    %c0_i32_2 = arith.constant 0 : i32
    return %c0_i32, %c0_i32_0, %c0_i32_1 : i32, i32, i32
  }
  func.func @transform_14(%arg0: i32) -> (i32, i32) {
    %c0_i32 = arith.constant 0 : i32
    %c0_i32_0 = arith.constant 0 : i32
    %c0_i32_1 = arith.constant 0 : i32
    return %c0_i32, %c0_i32_0 : i32, i32
  }
  func.func @transform_15(%arg0: i32) -> (i32, i32) {
    %c0_i32 = arith.constant 0 : i32
    %c0_i32_0 = arith.constant 0 : i32
    %c0_i32_1 = arith.constant 0 : i32
    return %c0_i32, %c0_i32_0 : i32, i32
  }
  func.func @transform_16(%arg0: i32) -> (i32, i32) {
    %c0_i32 = arith.constant 0 : i32
    %c0_i32_0 = arith.constant 0 : i32
    %c0_i32_1 = arith.constant 0 : i32
    return %c0_i32, %c0_i32_0 : i32, i32
  }
  func.func @transform_17(%arg0: i32) -> (i32, i32) {
    %c0_i32 = arith.constant 0 : i32
    %c0_i32_0 = arith.constant 0 : i32
    %c0_i32_1 = arith.constant 0 : i32
    return %c0_i32, %c0_i32_0 : i32, i32
  }
  func.func @transform_18(%arg0: i32) -> (i32, i32, i32) {
    %c0_i32 = arith.constant 0 : i32
    %c0_i32_0 = arith.constant 0 : i32
    %c0_i32_1 = arith.constant 0 : i32
    return %arg0, %c0_i32, %c0_i32_0 : i32, i32, i32
  }
}

</mosaic_0001>

<bundles_post_ra>
// kernel: decoder_layer_pallas.1
= control target key start
LH: loop header
LB: loop body
LE: loop exit
PB: predicated region body
PF: predicated region fallthrough
CT: control target
= control target key end

     0   :  { %s5575_s0 = inlined_call_operand.vmem [shape: f32[2,8,64], index: 0, kind: input, shape index: {}]   ;;  %s5576_s1 = inlined_call_operand.vmem [shape: bf16[2,99,64], index: 1, kind: input, shape index: {}]   ;;  %s5577_s2 = inlined_call_operand.vmem [shape: bf16[2,13,64], index: 2, kind: input, shape index: {}]   ;;  %s5578_s3 = inlined_call_operand.vmem [shape: f32[2,8,64], index: 3, kind: input, shape index: {}]   ;;  %s5579_s4 = inlined_call_operand.vmem [shape: f32[2,8,64], index: 4, kind: input, shape index: {}]   ;;  %s5580_s5 = inlined_call_operand.vmem [shape: bf16[2,8,8], index: 5, kind: input, shape index: {}]   ;;  %s5581_s6 = inlined_call_operand.vmem [shape: bf16[2,8,13], index: 6, kind: input, shape index: {}]   ;;  %s5582_s7 = inlined_call_operand.vmem [shape: bf16[2,8,99], index: 7, kind: input, shape index: {}]   ;;  %s5583_s8 = inlined_call_operand.vmem [shape: bf16[64,192], index: 8, kind: input, shape index: {}]   ;;  %s5584_s9 = inlined_call_operand.vmem [shape: bf16[64,64], index: 9, kind: input, shape index: {}]   ;;  %s5585_s10 = inlined_call_operand.vmem [shape: bf16[64,128], index: 10, kind: input, shape index: {}]   ;;  %s5586_s11 = inlined_call_operand.vmem [shape: bf16[128,64], index: 11, kind: input, shape index: {}]   ;;  %s5587_s12 = inlined_call_operand.vmem [shape: bf16[64,128], index: 12, kind: input, shape index: {}]   ;;  %s5588_s13 = inlined_call_operand.vmem [shape: bf16[3,64,64], index: 13, kind: input, shape index: {}]   ;;  %s5589_s14 = inlined_call_operand.vmem [shape: bf16[64,128], index: 14, kind: input, shape index: {}]   ;;  %s5590_s15 = inlined_call_operand.vmem [shape: bf16[128,64], index: 15, kind: input, shape index: {}]   ;;  %s5591_s16 = inlined_call_operand.vmem [shape: f32[6,192], index: 16, kind: input, shape index: {}]   ;;  %s5592_s17 = inlined_call_operand.vmem [shape: f32[16,64], index: 17, kind: input, shape index: {}]   ;;  %s5593_s18 = inlined_call_operand.hbm [shape: f32[2,8,64], index: 18, kind: output, shape index: {}]  }
   0x1   :  { %5615 = sst [smem:[#allocation11_spill]] %s5575_s0 }
   0x2   :  { %5616 = sst [smem:[#allocation12_spill]] %s5576_s1 }
   0x3   :  { %5617 = sst [smem:[#allocation13_spill]] %s5577_s2 }
   0x4   :  { %5618 = sst [smem:[#allocation14_spill]] %s5579_s4 }
   0x5   :  { %5619 = sst [smem:[#allocation15_spill]] %s5580_s5 }
   0x6   :  { %5620 = sst [smem:[#allocation16_spill]] %s5581_s6 }
   0x7   :  { %5621 = sst [smem:[#allocation17_spill]] %s5583_s8 }
   0x8   :  { %5622 = sst [smem:[#allocation18_spill]] %s5584_s9 }
   0x9   :  { %5623 = sst [smem:[#allocation19_spill]] %s5585_s10 }
   0xa   :  { %5624 = sst [smem:[#allocation20_spill]] %s5593_s18 }
   0xb   :  { %23 = vsyncpa [#allocation3], 0 }
   0xc   :  { %25 = vsyncpa [#allocation3 + $0x1], 0  ;;  %s4625_s27 = smov 0   ;;  %s4627_s28 = smov 0  }
   0xd   :  { %s4629_s29 = smov 0   ;;  %s4631_s30 = smov 0  }
   0xe LB: > { %5625 = sst [smem:[#allocation5_spill]] %s4504_s27  ;;  %s4646_s0 = sadd.s32 4294967295, %s4516_s30   ;;  %s4516_s30 = sphi %s4631_s30, %s5653_s30   ;;  %s4512_s29 = sphi %s4629_s29, %s5655_s29   ;;  %s4508_s28 = sphi %s4627_s28, %s5657_s28   ;;  %s4504_s27 = sphi %s4625_s27, %s5656_s27  }
   0xf   : > { %5626 = sst [smem:[#allocation6_spill]] %s4512_s29  ;;  %s3598_s19 = sadd.s32 4294967294, %s4516_s30  }
  0x10   : > { %5627 = sst [smem:[#allocation7_spill]] %s4516_s30  ;;  %s4650_s1 = sadd.s32 1, %s4516_s30  }
  0x11   : > { %5628 = sst [smem:[#allocation8_spill]] %s4650_s1  ;;  %s456_s20 = sadd.s32 1, %s4512_s29 }
  0x12   : > { %s453_s21 = ssub.s32 %s4516_s30, %s4650_s1  ;;  %p466_p0 = scmp.ne.s32.totalorder %s4512_s29, %s4508_s28 }
  0x13   : > { %p454_p1 = scmp.eq.s32.totalorder %s453_s21, 0  ;;  %p467_p2 = scmp.eq.s32.totalorder %s4646_s0, 1 }
  0x14   : > { %p472_p3 = scmp.ne.s32.totalorder %s4508_s28, %s4504_s27  ;;  %p473_p4 = scmp.eq.s32.totalorder %s3598_s19, 1 }
  0x15   : > { %s4661_s22 = scalar_select %p454_p1, %s4512_s29, %s456_s20  }
  0x16   : > { %p4663_p5 = por %p467_p2, %p466_p0  ;;  %p4667_p6 = por %p473_p4, %p472_p3 }
  0x17   : > { %5629 = sst [smem:[#allocation9_spill]] %s4661_s22  ;;  %p3601_p7 = scmp.ge.s32.totalorder %s4516_s30, 1 }
  0x18   : > { %s5631_s23 = scalar_select %p4667_p6, 1, 0 }
  0x19   : > { %p579_p8 = scmp.lt.s32.totalorder %s4516_s30, 3 }
  0x1a   : > { %5632 = sst [smem:[#allocation10_spill]] %s5631_s23 }
  0x1b   : > { %p580_p9 = pnand %p3601_p7, %p579_p8 }
  0x1c   : > { %s5633_s8 = sld [smem:[#allocation17_spill]] (!%p580_p9)  ;;  %p662_p10 = scmp.lt.s32.totalorder (!%p580_p9), %s4646_s0, 1  ;;  %v4518_v2 = vmov (!%p580_p9), 0   ;;  %vm761_vm0 = vcmask (!%p580_p9), 523264   ;;  %v713_v11 = vlaneseq (!%p580_p9)  ;;  %v4519_v13 = vmov (!%p580_p9), 0.0  }
  0x1d   : > { %583 = sbr.rel (%p580_p9) target bundleno = 8476 (0x211c), region = 92  ;;  %797 = vmatprep.mubr.bf16.mxu1 (!%p580_p9), %v4518_v2  ;;  %s5634_s24 = sld [smem:[#allocation11_spill]] (!%p580_p9)  ;;  %3898 = vmatprep.subr.bf16.mxu0 (!%p580_p9), %v4519_v13  ;;  %v4729_v15 = vld [vmem:[%s5591_s16] sm:$0x3f] (!%p580_p9)  ;;  %vm4520_vm1 = vmmov (!%p580_p9), 0   ;;  %vm821_vm2 = vcmask (!%p580_p9), 130048  }
  0x1e   : > { %s5635_s1 = sld [smem:[#allocation12_spill]] (!%p580_p9)  ;;  %v4719_v12 = vshrl.u32 (!%p580_p9), %v713_v11, 7  ;;  %3900 = vmatprep.mubr.msk.bf16.mxu0 (!%p580_p9), %vm4520_vm1, %v4519_v13  ;;  %s5607_s29 = smov (!%p580_p9), 48   ;;  %v703_v23 = vld [vmem:[%s5591_s16 + $0x8] sm:$0x3f] (!%p580_p9)  ;;  %vm884_vm3 = vcmask (!%p580_p9), 1043456  }
  0x1f   : > { %s5609_s26 = smov (!%p580_p9), 16   ;;  %s5605_s27 = smov (!%p580_p9), 96   ;;  %vm868_vm4 = vcmask (!%p580_p9), 64512   ;;  %vm1272_vm5 = vcmask (!%p580_p9), 261120   ;;  %vm1274_vm6 = vcmask (!%p580_p9), 392192   ;;  %vm1624_vm7 = vcmask (!%p580_p9), 105472  }
  0x20   : > { %v4724_v14 = vsub.s32 (!%p580_p9), 0, %v4719_v12  ;;  %s5603_s30 = smov (!%p580_p9), 80   ;;  %s5636_s5 = sld [smem:[#allocation15_spill]] (!%p580_p9)  ;;  %vm1643_vm8 = vcmask (!%p580_p9), 1045504   ;;  %vm1644_vm9 = vcmask (!%p580_p9), 1046528   ;;  %vm2522_vm10 = vcmask (!%p580_p9), 809984  }
  0x21   : > { %s5637_s10 = sld [smem:[#allocation19_spill]] (!%p580_p9)  ;;  %s5638_s9 = sld [smem:[#allocation18_spill]] (!%p580_p9)  ;;  %vm2565_vm11 = vcmask (!%p580_p9), 1040384   ;;  %vm2566_vm12 = vcmask (!%p580_p9), 1041408  }
  0x22   : > { %v4325_v0 = vld [vmem:[%s5633_s8 + $0x4] ss:$8 sps:$4 sm:$0xff] (!%p580_p9)   ;;  %v4327_v1 = vld [vmem:[%s5633_s8] ss:$8 sps:$4 sm:$0xff] (!%p580_p9)   ;;  %v4328_v3 = vld [vmem:[%s5633_s8 + $0x14] ss:$8 sps:$4 sm:$0xff] (!%p580_p9)   ;;  %v716_v16 = vrot.slane (!%p580_p9), %v4729_v15, %v4724_v14  ;;  %v720_v24 = vrot.slane (!%p580_p9), %v703_v23, %v4724_v14 }
  0x23   : > { %765 = vmatprep.subr.bf16.mxu1 (!%p580_p9), %v4325_v0  ;;  %v4330_v4 = vld [vmem:[%s5633_s8 + $0x10] ss:$8 sps:$4 sm:$0xff] (!%p580_p9)   ;;  %v4331_v5 = vld [vmem:[%s5633_s8 + $0x24] ss:$8 sps:$4 sm:$0xff] (!%p580_p9)   ;;  %v4333_v6 = vld [vmem:[%s5633_s8 + $0x20] ss:$8 sps:$4 sm:$0xff] (!%p580_p9)  }
  0x24   : > { %s4684_s22 = scalar_select %p662_p10, %s4646_s0, 1  ;;  %766 = vmatpush1.bf16.msra.mxu1 %v4327_v1  ;;  %v4334_v7 = vld [vmem:[%s5633_s8 + $0x34] ss:$8 sps:$4 sm:$0xff]   ;;  %v4336_v8 = vld [vmem:[%s5633_s8 + $0x30] ss:$8 sps:$4 sm:$0xff]  }
  0x25   : > { %767 = vmatprep.subr.bf16.mxu1 %v4328_v3  ;;  %s5640_s4 = sld [smem:[#allocation14_spill]]  ;;  %s5644_s6 = sld [smem:[#allocation16_spill]] }
  0x26   : > { %s4693_s19 = sshll.u32 %s4684_s22, 3  ;;  %s4274_s18 = smul.u32 52, %s4684_s22 }
  0x27   : > { %s665_s25 = scalar_lea.vmem %s5634_s24, %s4693_s19  ;;  %s5601_s24 = smov 64  }
  0x28   : > { %768 = vmatpush1.bf16.msra.mxu1 %v4330_v4  ;;  %v4709_v9 = vld [vmem:[%s665_s25] sm:$0xff]  ;;  %s4717_s23 = scalar_lea.vmem %s5635_s1, %s4274_s18  ;;  %s5613_s18 = smov 112  }
  0x29   : > { %769 = vmatprep.subr.bf16.mxu1 %v4331_v5  ;;  %v712_v10 = vpack.c.bf16 %v4709_v9, %v4709_v9  ;;  %s5611_s25 = smov 32   ;;  %s4774_s21 = sshll.u32 %s4684_s22, 2 }
  0x2a   : > { %s5645_s20 = smov 64   ;;  %s5646_s22 = smov 32  }
  0x2b   : > { %s691_s1 = scalar_lea.vmem %s5644_s6, %s4774_s21 }
  0x2c   : > { %770 = vmatpush1.bf16.msra.mxu1 %v4333_v6 }
  0x2d   : > { %771 = vmatprep.subr.bf16.mxu1 %v4334_v7 }
  0x30   : > { %772 = vmatpush1.bf16.msra.mxu1 %v4336_v8 }
  0x31   : > { %3886 = vmatprep.subr.bf16.mxu1 %v4519_v13 }
  0x33   : > { %3620 = vmatmul.mubr.msk.bf16.vlgmr.msra.gmra.mrb[0].mxu1 %vm761_vm0, %v712_v10 }
  0x34   : > { %3888 = vmatprep.mubr.msk.bf16.mxu1 %vm4520_vm1, %v4519_v13 }
 0x106   : > { %v799_v17 = vpop.f32.mrb[0].mxu1 }
 0x107   : > { %v800_v18 = vadd.f32 %v799_v17, %v716_v16  ;;  %v801_v19 = vpop.f32.mrb[1].mxu1 }
 0x108   : > { %v803_v20 = vpop.f32.mrb[2].mxu1  ;;  %v802_v26 = vadd.f32 %v801_v19, %v720_v24 }
 0x109   : > { %v816_v21 = vpack.c.bf16 %v800_v18, %v800_v18  ;;  %v804_v22 = vpop.f32.mrb[3].mxu1 }
 0x10a   : > { %v4750_v30 = vpack.c.bf16 %v802_v26, %v802_v26 }
 0x10b   : > { %928 = vrot.lane.b32.xlu1 %v816_v21, %s5613_s18  ;;  %819 = vrot.lane.b32.xlu0 %v816_v21, %s5601_s24  ;;  %s687_s24 = scalar_lea.vmem %s5636_s5, %s4774_s21  ;;  %s679_s5 = scalar_lea.vmem %s5578_s3, %s4693_s19 }
 0x10c   : > { %v886_v32 = vsel %vm884_vm3, %v4750_v30, 0  ;;  %v806_v39 = vld [vmem:[%s687_s24] sm:$0xf]  ;;  %s5647_s24 = smov 16  }
 0x10d   : > { %v815_v40 = vunpack.c.l.bf16 %v806_v39 }
 0x10f   : > { %1041 = vrot.lane.b32.xlu1 %v816_v21, %s5611_s25  ;;  %930 = vrot.lane.b32.xlu0 %v816_v21, %s5607_s29 }
 0x113   : > { %1151 = vrot.lane.b32.xlu1 %v816_v21, %s5609_s26  ;;  %1039 = vrot.lane.b32.xlu0 %v816_v21, %s5605_s27 }
 0x117   : > { %1149 = vrot.lane.b32.xlu0 %v816_v21, %s5603_s30 }
 0x17d   : > { %v820_v25 = vpop.permute.xlu0 %819  ;;  %v929_v28 = vpop.permute.xlu1 %928 }
 0x17e   : > { %v826_v27 = vsel %vm821_vm2, %v820_v25, 0 }
 0x17f   : > { %3887 = vmatpush3.bf16.xpose.msra.mxu1 %v826_v27 }
 0x180   : > { %3892 = vmatprep.subr.bf16.mxu1 %v4519_v13 }
 0x181   : > { %v931_v29 = vpop.permute.xlu0 %930  ;;  %v1042_v33 = vpop.permute.xlu1 %1041 }
 0x182   : > { %v936_v31 = vsel %vm821_vm2, %v931_v29, 0  ;;  %v1047_v34 = vsel %vm821_vm2, %v1042_v33, 0 }
 0x183   : > { %3899 = vmatpush3.bf16.xpose.msra.mxu0 %v936_v31 }
 0x184   : > { %3910 = vmatprep.subr.bf16.mxu0 %v4519_v13 }
 0x185   : > { %v1152_v35 = vpop.permute.xlu1 %1151  ;;  %v1040_v36 = vpop.permute.xlu0 %1039 }
 0x186   : > { %3889 = vmatmul.mubr.msk.bf16.vlgmr.msra.gmra.mrb[4].mxu1 %vm821_vm2, %v816_v21  ;;  %v1157_v37 = vsel %vm821_vm2, %v1152_v35, 0 }
 0x187   : > { %3893 = vmatpush3.bf16.msra.mxu1 %v886_v32  ;;  %3894 = vmatprep.mubr.msk.bf16.mxu1 %vm4520_vm1, %v4519_v13 }
 0x188   : > { %3904 = vmatprep.subr.bf16.mxu1 %v4519_v13 }
 0x189   : > { %v1150_v38 = vpop.permute.xlu0 %1149 }
 0x18a   : > { %3901 = vmatmul.mubr.msk.bf16.vlgmr.msra.gmra.mrb[0].mxu0 %vm821_vm2, %v929_v28 }
 0x18b   : > { %3911 = vmatpush3.bf16.xpose.msra.mxu0 %v1047_v34  ;;  %3912 = vmatprep.mubr.msk.bf16.mxu0 %vm4520_vm1, %v4519_v13 }
 0x18c   : > { %3922 = vmatprep.subr.bf16.mxu0 %v4519_v13 }
 0x192   : > { %3913 = vmatmul.mubr.msk.bf16.vlgmr.msra.gmra.mrb[4].mxu0 %vm821_vm2, %v1040_v36 }
 0x193   : > { %3923 = vmatpush3.bf16.xpose.msra.mxu0 %v1157_v37  ;;  %3924 = vmatprep.mubr.msk.bf16.mxu0 %vm4520_vm1, %v4519_v13 }
 0x194   : > { %3934 = vmatprep.subr.bf16.mxu0 %v4519_v13 }
 0x19a   : > { %3925 = vmatmul.mubr.msk.bf16.vlgmr.msra.gmra.mrb[8].mxu0 %vm821_vm2, %v1150_v38 }
 0x19b   : > { %3942 = vmatprep.mubr.msk.bf16.mxu0 %vm4520_vm1, %v4519_v13 }
 0x259   : > { %v862_v41 = vpop.f32.mrb[4].mxu1 }
 0x25a   : > { %v863_v42 = vadd.f32 %v862_v41, %v815_v40  ;;  %v3890_v43 = vpop.f32.mrb[5].mxu1 }
 0x25b   : > { %v865_v44 = vpop.f32.mrb[6].mxu1 }
 0x25c   : > { %v3891_v45 = vpop.f32.mrb[7].mxu1  ;;  %v869_v46 = vsel %vm868_vm4, %v863_v42, -inf }
 0x25d   : > { %870 = vmax.xlane.f32.xlu1 %v869_v46  ;;  %v972_v47 = vpop.f32.mrb[0].mxu0 }
 0x25e   : > { %v973_v48 = vadd.f32 %v972_v47, %v815_v40  ;;  %v3902_v49 = vpop.f32.mrb[1].mxu0 }
 0x25f   : > { %v975_v50 = vpop.f32.mrb[2].mxu0 }
 0x260   : > { %v3903_v51 = vpop.f32.mrb[3].mxu0  ;;  %v978_v52 = vsel %vm868_vm4, %v973_v48, -inf }
 0x261   : > { %979 = vmax.xlane.f32.xlu0 %v978_v52  ;;  %v4337_v52 = vld [vmem:[%s5588_s13] sm:$0xff]  }
 0x262   : > { %3935 = vmatpush3.bf16.msra.mxu0 %v4337_v52  ;;  %v4346_v52 = vld [vmem:[%s5638_s9 + $0x8] sm:$0xff]  }
 0x263   : > { %3936 = vmatprep.subr.bf16.mxu0 %v4519_v13 }
 0x265   : > { %v1083_v53 = vpop.f32.mrb[4].mxu0 }
 0x266   : > { %v1084_v54 = vadd.f32 %v1083_v53, %v815_v40  ;;  %v3914_v55 = vpop.f32.mrb[5].mxu0  ;;  %v4338_v53 = vld [vmem:[%s5588_s13 + $0x8] sm:$0xff]  }
 0x267   : > { %v1086_v56 = vpop.f32.mrb[6].mxu0  ;;  %3937 = vmatpush3.bf16.msra.mxu0 %v4338_v53 }
 0x268   : > { %v3915_v57 = vpop.f32.mrb[7].mxu0  ;;  %v1089_v58 = vsel %vm868_vm4, %v1084_v54, -inf  ;;  %3938 = vmatprep.subr.bf16.mxu0 %v4519_v13 }
 0x269   : > { %1090 = vmax.xlane.f32.xlu0 %v1089_v58  ;;  %v4339_v57 = vld [vmem:[%s5588_s13 + $0x10] sm:$0xff]  }
 0x26b   : > { %3939 = vmatpush3.bf16.msra.mxu0 %v4339_v57 }
 0x26c   : > { %3940 = vmatprep.subr.bf16.mxu0 %v4519_v13 }
 0x26d   : > { %v1193_v59 = vpop.f32.mrb[8].mxu0 }
 0x26e   : > { %v1194_v60 = vadd.f32 %v1193_v59, %v815_v40  ;;  %v3926_v61 = vpop.f32.mrb[9].mxu0 }
 0x26f   : > { %v1196_v62 = vpop.f32.mrb[10].mxu0 }
 0x270   : > { %v3927_v63 = vpop.f32.mrb[11].mxu0  ;;  %v1199_v0 = vsel %vm868_vm4, %v1194_v60, -inf }
 0x271   : > { %1200 = vmax.xlane.f32.xlu1 %v1199_v0  ;;  %v4340_v63 = vld [vmem:[%s5588_s13 + $0x18] sm:$0xff]  }
 0x272   : > { %3941 = vmatpush3.bf16.msra.mxu0 %v4340_v63 }
 0x273   : > { %3958 = vmatprep.subr.bf16.mxu0 %v4519_v13 }
 0x2ea   : > { %v871_v1 = vpop.xlane.xlu1 %870 }
 0x2eb   : > { %v872_v2 = vsub.f32 %v863_v42, %v871_v1 }
 0x2ed   : > { %v873_v3 = vmul.f32 1.442695, %v872_v2 }
 0x2ee   : > { %v980_v4 = vpop.xlane.xlu0 %979 }
 0x2ef   : > { %4389 = vpow2.f32 %v873_v3  ;;  %v981_v5 = vsub.f32 %v973_v48, %v980_v4 }
 0x2f1   : > { %v982_v6 = vmul.f32 1.442695, %v981_v5 }
 0x2f3   : > { %4391 = vpow2.f32 %v982_v6 }
 0x2f6   : > { %v1091_v7 = vpop.xlane.xlu0 %1090 }
 0x2f7   : > { %v1092_v8 = vsub.f32 %v1084_v54, %v1091_v7 }
 0x2f9   : > { %v4390_v10 = vpop.eup %4389  ;;  %v1093_v11 = vmul.f32 1.442695, %v1092_v8 }
 0x2fa   : > { %v875_v16 = vsel %vm868_vm4, %v4390_v10, 0.0 }
 0x2fb   : > { %4393 = vpow2.f32 %v1093_v11  ;;  %876 = vadd.xlane.f32.xlu0 %v875_v16  ;;  %v4840_v16 = vld [vmem:[%s5592_s17] sm:$0xff] }
 0x2fd   : > { %v4392_v17 = vpop.eup %4391 }
 0x2fe   : > { %v984_v18 = vsel %vm868_vm4, %v4392_v17, 0.0  ;;  %v1201_v21 = vpop.xlane.xlu1 %1200 }
 0x2ff   : > { %985 = vadd.xlane.f32.xlu1 %v984_v18  ;;  %v1202_v22 = vsub.f32 %v1194_v60, %v1201_v21 }
 0x301   : > { %v1203_v23 = vmul.f32 1.442695, %v1202_v22 }
 0x303   : > { %4395 = vpow2.f32 %v1203_v23 }
 0x305   : > { %v4394_v19 = vpop.eup %4393 }
 0x306   : > { %v1095_v20 = vsel %vm868_vm4, %v4394_v19, 0.0 }
 0x307   : > { %1096 = vadd.xlane.f32.xlu0 %v1095_v20 }
 0x30d   : > { %v4396_v24 = vpop.eup %4395 }
 0x30e   : > { %v1205_v25 = vsel %vm868_vm4, %v4396_v24, 0.0 }
 0x310   : > { %1101 = vrot.lane.b32.xlu1 %v4750_v30, %s5605_s27  ;;  %s4903_s27 = scalar_lea.vmem %s5640_s4, %s4693_s19 }
 0x31d   : > { %991 = vrot.lane.b32.xlu0 %v4750_v30, %s5613_s18 }
 0x334   : > { %1206 = vadd.xlane.f32.xlu1 %v1205_v25 }
 0x345   : > { %1211 = vrot.lane.b32.xlu1 %v4750_v30, %s5603_s30  ;;  %s5641_s30 = smov 112  }
 0x388   : > { %v877_v26 = vpop.xlane.xlu0 %876 }
 0x389   : > { %4397 = vrcp.f32 %v877_v26 }
 0x38c   : > { %v986_v27 = vpop.xlane.xlu1 %985 }
 0x38d   : > { %4399 = vrcp.f32 %v986_v27 }
 0x390   : > { %v1102_v36 = vpop.permute.xlu1 %1101 }
 0x391   : > { %v1107_v39 = vsel %vm884_vm3, %v1102_v36, 0 }
 0x393   : > { %v4398_v28 = vpop.eup %4397 }
 0x394   : > { %v879_v29 = vmul.f32 %v4398_v28, %v4390_v10  ;;  %v1097_v31 = vpop.xlane.xlu0 %1096 }
 0x395   : > { %4401 = vrcp.f32 %v1097_v31 }
 0x396   : > { %v880_v32 = vpack.c.bf16 %v879_v29, %v879_v29 }
 0x397   : > { %v4400_v33 = vpop.eup %4399 }
 0x398   : > { %3895 = vmatmul.mubr.msk.bf16.vlgmr.msra.gmra.mrb[8].mxu1 %vm868_vm4, %v880_v32  ;;  %v992_v34 = vpop.permute.xlu0 %991  ;;  %v988_v30 = vmul.f32 %v4400_v33, %v4392_v17  ;;  %v1280_v17 = vrot.slane %v4840_v16, %v4724_v14 }
 0x399   : > { %v997_v35 = vsel %vm884_vm3, %v992_v34, 0  ;;  %3906 = vmatprep.mubr.msk.bf16.mxu1 %vm4520_vm1, %v4519_v13  ;;  %v1365_v34 = vsub.s32 1, %v4719_v12 }
 0x39a   : > { %3905 = vmatpush3.bf16.msra.mxu1 %v997_v35  ;;  %v989_v37 = vpack.c.bf16 %v988_v30, %v988_v30  ;;  %v4849_v35 = vsub.s32 2, %v4719_v12 }
 0x39b   : > { %3916 = vmatprep.subr.bf16.mxu1 %v4519_v13  ;;  %v1366_v30 = vrot.slane %v4840_v16, %v1365_v34 }
 0x39f   : > { %v4402_v38 = vpop.eup %4401 }
 0x3a0   : > { %3907 = vmatmul.mubr.msk.bf16.vlgmr.msra.gmra.mrb[12].mxu1 %vm868_vm4, %v989_v37  ;;  %v1099_v40 = vmul.f32 %v4402_v38, %v4394_v19  ;;  %v1371_v38 = vrot.slane %v4840_v16, %v4849_v35 }
 0x3a1   : > { %3917 = vmatpush3.bf16.msra.mxu1 %v1107_v39  ;;  %3918 = vmatprep.mubr.msk.bf16.mxu1 %vm4520_vm1, %v4519_v13 }
 0x3a2   : > { %3928 = vmatprep.subr.bf16.mxu1 %v4519_v13  ;;  %v1100_v41 = vpack.c.bf16 %v1099_v40, %v1099_v40 }
 0x3a8   : > { %3919 = vmatmul.mubr.msk.bf16.vlgmr.msra.gmra.mrb[16].mxu1 %vm868_vm4, %v1100_v41 }
 0x3a9   : > { %3930 = vmatprep.mubr.msk.bf16.mxu1 %vm4520_vm1, %v4519_v13 }
 0x3c1   : > { %v1207_v42 = vpop.xlane.xlu1 %1206 }
 0x3c2   : > { %4403 = vrcp.f32 %v1207_v42 }
 0x3c5   : > { %v1212_v43 = vpop.permute.xlu1 %1211 }
 0x3c6   : > { %v1217_v44 = vsel %vm884_vm3, %v1212_v43, 0 }
 0x3c7   : > { %3929 = vmatpush3.bf16.msra.mxu1 %v1217_v44 }
 0x3c8   : > { %3946 = vmatprep.subr.bf16.mxu1 %v4519_v13 }
 0x3cc   : > { %v4404_v45 = vpop.eup %4403 }
 0x3cd   : > { %v1209_v46 = vmul.f32 %v4404_v45, %v4396_v24 }
 0x3cf   : > { %v1210_v47 = vpack.c.bf16 %v1209_v46, %v1209_v46 }
 0x3d1   : > { %3931 = vmatmul.mubr.msk.bf16.vlgmr.msra.gmra.mrb[20].mxu1 %vm868_vm4, %v1210_v47 }
 0x3d2   : > { %3954 = vmatprep.mubr.msk.bf16.mxu1 %vm4520_vm1, %v4519_v13 }
 0x46b   : > { %v922_v48 = vpop.f32.mrb[8].mxu1 }
 0x46c   : > { %v3896_v49 = vpop.f32.mrb[9].mxu1 }
 0x46d   : > { %v925_v50 = vpop.f32.mrb[10].mxu1  ;;  %v4343_v49 = vld [vmem:[%s5637_s10 + $0x10] sm:$0xff]  }
 0x46e   : > { %v3897_v51 = vpop.f32.mrb[11].mxu1  ;;  %v4344_v50 = vld [vmem:[%s5638_s9] sm:$0xff]  }
 0x46f   : > { %3947 = vmatpush3.bf16.msra.mxu1 %v4344_v50  ;;  %v4345_v51 = vld [vmem:[%s5637_s10 + $0x18] sm:$0xff]  }
 0x470   : > { %3948 = vmatprep.subr.bf16.mxu1 %v4519_v13 }
 0x473   : > { %v1033_v54 = vpop.f32.mrb[12].mxu1  ;;  %3949 = vmatpush3.bf16.msra.mxu1 %v4346_v52 }
 0x474   : > { %1260 = vrot.lane.b32.xlu0 %v1033_v54, %s5609_s26  ;;  %v3908_v55 = vpop.f32.mrb[13].mxu1  ;;  %3950 = vmatprep.subr.bf16.mxu1 %v4519_v13  ;;  %v4348_v54 = vld [vmem:[%s5638_s9 + $0x10] sm:$0xff]   ;;  %s5643_s26 = smov 80  }
 0x475   : > { %v1036_v56 = vpop.f32.mrb[14].mxu1  ;;  %v4349_v55 = vld [vmem:[%s5638_s9 + $0x18] sm:$0xff]   ;;  %s695_s9 = scalar_lea.vmem %s5582_s7, %s4774_s21 }
 0x476   : > { %v3909_v58 = vpop.f32.mrb[15].mxu1 }
 0x477   : > { %3951 = vmatpush3.bf16.msra.mxu1 %v4348_v54 }
 0x478   : > { %3952 = vmatprep.subr.bf16.mxu1 %v4519_v13 }
 0x47b   : > { %v1143_v59 = vpop.f32.mrb[16].mxu1  ;;  %3953 = vmatpush3.bf16.msra.mxu1 %v4349_v55 }
 0x47c   : > { %1264 = vrot.lane.b32.xlu1 %v1143_v59, %s5611_s25  ;;  %v3920_v60 = vpop.f32.mrb[17].mxu1  ;;  %s5639_s25 = sld [smem:[#allocation13_spill]]  ;;  %3970 = vmatprep.subr.bf16.mxu1 %v4519_v13  ;;  %v701_v59 = vld [vmem:[%s5592_s17 + $0x8] sm:$0xff] }
 0x47d   : > { %v1146_v61 = vpop.f32.mrb[18].mxu1  ;;  %v1390_v60 = vrot.slane %v701_v59, %v1365_v34 }
 0x47e   : > { %v3921_v62 = vpop.f32.mrb[19].mxu1 }
 0x47f   : > { %v1395_v62 = vrot.slane %v701_v59, %v4849_v35 }
 0x482   : > { %s675_s18 = scalar_lea.vmem %s5639_s25, %s4693_s19  ;;  %s5648_s25 = smov 48  }
 0x483   : > { %v4347_v53 = vld [vmem:[%s675_s18] sm:$0x7f]  }
 0x4a4   : > { %v1253_v0 = vpop.f32.mrb[20].mxu1 }
 0x4a5   : > { %1268 = vrot.lane.b32.xlu0 %v1253_v0, %s5607_s29  ;;  %v3932_v1 = vpop.f32.mrb[21].mxu1  ;;  %s5642_s29 = smov 96  }
 0x4a6   : > { %v1256_v2 = vpop.f32.mrb[22].mxu1  ;;  %v699_v1 = vld [vmem:[%s4903_s27] sm:$0xff] }
 0x4a7   : > { %v3933_v3 = vpop.f32.mrb[23].mxu1 }
 0x4e6   : > { %v1261_v4 = vpop.permute.xlu0 %1260 }
 0x4e7   : > { %v1271_v6 = vsel %vm821_vm2, %v922_v48, %v1261_v4  ;;  %v4341_v48 = vld [vmem:[%s5637_s10] sm:$0xff]  }
 0x4ee   : > { %v1265_v5 = vpop.permute.xlu1 %1264 }
 0x4ef   : > { %v1273_v7 = vsel %vm1272_vm5, %v1271_v6, %v1265_v5  ;;  %v1491_v5 = vrot.slane %v4729_v15, %v1365_v34 }
 0x517   : > { %v1269_v8 = vpop.permute.xlu0 %1268 }
 0x518   : > { %v1275_v10 = vsel %vm1274_vm6, %v1273_v7, %v1269_v8 }
 0x519   : > { %v1276_v11 = vpack.c.bf16 %v1275_v10, %v1275_v10 }
 0x51b   : > { %3943 = vmatmul.mubr.msk.bf16.vlgmr.msra.gmra.mrb[12].mxu0 %vm761_vm0, %v1276_v11 }
 0x51c   : > { %3966 = vmatprep.mubr.msk.bf16.mxu0 %vm4520_vm1, %v4519_v13  ;;  %3959 = vmatpush3.bf16.msra.mxu0 %v4341_v48 }
 0x51d   : > { %3960 = vmatprep.subr.bf16.mxu0 %v4519_v13 }
 0x5ee   : > { %v1342_v18 = vpop.f32.mrb[12].mxu0 }
 0x5ef   : > { %v1343_v19 = vadd.f32 %v1342_v18, %v1280_v17  ;;  %v3944_v20 = vpop.f32.mrb[13].mxu0 }
 0x5f0   : > { %v1345_v21 = vpop.f32.mrb[14].mxu0 }
 0x5f1   : > { %v3945_v22 = vpop.f32.mrb[15].mxu0  ;;  %v1348_v23 = vadd.f32 %v1343_v19, %v4709_v9 }
 0x5f2   : > { %v4925_v22 = vsub.s32 3, %v4719_v12 }
 0x5f3   : > { %v1349_v24 = vsel %vm761_vm0, %v1348_v23, 0.0 }
 0x5f4   : > { %1350 = vadd.xlane.f32.xlu1 %v1349_v24 }
 0x681   : > { %v1351_v25 = vpop.xlane.xlu1 %1350 }
 0x682   : > { %v1353_v26 = vmul.f32 0.015625, %v1351_v25 }
 0x684   : > { %v1354_v27 = vsub.f32 %v1348_v23, %v1353_v26  ;;  %v1410_v23 = vrot.slane %v4729_v15, %v4925_v22 }
 0x686   : > { %v1355_v28 = vmul.f32 %v1354_v27, %v1354_v27 }
 0x688   : > { %v1356_v29 = vsel %vm761_vm0, %v1355_v28, 0.0 }
 0x689   : > { %1357 = vadd.xlane.f32.xlu0 %v1356_v29 }
 0x716   : > { %v1358_v31 = vpop.xlane.xlu0 %1357 }
 0x717   : > { %v1359_v32 = vmul.f32 0.015625, %v1358_v31 }
 0x719   : > { %v1360_v33 = vadd.f32 1e-05, %v1359_v32 }
 0x71b   : > { %4405 = vrsqrt.f32 %v1360_v33 }
 0x725   : > { %v4406_v36 = vpop.eup %4405 }
 0x726   : > { %v1362_v37 = vmul.f32 %v4406_v36, %v1354_v27 }
 0x728   : > { %v1367_v39 = vmul.f32 %v1366_v30, %v1362_v37  ;;  %v1565_v37 = vld [vmem:[%s691_s1] sm:$0xf] }
 0x72a   : > { %v1372_v40 = vadd.f32 %v1371_v38, %v1367_v39  ;;  %v1575_v38 = vunpack.c.l.bf16 %v1565_v37 }
 0x72c   : > { %v1373_v41 = vadd.f32 %v1372_v40, %v4709_v9  ;;  %v4342_v9 = vld [vmem:[%s5637_s10 + $0x8] sm:$0xff]  }
 0x72d   : > { %3961 = vmatpush3.bf16.msra.mxu0 %v4342_v9 }
 0x72e   : > { %v1374_v42 = vsel %vm761_vm0, %v1373_v41, 0.0  ;;  %3962 = vmatprep.subr.bf16.mxu0 %v4519_v13 }
 0x72f   : > { %1375 = vadd.xlane.f32.xlu0 %v1374_v42 }
 0x731   : > { %3963 = vmatpush3.bf16.msra.mxu0 %v4343_v49 }
 0x732   : > { %3964 = vmatprep.subr.bf16.mxu0 %v4519_v13 }
 0x735   : > { %3965 = vmatpush3.bf16.msra.mxu0 %v4345_v51 }
 0x736   : > { %3982 = vmatprep.subr.bf16.mxu0 %v4519_v13 }
 0x738   : > { %3967 = vmatmul.mubr.msk.bf16.vlgmr.msra.gmra.mrb[16].mxu0 %vm761_vm0, %v4347_v53 }
 0x739   : > { %3984 = vmatprep.mubr.msk.bf16.mxu0 %vm4520_vm1, %v4519_v13 }
 0x7bc   : > { %v1376_v43 = vpop.xlane.xlu0 %1375 }
 0x7bd   : > { %v1377_v44 = vmul.f32 0.015625, %v1376_v43 }
 0x7bf   : > { %v1378_v45 = vsub.f32 %v1373_v41, %v1377_v44 }
 0x7c1   : > { %v1379_v46 = vmul.f32 %v1378_v45, %v1378_v45 }
 0x7c3   : > { %v1380_v47 = vsel %vm761_vm0, %v1379_v46, 0.0 }
 0x7c4   : > { %1381 = vadd.xlane.f32.xlu1 %v1380_v47 }
 0x80b   : > { %v1558_v6 = vpop.f32.mrb[16].mxu0 }
 0x80c   : > { %v1559_v7 = vadd.f32 %v1558_v6, %v1491_v5  ;;  %v3968_v8 = vpop.f32.mrb[17].mxu0 }
 0x80d   : > { %v1561_v10 = vpop.f32.mrb[18].mxu0 }
 0x80e   : > { %v1562_v11 = vadd.f32 %v1561_v10, %v1491_v5  ;;  %v3969_v17 = vpop.f32.mrb[19].mxu0 }
 0x810   : > { %v4915_v18 = vpack.c.bf16 %v1562_v11, %v1559_v7 }
 0x812   : > { %1693 = vrot.lane.b32.xlu0 %v4915_v18, %s5641_s30  ;;  %v1582_v19 = vsel %vm821_vm2, %v4915_v18, 0 }
 0x851   : > { %v1382_v56 = vpop.xlane.xlu1 %1381 }
 0x852   : > { %v1383_v57 = vmul.f32 0.015625, %v1382_v56 }
 0x854   : > { %v1384_v58 = vadd.f32 1e-05, %v1383_v57 }
 0x856   : > { %4407 = vrsqrt.f32 %v1384_v58 }
 0x860   : > { %v4408_v61 = vpop.eup %4407 }
 0x861   : > { %v1386_v63 = vmul.f32 %v4408_v61, %v1378_v45 }
 0x863   : > { %v1391_v0 = vmul.f32 %v1390_v60, %v1386_v63 }
 0x865   : > { %v1396_v2 = vadd.f32 %v1395_v62, %v1391_v0 }
 0x867   : > { %v4907_v3 = vmul.f32 %v1396_v2, %v699_v1 }
 0x869   : > { %v1406_v4 = vpack.c.bf16 %v4907_v3, %v4907_v3 }
 0x86b   : > { %3955 = vmatmul.mubr.msk.bf16.vlgmr.msra.gmra.mrb[24].mxu1 %vm761_vm0, %v1406_v4 }
 0x86c   : > { %3972 = vmatprep.mubr.msk.bf16.mxu1 %vm4520_vm1, %v4519_v13  ;;  %3971 = vmatpush3.bf16.xpose.msra.mxu1 %v1582_v19  ;;  %v4528_v19 = vmov 65535  }
 0x86d   : > { %3976 = vmatprep.subr.bf16.mxu1 %v4519_v13 }
 0x884   : > { %v1694_v20 = vpop.permute.xlu0 %1693 }
 0x885   : > { %v1699_v21 = vsel %vm821_vm2, %v1694_v20, 0  ;;  %v1645_v20 = vsel %vm1643_vm8, 4294967295, %v4528_v19 }
 0x886   : > { %3983 = vmatpush3.bf16.xpose.msra.mxu0 %v1699_v21 }
 0x887   : > { %3994 = vmatprep.subr.bf16.mxu0 %v4519_v13 }
 0x93e   : > { %v1472_v24 = vpop.f32.mrb[24].mxu1 }
 0x93f   : > { %v1473_v25 = vadd.f32 %v1472_v24, %v1410_v23  ;;  %v3956_v26 = vpop.f32.mrb[25].mxu1  ;;  %v1646_v24 = vsel %vm1644_vm9, %v1645_v20, 0 }
 0x940   : > { %v1475_v27 = vpop.f32.mrb[26].mxu1 }
 0x941   : > { %v1576_v28 = vpack.c.bf16 %v1473_v25, %v1473_v25  ;;  %v3957_v29 = vpop.f32.mrb[27].mxu1 }
 0x943   : > { %1801 = vrot.lane.b32.xlu0 %v1576_v28, %s5642_s29  ;;  %1691 = vrot.lane.b32.xlu1 %v1576_v28, %s5641_s30 }
 0x944   : > { %3973 = vmatmul.mubr.msk.bf16.vlgmr.msra.gmra.mrb[28].mxu1 %vm821_vm2, %v1576_v28 }
 0x945   : > { %3978 = vmatprep.mubr.msk.bf16.mxu1 %vm4520_vm1, %v4519_v13 }
 0x947   : > { %1911 = vrot.lane.b32.xlu0 %v1576_v28, %s5643_s26  ;;  %1803 = vrot.lane.b32.xlu1 %v4915_v18, %s5642_s29 }
 0x94b   : > { %1913 = vrot.lane.b32.xlu1 %v4915_v18, %s5643_s26 }
 0x9b5   : > { %v1692_v15 = vpop.permute.xlu1 %1691  ;;  %v1802_v34 = vpop.permute.xlu0 %1801 }
 0x9b6   : > { %3985 = vmatmul.mubr.msk.bf16.vlgmr.msra.gmra.mrb[20].mxu0 %vm821_vm2, %v1692_v15 }
 0x9b7   : > { %3996 = vmatprep.mubr.msk.bf16.mxu0 %vm4520_vm1, %v4519_v13 }
 0x9b9   : > { %v1804_v31 = vpop.permute.xlu1 %1803  ;;  %v1912_v36 = vpop.permute.xlu0 %1911 }
 0x9ba   : > { %v1809_v32 = vsel %vm821_vm2, %v1804_v31, 0 }
 0x9bb   : > { %3995 = vmatpush3.bf16.xpose.msra.mxu0 %v1809_v32 }
 0x9bc   : > { %4006 = vmatprep.subr.bf16.mxu0 %v4519_v13 }
 0x9bd   : > { %v1914_v33 = vpop.permute.xlu1 %1913 }
 0x9be   : > { %v1919_v30 = vsel %vm821_vm2, %v1914_v33, 0 }
 0x9c2   : > { %3997 = vmatmul.mubr.msk.bf16.vlgmr.msra.gmra.mrb[24].mxu0 %vm821_vm2, %v1802_v34 }
 0x9c3   : > { %4007 = vmatpush3.bf16.xpose.msra.mxu0 %v1919_v30  ;;  %4008 = vmatprep.mubr.msk.bf16.mxu0 %vm4520_vm1, %v4519_v13 }
 0x9c4   : > { %4018 = vmatprep.subr.bf16.mxu0 %v4519_v13 }
 0x9ca   : > { %4009 = vmatmul.mubr.msk.bf16.vlgmr.msra.gmra.mrb[28].mxu0 %vm821_vm2, %v1912_v36 }
 0x9cb   : > { %4026 = vmatprep.mubr.msk.bf16.mxu0 %vm4520_vm1, %v4519_v13 }
 0xa17   : > { %v1618_v39 = vpop.f32.mrb[28].mxu1 }
 0xa18   : > { %v1619_v40 = vadd.f32 %v1618_v39, %v1575_v38  ;;  %v3974_v41 = vpop.f32.mrb[29].mxu1 }
 0xa19   : > { %v1621_v42 = vpop.f32.mrb[30].mxu1 }
 0xa1a   : > { %v3975_v43 = vpop.f32.mrb[31].mxu1  ;;  %v1625_v44 = vsel %vm1624_vm7, %v1619_v40, -inf }
 0xa1b   : > { %1626 = vmax.xlane.f32.xlu1 %v1625_v44 }
 0xa89   : > { %v1735_v45 = vpop.f32.mrb[20].mxu0 }
 0xa8a   : > { %v1736_v46 = vadd.f32 %v1735_v45, %v1575_v38  ;;  %v3986_v47 = vpop.f32.mrb[21].mxu0 }
 0xa8b   : > { %v1738_v48 = vpop.f32.mrb[22].mxu0 }
 0xa8c   : > { %v3987_v9 = vpop.f32.mrb[23].mxu0  ;;  %v1741_v49 = vsel %vm1624_vm7, %v1736_v46, -inf }
 0xa8d   : > { %1742 = vmax.xlane.f32.xlu0 %v1741_v49 }
 0xa95   : > { %v1845_v50 = vpop.f32.mrb[24].mxu0 }
 0xa96   : > { %v1846_v51 = vadd.f32 %v1845_v50, %v1575_v38  ;;  %v3998_v52 = vpop.f32.mrb[25].mxu0 }
 0xa97   : > { %v1848_v53 = vpop.f32.mrb[26].mxu0 }
 0xa98   : > { %v3999_v54 = vpop.f32.mrb[27].mxu0  ;;  %v1851_v55 = vsel %vm1624_vm7, %v1846_v51, -inf }
 0xa99   : > { %1852 = vmax.xlane.f32.xlu0 %v1851_v55 }
 0xa9d   : > { %v1955_v56 = vpop.f32.mrb[28].mxu0 }
 0xa9e   : > { %v1956_v57 = vadd.f32 %v1955_v56, %v1575_v38  ;;  %v4010_v58 = vpop.f32.mrb[29].mxu0  ;;  %v4350_v56 = vld [vmem:[%s5588_s13 + $0x20] sm:$0xff]  }
 0xa9f   : > { %v1958_v59 = vpop.f32.mrb[30].mxu0  ;;  %4019 = vmatpush3.bf16.msra.mxu0 %v4350_v56  ;;  %v4352_v58 = vld [vmem:[%s5588_s13 + $0x30] sm:$0xff]  }
 0xaa0   : > { %v4011_v60 = vpop.f32.mrb[31].mxu0  ;;  %v1961_v61 = vsel %vm1624_vm7, %v1956_v57, -inf  ;;  %4020 = vmatprep.subr.bf16.mxu0 %v4519_v13 }
 0xaa1   : > { %1962 = vmax.xlane.f32.xlu1 %v1961_v61 }
 0xaa8   : > { %v1627_v62 = vpop.xlane.xlu1 %1626 }
 0xaa9   : > { %v1628_v63 = vsub.f32 %v1619_v40, %v1627_v62 }
 0xaab   : > { %v1629_v0 = vmul.f32 1.442695, %v1628_v63  ;;  %v4353_v63 = vld [vmem:[%s5588_s13 + $0x38] sm:$0xff]  }
 0xaad   : > { %4409 = vpow2.f32 %v1629_v0 }
 0xab2   : > { %1638 = vrot.lane.b32.xlu1 %v4915_v18, %s5645_s20 }
 0xab7   : > { %v4410_v1 = vpop.eup %4409 }
 0xab8   : > { %v1631_v2 = vsel %vm1624_vm7, %v4410_v1, 0.0 }
 0xab9   : > { %1632 = vadd.xlane.f32.xlu0 %v1631_v2 }
 0xb1a   : > { %v1743_v4 = vpop.xlane.xlu0 %1742 }
 0xb1b   : > { %v1744_v5 = vsub.f32 %v1736_v46, %v1743_v4 }
 0xb1d   : > { %v1745_v6 = vmul.f32 1.442695, %v1744_v5 }
 0xb1f   : > { %4411 = vpow2.f32 %v1745_v6 }
 0xb26   : > { %v1853_v7 = vpop.xlane.xlu0 %1852 }
 0xb27   : > { %v1854_v8 = vsub.f32 %v1846_v51, %v1853_v7 }
 0xb29   : > { %v4412_v10 = vpop.eup %4411  ;;  %v1855_v11 = vmul.f32 1.442695, %v1854_v8 }
 0xb2a   : > { %v1747_v17 = vsel %vm1624_vm7, %v4412_v10, 0.0 }
 0xb2b   : > { %4413 = vpow2.f32 %v1855_v11  ;;  %1748 = vadd.xlane.f32.xlu1 %v1747_v17 }
 0xb2e   : > { %v1963_v21 = vpop.xlane.xlu1 %1962 }
 0xb2f   : > { %v1964_v23 = vsub.f32 %v1956_v57, %v1963_v21  ;;  %v4351_v57 = vld [vmem:[%s5588_s13 + $0x28] sm:$0xff]  }
 0xb30   : > { %4021 = vmatpush3.bf16.msra.mxu0 %v4351_v57  ;;  %v5096_v57 = vsub.s32 4, %v4719_v12 }
 0xb31   : > { %v1965_v25 = vmul.f32 1.442695, %v1964_v23  ;;  %4022 = vmatprep.subr.bf16.mxu0 %v4519_v13 }
 0xb32   : > { %v1639_v26 = vpop.permute.xlu1 %1638 }
 0xb33   : > { %4415 = vpow2.f32 %v1965_v25  ;;  %v1648_v27 = vand.u32 %v1646_v24, %v1639_v26  ;;  %v2040_v25 = vrot.slane %v4840_v16, %v4925_v22 }
 0xb34   : > { %4023 = vmatpush3.bf16.msra.mxu0 %v4352_v58  ;;  %v5099_v58 = vsub.s32 5, %v4719_v12 }
 0xb35   : > { %v4414_v28 = vpop.eup %4413  ;;  %3977 = vmatpush3.bf16.msra.mxu1 %v1648_v27  ;;  %4024 = vmatprep.subr.bf16.mxu0 %v4519_v13 }
 0xb36   : > { %v1857_v29 = vsel %vm1624_vm7, %v4414_v28, 0.0  ;;  %3988 = vmatprep.subr.bf16.mxu1 %v4519_v13 }
 0xb37   : > { %1858 = vadd.xlane.f32.xlu0 %v1857_v29 }
 0xb38   : > { %4025 = vmatpush3.bf16.msra.mxu0 %v4353_v63  ;;  %v2130_v63 = vrot.slane %v4840_v16, %v5099_v58 }
 0xb39   : > { %4050 = vmatprep.subr.bf16.mxu0 %v4519_v13 }
 0xb3c   : > { %1863 = vrot.lane.b32.xlu1 %v4915_v18, %s5646_s22 }
 0xb3d   : > { %v4416_v15 = vpop.eup %4415 }
 0xb3e   : > { %v1967_v31 = vsel %vm1624_vm7, %v4416_v15, 0.0 }
 0xb3f   : > { %1968 = vadd.xlane.f32.xlu0 %v1967_v31 }
 0xb40   : > { %1973 = vrot.lane.b32.xlu1 %v4915_v18, %s5647_s24 }
 0xb46   : > { %v1633_v32 = vpop.xlane.xlu0 %1632 }
 0xb47   : > { %4417 = vrcp.f32 %v1633_v32 }
 0xb51   : > { %v4418_v33 = vpop.eup %4417 }
 0xb52   : > { %v1635_v34 = vmul.f32 %v4418_v33, %v4410_v1 }
 0xb54   : > { %v1636_v30 = vpack.c.bf16 %v1635_v34, %v1635_v34 }
 0xb55   : > { %1753 = vrot.lane.b32.xlu0 %v4915_v18, %s5648_s25 }
 0xb56   : > { %3979 = vmatmul.mubr.msk.bf16.vlgmr.msra.gmra.mrb[32].mxu1 %vm1624_vm7, %v1636_v30 }
 0xb57   : > { %3990 = vmatprep.mubr.msk.bf16.mxu1 %vm4520_vm1, %v4519_v13 }
 0xbb8   : > { %v1749_v36 = vpop.xlane.xlu1 %1748 }
 0xbb9   : > { %4419 = vrcp.f32 %v1749_v36 }
 0xbbc   : > { %v1864_v43 = vpop.permute.xlu1 %1863 }
 0xbbd   : > { %v1869_v45 = vand.u32 %v1864_v43, %v1646_v24  ;;  %v4365_v43 = vld [vmem:[%s5586_s11 + $0x10] sm:$0xff]  }
 0xbc0   : > { %v1974_v47 = vpop.permute.xlu1 %1973 }
 0xbc1   : > { %v1979_v49 = vand.u32 %v1974_v47, %v1646_v24  ;;  %v4369_v47 = vld [vmem:[%s5586_s11 + $0x28] sm:$0xff]  }
 0xbc3   : > { %v4420_v39 = vpop.eup %4419 }
 0xbc4   : > { %v1859_v37 = vpop.xlane.xlu0 %1858  ;;  %v1751_v40 = vmul.f32 %v4420_v39, %v4412_v10  ;;  %v4355_v39 = vld [vmem:[%s5587_s12 + $0x8] sm:$0xff]  }
 0xbc5   : > { %4421 = vrcp.f32 %v1859_v37 }
 0xbc6   : > { %v1752_v44 = vpack.c.bf16 %v1751_v40, %v1751_v40  ;;  %v4362_v40 = vld [vmem:[%s5586_s11] sm:$0xff]  }
 0xbcc   : > { %v1969_v38 = vpop.xlane.xlu0 %1968 }
 0xbcd   : > { %4423 = vrcp.f32 %v1969_v38  ;;  %v4354_v38 = vld [vmem:[%s5587_s12] sm:$0xff]  }
 0xbcf   : > { %v4422_v18 = vpop.eup %4421 }
 0xbd0   : > { %v1754_v41 = vpop.permute.xlu0 %1753  ;;  %v1861_v46 = vmul.f32 %v4422_v18, %v4414_v28  ;;  %v4366_v18 = vld [vmem:[%s5586_s11 + $0x18] sm:$0xff]  }
 0xbd1   : > { %v1759_v42 = vand.u32 %v1754_v41, %v1646_v24  ;;  %v4363_v41 = vld [vmem:[%s5586_s11 + $0x8] sm:$0xff]  }
 0xbd2   : > { %v1862_v48 = vpack.c.bf16 %v1861_v46, %v1861_v46  ;;  %v4368_v46 = vld [vmem:[%s5586_s11 + $0x20] sm:$0xff]  }
 0xbd3   : > { %3989 = vmatpush3.bf16.msra.mxu1 %v1759_v42  ;;  %v4356_v42 = vld [vmem:[%s5587_s12 + $0x10] sm:$0xff]  }
 0xbd4   : > { %4000 = vmatprep.subr.bf16.mxu1 %v4519_v13 }
 0xbd6   : > { %3991 = vmatmul.mubr.msk.bf16.vlgmr.msra.gmra.mrb[36].mxu1 %vm1624_vm7, %v1752_v44  ;;  %v4357_v44 = vld [vmem:[%s5587_s12 + $0x18] sm:$0xff]  }
 0xbd7   : > { %4001 = vmatpush3.bf16.msra.mxu1 %v1869_v45  ;;  %4002 = vmatprep.mubr.msk.bf16.mxu1 %vm4520_vm1, %v4519_v13  ;;  %v4424_v9 = vpop.eup %4423  ;;  %v4358_v45 = vld [vmem:[%s4717_s23] sm:$0xff]  }
 0xbd8   : > { %4012 = vmatprep.subr.bf16.mxu1 %v4519_v13  ;;  %v1971_v50 = vmul.f32 %v4424_v9, %v4416_v15  ;;  %v4371_v9 = vld [vmem:[%s5586_s11 + $0x30] sm:$0xff]  }
 0xbda   : > { %v1972_v51 = vpack.c.bf16 %v1971_v50, %v1971_v50  ;;  %v4361_v50 = vld [vmem:[%s4717_s23 + $0x18] sm:$0xff]  }
 0xbde   : > { %4003 = vmatmul.mubr.msk.bf16.vlgmr.msra.gmra.mrb[40].mxu1 %vm1624_vm7, %v1862_v48  ;;  %v4359_v48 = vld [vmem:[%s4717_s23 + $0x8] sm:$0xff]  }
 0xbdf   : > { %4013 = vmatpush3.bf16.msra.mxu1 %v1979_v49  ;;  %4014 = vmatprep.mubr.msk.bf16.mxu1 %vm4520_vm1, %v4519_v13  ;;  %v4360_v49 = vld [vmem:[%s4717_s23 + $0x10] sm:$0xff]  }
 0xbe0   : > { %4030 = vmatprep.subr.bf16.mxu1 %v4519_v13 }
 0xbe6   : > { %4015 = vmatmul.mubr.msk.bf16.vlgmr.msra.gmra.mrb[44].mxu1 %vm1624_vm7, %v1972_v51  ;;  %v4364_v51 = vld [vmem:[%s4717_s23 + $0x20] sm:$0xff]  }
 0xbe7   : > { %4046 = vmatprep.mubr.msk.bf16.mxu1 %vm4520_vm1, %v4519_v13  ;;  %4031 = vmatpush3.bf16.msra.mxu1 %v4362_v40 }
 0xbe8   : > { %4032 = vmatprep.subr.bf16.mxu1 %v4519_v13 }
 0xbeb   : > { %4033 = vmatpush3.bf16.msra.mxu1 %v4363_v41 }
 0xbec   : > { %4034 = vmatprep.subr.bf16.mxu1 %v4519_v13 }
 0xbef   : > { %4035 = vmatpush3.bf16.msra.mxu1 %v4365_v43 }
 0xbf0   : > { %4036 = vmatprep.subr.bf16.mxu1 %v4519_v13 }
 0xbf3   : > { %4037 = vmatpush3.bf16.msra.mxu1 %v4366_v18 }
 0xbf4   : > { %4038 = vmatprep.subr.bf16.mxu1 %v4519_v13 }
 0xbf7   : > { %4039 = vmatpush3.bf16.msra.mxu1 %v4368_v46 }
 0xbf8   : > { %4040 = vmatprep.subr.bf16.mxu1 %v4519_v13 }
 0xbfb   : > { %4041 = vmatpush3.bf16.msra.mxu1 %v4369_v47 }
 0xbfc   : > { %4042 = vmatprep.subr.bf16.mxu1 %v4519_v13 }
 0xbff   : > { %4043 = vmatpush3.bf16.msra.mxu1 %v4371_v9 }
 0xc00   : > { %4044 = vmatprep.subr.bf16.mxu1 %v4519_v13 }
 0xc29   : > { %v1684_v52 = vpop.f32.mrb[32].mxu1 }
 0xc2a   : > { %v3980_v53 = vpop.f32.mrb[33].mxu1 }
 0xc2b   : > { %v1687_v54 = vpop.f32.mrb[34].mxu1  ;;  %v4370_v53 = vld [vmem:[%s4717_s23 + $0x30] ss:$0 sps:$4 sm:$0x33]  }
 0xc2c   : > { %v3981_v55 = vpop.f32.mrb[35].mxu1 }
 0xca9   : > { %v1795_v59 = vpop.f32.mrb[36].mxu1 }
 0xcaa   : > { %2022 = vrot.lane.b32.xlu1 %v1795_v59, %s5647_s24  ;;  %v3992_v60 = vpop.f32.mrb[37].mxu1  ;;  %v4372_v59 = vld [vmem:[%s5586_s11 + $0x38] sm:$0xff]  }
 0xcab   : > { %v1798_v61 = vpop.f32.mrb[38].mxu1  ;;  %v2125_v60 = vrot.slane %v4840_v16, %v5096_v57  ;;  %4045 = vmatpush3.bf16.msra.mxu1 %v4372_v59 }
 0xcac   : > { %v3993_v62 = vpop.f32.mrb[39].mxu1  ;;  %4104 = vmatprep.subr.bf16.mxu1 %v4519_v13 }
 0xcb1   : > { %v1905_v0 = vpop.f32.mrb[40].mxu1 }
 0xcb2   : > { %2026 = vrot.lane.b32.xlu0 %v1905_v0, %s5646_s22  ;;  %v4004_v1 = vpop.f32.mrb[41].mxu1 }
 0xcb3   : > { %v1908_v2 = vpop.f32.mrb[42].mxu1  ;;  %v698_v1 = vld [vmem:[%s679_s5] sm:$0xff] }
 0xcb4   : > { %v4005_v4 = vpop.f32.mrb[43].mxu1 }
 0xcb9   : > { %v2015_v5 = vpop.f32.mrb[44].mxu1 }
 0xcba   : > { %2030 = vrot.lane.b32.xlu1 %v2015_v5, %s5648_s25  ;;  %v4016_v6 = vpop.f32.mrb[45].mxu1 }
 0xcbb   : > { %v2018_v7 = vpop.f32.mrb[46].mxu1  ;;  %v5121_v6 = vld [vmem:[%s5591_s16] sm:$0x3f] }
 0xcbc   : > { %v4017_v8 = vpop.f32.mrb[47].mxu1  ;;  %v5125_v7 = vrot.slane %v5121_v6, %v4849_v35 }
 0xd1c   : > { %v2023_v10 = vpop.permute.xlu1 %2022 }
 0xd1d   : > { %v2033_v17 = vsel %vm821_vm2, %v1684_v52, %v2023_v10  ;;  %v4367_v52 = vld [vmem:[%s4717_s23 + $0x28] sm:$0xff]  }
 0xd24   : > { %v2027_v11 = vpop.permute.xlu0 %2026 }
 0xd25   : > { %v2034_v20 = vsel %vm1272_vm5, %v2033_v17, %v2027_v11 }
 0xd2c   : > { %v2031_v21 = vpop.permute.xlu1 %2030 }
 0xd2d   : > { %v2035_v23 = vsel %vm1274_vm6, %v2034_v20, %v2031_v21 }
 0xd2e   : > { %v2036_v24 = vpack.c.bf16 %v2035_v23, %v2035_v23 }
 0xd30   : > { %4027 = vmatmul.mubr.msk.bf16.vlgmr.msra.gmra.mrb[32].mxu0 %vm761_vm0, %v2036_v24 }
 0xd31   : > { %4058 = vmatprep.mubr.msk.bf16.mxu0 %vm4520_vm1, %v4519_v13  ;;  %4051 = vmatpush3.bf16.msra.mxu0 %v4354_v38 }
 0xd32   : > { %4052 = vmatprep.subr.bf16.mxu0 %v4519_v13 }
 0xd35   : > { %4053 = vmatpush3.bf16.msra.mxu0 %v4355_v39 }
 0xd36   : > { %4054 = vmatprep.subr.bf16.mxu0 %v4519_v13 }
 0xd39   : > { %4055 = vmatpush3.bf16.msra.mxu0 %v4356_v42 }
 0xd3a   : > { %4056 = vmatprep.subr.bf16.mxu0 %v4519_v13 }
 0xd3d   : > { %4057 = vmatpush3.bf16.msra.mxu0 %v4357_v44 }
 0xd3e   : > { %4086 = vmatprep.subr.bf16.mxu0 %v4519_v13 }
 0xd40   : > { %4059 = vmatmul.mubr.msk.bf16.vlgmr.msra.gmra.mrb[36].mxu0 %vm761_vm0, %v4358_v45 }
 0xd41   : > { %4062 = vmatprep.mubr.msk.bf16.mxu0 %vm4520_vm1, %v4519_v13 }
 0xd48   : > { %4063 = vmatmul.mubr.msk.bf16.gmra.mrb[40].mxu0 %vm761_vm0, %v4359_v48 }
 0xd49   : > { %4066 = vmatprep.mubr.msk.bf16.mxu0 %vm4520_vm1, %v4519_v13 }
 0xd50   : > { %4067 = vmatmul.mubr.msk.bf16.gmra.mrb[44].mxu0 %vm761_vm0, %v4360_v49 }
 0xd51   : > { %4070 = vmatprep.mubr.msk.bf16.mxu0 %vm4520_vm1, %v4519_v13 }
 0xd58   : > { %4071 = vmatmul.mubr.msk.bf16.gmra.mrb[48].mxu0 %vm761_vm0, %v4361_v50 }
 0xd59   : > { %4074 = vmatprep.mubr.msk.bf16.mxu0 %vm4520_vm1, %v4519_v13 }
 0xd60   : > { %4075 = vmatmul.mubr.msk.bf16.gmra.mrb[52].mxu0 %vm761_vm0, %v4364_v51 }
 0xd61   : > { %4078 = vmatprep.mubr.msk.bf16.mxu0 %vm4520_vm1, %v4519_v13 }
 0xd68   : > { %4079 = vmatmul.mubr.msk.bf16.gmra.mrb[56].mxu0 %vm761_vm0, %v4367_v52 }
 0xd69   : > { %4082 = vmatprep.mubr.msk.bf16.mxu0 %vm4520_vm1, %v4519_v13 }
 0xd70   : > { %4083 = vmatmul.mubr.msk.bf16.gmra.mrb[60].mxu0 %vm761_vm0, %v4370_v53 }
 0xd71   : > { %4100 = vmatprep.mubr.msk.bf16.mxu0 %vm4520_vm1, %v4519_v13 }
 0xe03   : > { %v2102_v26 = vpop.f32.mrb[32].mxu0 }
 0xe04   : > { %v2103_v27 = vadd.f32 %v2102_v26, %v2040_v25  ;;  %v4028_v28 = vpop.f32.mrb[33].mxu0 }
 0xe05   : > { %v2105_v29 = vpop.f32.mrb[34].mxu0 }
 0xe06   : > { %v4029_v15 = vpop.f32.mrb[35].mxu0  ;;  %v2108_v31 = vadd.f32 %v2103_v27, %v4907_v3 }
 0xe08   : > { %v2109_v32 = vsel %vm761_vm0, %v2108_v31, 0.0 }
 0xe09   : > { %2110 = vadd.xlane.f32.xlu0 %v2109_v32 }
 0xe13   : > { %v2385_v8 = vpop.f32.mrb[36].mxu0 }
 0xe14   : > { %v2386_v16 = vadd.f32 %v2385_v8, %v5125_v7  ;;  %v4060_v10 = vpop.f32.mrb[37].mxu0 }
 0xe15   : > { %v2388_v11 = vpop.f32.mrb[38].mxu0 }
 0xe16   : > { %v2389_v17 = vadd.f32 %v2388_v11, %v5125_v7  ;;  %v4061_v20 = vpop.f32.mrb[39].mxu0 }
 0xe17   : > { %v2159_v20 = vrot.slane %v5121_v6, %v5096_v57 }
 0xe18   : > { %v5129_v21 = vpack.c.bf16 %v2389_v17, %v2386_v16 }
 0xe1a   : > { %v2462_v23 = vsel %vm821_vm2, %v5129_v21, 0 }
 0xe1b   : > { %v2393_v24 = vpop.f32.mrb[40].mxu0  ;;  %4087 = vmatpush3.bf16.xpose.msra.mxu0 %v2462_v23 }
 0xe1c   : > { %v2394_v25 = vadd.f32 %v2393_v24, %v5125_v7  ;;  %v4064_v26 = vpop.f32.mrb[41].mxu0  ;;  %4088 = vmatprep.subr.bf16.mxu0 %v4519_v13 }
 0xe1d   : > { %v2396_v35 = vpop.f32.mrb[42].mxu0 }
 0xe1e   : > { %v2397_v27 = vadd.f32 %v2396_v35, %v5125_v7  ;;  %v4065_v28 = vpop.f32.mrb[43].mxu0 }
 0xe20   : > { %v5136_v29 = vpack.c.bf16 %v2397_v27, %v2394_v25  ;;  %v2439_v27 = vld [vmem:[%s695_s9] sm:$0xf] }
 0xe21   : > { %v5191_v28 = vunpack.c.l.bf16 %v2439_v27 }
 0xe22   : > { %v2465_v32 = vsel %vm821_vm2, %v5136_v29, 0 }
 0xe23   : > { %4089 = vmatpush3.bf16.xpose.msra.mxu0 %v2465_v32 }
 0xe24   : > { %4090 = vmatprep.subr.bf16.mxu0 %v4519_v13 }
 0xe96   : > { %v2111_v33 = vpop.xlane.xlu0 %2110 }
 0xe97   : > { %v2112_v34 = vmul.f32 0.015625, %v2111_v33 }
 0xe99   : > { %v5018_v30 = vsub.f32 %v2108_v31, %v2112_v34  ;;  %v2401_v34 = vpop.f32.mrb[44].mxu0 }
 0xe9b   : > { %v2114_v36 = vmul.f32 %v5018_v30, %v5018_v30 }
 0xe9d   : > { %v2115_v37 = vsel %vm761_vm0, %v2114_v36, 0.0  ;;  %v4068_v36 = vpop.f32.mrb[45].mxu0 }
 0xe9e   : > { %2116 = vadd.xlane.f32.xlu1 %v2115_v37  ;;  %v2404_v37 = vpop.f32.mrb[46].mxu0 }
 0xe9f   : > { %v2405_v38 = vadd.f32 %v2404_v37, %v5125_v7  ;;  %v4069_v39 = vpop.f32.mrb[47].mxu0 }
 0xea0   : > { %v2409_v42 = vpop.f32.mrb[48].mxu0 }
 0xea1   : > { %v2410_v43 = vadd.f32 %v2409_v42, %v5125_v7  ;;  %v4072_v44 = vpop.f32.mrb[49].mxu0 }
 0xea2   : > { %v2412_v18 = vpop.f32.mrb[50].mxu0 }
 0xea3   : > { %v2413_v45 = vadd.f32 %v2412_v18, %v5125_v7  ;;  %v4073_v46 = vpop.f32.mrb[51].mxu0 }
 0xea4   : > { %v2417_v9 = vpop.f32.mrb[52].mxu0 }
 0xea5   : > { %v5154_v47 = vpack.c.bf16 %v2413_v45, %v2410_v43  ;;  %v2418_v49 = vadd.f32 %v2417_v9, %v5125_v7  ;;  %v4076_v50 = vpop.f32.mrb[53].mxu0  ;;  %v2567_v45 = vsel %vm2565_vm11, 4294967295, %v4528_v19 }
 0xea6   : > { %v2420_v51 = vpop.f32.mrb[54].mxu0 }
 0xea7   : > { %v2471_v48 = vsel %vm821_vm2, %v5154_v47, 0  ;;  %v2421_v52 = vadd.f32 %v2420_v51, %v5125_v7  ;;  %v4077_v53 = vpop.f32.mrb[55].mxu0 }
 0xf2b   : > { %v2117_v54 = vpop.xlane.xlu1 %2116 }
 0xf2c   : > { %v2118_v55 = vmul.f32 0.015625, %v2117_v54  ;;  %v5161_v54 = vpack.c.bf16 %v2421_v52, %v2418_v49 }
 0xf2e   : > { %v2119_v56 = vadd.f32 1e-05, %v2118_v55  ;;  %v2474_v55 = vsel %vm821_vm2, %v5161_v54, 0 }
 0xf30   : > { %4425 = vrsqrt.f32 %v2119_v56  ;;  %v2425_v56 = vpop.f32.mrb[56].mxu0 }
 0xf31   : > { %v2426_v59 = vadd.f32 %v2425_v56, %v5125_v7 }
 0xf3a   : > { %v4426_v61 = vpop.eup %4425 }
 0xf3b   : > { %v2121_v62 = vmul.f32 %v4426_v61, %v5018_v30  ;;  %v2402_v30 = vadd.f32 %v2401_v34, %v5125_v7 }
 0xf3d   : > { %v2126_v0 = vmul.f32 %v2125_v60, %v2121_v62  ;;  %v5147_v40 = vpack.c.bf16 %v2405_v38, %v2402_v30  ;;  %v4080_v60 = vpop.f32.mrb[57].mxu0 }
 0xf3e   : > { %v2428_v61 = vpop.f32.mrb[58].mxu0 }
 0xf3f   : > { %v5114_v2 = vadd.f32 %v2130_v63, %v2126_v0  ;;  %v2468_v41 = vsel %vm821_vm2, %v5147_v40, 0  ;;  %v2429_v62 = vadd.f32 %v2428_v61, %v5125_v7  ;;  %v4081_v63 = vpop.f32.mrb[59].mxu0 }
 0xf40   : > { %4091 = vmatpush3.bf16.xpose.msra.mxu0 %v2468_v41 }
 0xf41   : > { %v2132_v4 = vadd.f32 %v5114_v2, %v698_v1  ;;  %4092 = vmatprep.subr.bf16.mxu0 %v4519_v13  ;;  %v5168_v0 = vpack.c.bf16 %v2429_v62, %v2426_v59 }
 0xf43   : > { %v2133_v5 = vmul.f32 0.5, %v2132_v4  ;;  %v2477_v1 = vsel %vm821_vm2, %v5168_v0, 0  ;;  %v2433_v4 = vpop.f32.mrb[60].mxu0 }
 0xf44   : > { %v4084_v8 = vpop.f32.mrb[61].mxu0 }
 0xf45   : > { %2135 = vrot.lane.b32.xlu0 %v2133_v5, %s5645_s20  ;;  %v2434_v5 = vadd.f32 %v2433_v4, %v5125_v7  ;;  %v2436_v16 = vpop.f32.mrb[62].mxu0 }
 0xf46   : > { %v4085_v11 = vpop.f32.mrb[63].mxu0 }
 0xf47   : > { %v5174_v10 = vpack.c.bf16 %v2434_v5, %v2434_v5 }
 0xf48   : > { %4093 = vmatpush3.bf16.xpose.msra.mxu0 %v2471_v48  ;;  %v5236_v48 = vsel %vm2566_vm12, %v2567_v45, 0 }
 0xf49   : > { %4094 = vmatprep.subr.bf16.mxu0 %v4519_v13  ;;  %v2480_v17 = vsel %vm821_vm2, %v5174_v10, 0 }
 0xf50   : > { %4095 = vmatpush3.bf16.xpose.msra.mxu0 %v2474_v55 }
 0xf51   : > { %4096 = vmatprep.subr.bf16.mxu0 %v4519_v13 }
 0xf58   : > { %4097 = vmatpush3.bf16.xpose.msra.mxu0 %v2477_v1 }
 0xf59   : > { %4098 = vmatprep.subr.bf16.mxu0 %v4519_v13 }
 0xf60   : > { %4099 = vmatpush3.bf16.xpose.msra.mxu0 %v2480_v17 }
 0xf61   : > { %4140 = vmatprep.subr.bf16.mxu0 %v4519_v13 }
 0xfb7   : > { %v2136_v15 = vpop.permute.xlu0 %2135 }
 0xfb8   : > { %v2138_v31 = vsel %vm761_vm0, %v4907_v3, %v2136_v15 }
 0xfb9   : > { %v2155_v33 = vpack.c.bf16 %v2138_v31, %v2138_v31 }
 0xfbb   : > { %4047 = vmatmul.mubr.bf16.vlgmr.msra.gmra.mrb[48].mxu1 %v2155_v33 }
 0xfbc   : > { %4118 = vmatprep.mubr.msk.bf16.mxu1 %vm4520_vm1, %v4519_v13 }
0x108e   : > { %v2242_v23 = vpop.f32.mrb[48].mxu1 }
0x108f   : > { %v2243_v24 = vadd.f32 %v2242_v23, %v2159_v20  ;;  %v4048_v7 = vpop.f32.mrb[49].mxu1 }
0x1090   : > { %v2245_v25 = vpop.f32.mrb[50].mxu1 }
0x1091   : > { %v5181_v26 = vpack.c.bf16 %v2243_v24, %v2243_v24  ;;  %v4049_v35 = vpop.f32.mrb[51].mxu1 }
0x1093   : > { %4101 = vmatmul.mubr.msk.bf16.vlgmr.msra.gmra.mrb[64].mxu0 %vm821_vm2, %v5181_v26 }
0x1094   : > { %4154 = vmatprep.mubr.msk.bf16.mxu0 %vm4520_vm1, %v4519_v13 }
0x1166   : > { %v2516_v6 = vpop.f32.mrb[64].mxu0 }
0x1167   : > { %v2517_v15 = vadd.f32 %v2516_v6, %v5191_v28  ;;  %v4102_v31 = vpop.f32.mrb[65].mxu0 }
0x1168   : > { %v2519_v32 = vpop.f32.mrb[66].mxu0 }
0x1169   : > { %v4103_v33 = vpop.f32.mrb[67].mxu0  ;;  %v2523_v34 = vsel %vm2522_vm10, %v2517_v15, -inf }
0x116a   : > { %2524 = vmax.xlane.f32.xlu1 %v2523_v34 }
0x117b   : > { %2542 = vrot.lane.b32.xlu1 %v5129_v21, %s5645_s20 }
0x117f   : > { %2544 = vrot.lane.b32.xlu1 %v5136_v29, %s5645_s20 }
0x1183   : > { %2546 = vrot.lane.b32.xlu1 %v5147_v40, %s5645_s20 }
0x1187   : > { %2548 = vrot.lane.b32.xlu1 %v5154_v47, %s5645_s20 }
0x118b   : > { %2550 = vrot.lane.b32.xlu1 %v5161_v54, %s5645_s20 }
0x118f   : > { %2552 = vrot.lane.b32.xlu1 %v5168_v0, %s5645_s20 }
0x1193   : > { %2554 = vrot.lane.b32.xlu1 %v5174_v10, %s5645_s20 }
0x1197   : > { %2615 = vrot.lane.b32.xlu1 %v5129_v21, %s5641_s30 }
0x119b   : > { %2619 = vrot.lane.b32.xlu1 %v5147_v40, %s5641_s30 }
0x119f   : > { %2621 = vrot.lane.b32.xlu1 %v5154_v47, %s5641_s30 }
0x11a3   : > { %2623 = vrot.lane.b32.xlu1 %v5161_v54, %s5641_s30 }
0x11a7   : > { %2625 = vrot.lane.b32.xlu1 %v5168_v0, %s5641_s30 }
0x11ab   : > { %2627 = vrot.lane.b32.xlu1 %v5174_v10, %s5641_s30 }
0x11af   : > { %2613 = vrot.lane.b32.xlu1 %v5181_v26, %s5641_s30 }
0x11b3   : > { %2705 = vrot.lane.b32.xlu1 %v5129_v21, %s5648_s25 }
0x11b7   : > { %2709 = vrot.lane.b32.xlu1 %v5147_v40, %s5648_s25 }
0x11bb   : > { %2715 = vrot.lane.b32.xlu1 %v5168_v0, %s5648_s25 }
0x11f7   : > { %v2525_v30 = vpop.xlane.xlu1 %2524 }
0x11f8   : > { %v2526_v36 = vsub.f32 %v2517_v15, %v2525_v30 }
0x11fa   : > { %v2527_v37 = vmul.f32 1.442695, %v2526_v36 }
0x11fb   : > { %v2543_v38 = vpop.permute.xlu1 %2542 }
0x11fc   : > { %4427 = vpow2.f32 %v2527_v37  ;;  %4105 = vmatpush3.bf16.msra.mxu1 %v2543_v38 }
0x11fd   : > { %4106 = vmatprep.subr.bf16.mxu1 %v4519_v13 }
0x11ff   : > { %v2545_v39 = vpop.permute.xlu1 %2544 }
0x1200   : > { %4107 = vmatpush3.bf16.msra.mxu1 %v2545_v39 }
0x1201   : > { %4108 = vmatprep.subr.bf16.mxu1 %v4519_v13 }
0x1203   : > { %v2547_v41 = vpop.permute.xlu1 %2546 }
0x1204   : > { %4109 = vmatpush3.bf16.msra.mxu1 %v2547_v41 }
0x1205   : > { %4110 = vmatprep.subr.bf16.mxu1 %v4519_v13 }
0x1206   : > { %v4428_v42 = vpop.eup %4427 }
0x1207   : > { %v2549_v43 = vpop.permute.xlu1 %2548  ;;  %v2529_v44 = vsel %vm2522_vm10, %v4428_v42, 0.0 }
0x1208   : > { %2530 = vadd.xlane.f32.xlu0 %v2529_v44  ;;  %4111 = vmatpush3.bf16.msra.mxu1 %v2549_v43 }
0x1209   : > { %4112 = vmatprep.subr.bf16.mxu1 %v4519_v13 }
0x120b   : > { %v2551_v18 = vpop.permute.xlu1 %2550 }
0x120c   : > { %4113 = vmatpush3.bf16.msra.mxu1 %v2551_v18 }
0x120d   : > { %4114 = vmatprep.subr.bf16.mxu1 %v4519_v13 }
0x120f   : > { %v2553_v46 = vpop.permute.xlu1 %2552 }
0x1210   : > { %4115 = vmatpush3.bf16.msra.mxu1 %v2553_v46 }
0x1211   : > { %4116 = vmatprep.subr.bf16.mxu1 %v4519_v13 }
0x1213   : > { %v2555_v9 = vpop.permute.xlu1 %2554 }
0x1214   : > { %v2570_v49 = vand.u32 %v5236_v48, %v2555_v9 }
0x1216   : > { %4117 = vmatpush3.bf16.msra.mxu1 %v2570_v49 }
0x1217   : > { %v2616_v50 = vpop.permute.xlu1 %2615  ;;  %4122 = vmatprep.subr.bf16.mxu1 %v4519_v13 }
0x1218   : > { %v2633_v1 = vsel %vm821_vm2, %v2616_v50, 0 }
0x121b   : > { %v2620_v51 = vpop.permute.xlu1 %2619 }
0x121c   : > { %v2639_v8 = vsel %vm821_vm2, %v2620_v51, 0 }
0x121e   : > { %2617 = vrot.lane.b32.xlu0 %v5136_v29, %s5641_s30 }
0x121f   : > { %v2622_v52 = vpop.permute.xlu1 %2621 }
0x1220   : > { %v2642_v16 = vsel %vm821_vm2, %v2622_v52, 0 }
0x1223   : > { %v2624_v53 = vpop.permute.xlu1 %2623 }
0x1224   : > { %v2645_v11 = vsel %vm821_vm2, %v2624_v53, 0 }
0x1227   : > { %v2626_v19 = vpop.permute.xlu1 %2625 }
0x1228   : > { %v2648_v17 = vsel %vm821_vm2, %v2626_v19, 0 }
0x122b   : > { %v2628_v55 = vpop.permute.xlu1 %2627 }
0x122c   : > { %v2651_v20 = vsel %vm821_vm2, %v2628_v55, 0 }
0x122f   : > { %v2614_v56 = vpop.permute.xlu1 %2613 }
0x1233   : > { %v2706_v59 = vpop.permute.xlu1 %2705 }
0x1234   : > { %4141 = vmatpush3.bf16.msra.mxu0 %v2706_v59 }
0x1235   : > { %4142 = vmatprep.subr.bf16.mxu0 %v4519_v13 }
0x1237   : > { %v2710_v37 = vpop.permute.xlu1 %2709 }
0x123b   : > { %v2716_v44 = vpop.permute.xlu1 %2715 }
0x1295   : > { %v2531_v60 = vpop.xlane.xlu0 %2530 }
0x1296   : > { %4429 = vrcp.f32 %v2531_v60 }
0x1299   : > { %v2618_v4 = vpop.permute.xlu0 %2617 }
0x129a   : > { %v2636_v5 = vsel %vm821_vm2, %v2618_v4, 0 }
0x12a0   : > { %v4430_v61 = vpop.eup %4429 }
0x12a1   : > { %v2533_v62 = vmul.f32 %v4430_v61, %v4428_v42 }
0x12a3   : > { %v2534_v63 = vpack.c.bf16 %v2533_v62, %v2533_v62 }
0x12a5   : > { %4119 = vmatmul.mubr.msk.bf16.vlgmr.msra.gmra.mrb[52].mxu1 %vm2522_vm10, %v2534_v63 }
0x12a6   : > { %4123 = vmatpush3.bf16.xpose.msra.mxu1 %v2633_v1  ;;  %4136 = vmatprep.mubr.msk.bf16.mxu1 %vm4520_vm1, %v4519_v13 }
0x12a7   : > { %4124 = vmatprep.subr.bf16.mxu1 %v4519_v13 }
0x12ae   : > { %4125 = vmatpush3.bf16.xpose.msra.mxu1 %v2636_v5 }
0x12af   : > { %4126 = vmatprep.subr.bf16.mxu1 %v4519_v13 }
0x12b6   : > { %4127 = vmatpush3.bf16.xpose.msra.mxu1 %v2639_v8 }
0x12b7   : > { %4128 = vmatprep.subr.bf16.mxu1 %v4519_v13 }
0x12be   : > { %4129 = vmatpush3.bf16.xpose.msra.mxu1 %v2642_v16 }
0x12bf   : > { %4130 = vmatprep.subr.bf16.mxu1 %v4519_v13 }
0x12c6   : > { %4131 = vmatpush3.bf16.xpose.msra.mxu1 %v2645_v11 }
0x12c7   : > { %4132 = vmatprep.subr.bf16.mxu1 %v4519_v13 }
0x12ce   : > { %4133 = vmatpush3.bf16.xpose.msra.mxu1 %v2648_v17 }
0x12cf   : > { %4134 = vmatprep.subr.bf16.mxu1 %v4519_v13 }
0x12d6   : > { %4135 = vmatpush3.bf16.xpose.msra.mxu1 %v2651_v20 }
0x12d7   : > { %4176 = vmatprep.subr.bf16.mxu1 %v4519_v13 }
0x12dd   : > { %4137 = vmatmul.mubr.msk.bf16.vlgmr.msra.gmra.mrb[56].mxu1 %vm821_vm2, %v2614_v56 }
0x12de   : > { %4190 = vmatprep.mubr.msk.bf16.mxu1 %vm4520_vm1, %v4519_v13 }
0x1378   : > { %v5264_v23 = vpop.f32.mrb[52].mxu1 }
0x1379   : > { %v4120_v24 = vpop.f32.mrb[53].mxu1 }
0x137a   : > { %v2609_v7 = vpop.f32.mrb[54].mxu1 }
0x137b   : > { %v4121_v25 = vpop.f32.mrb[55].mxu1 }
0x13b0   : > { %v2687_v35 = vpop.f32.mrb[56].mxu1 }
0x13b1   : > { %v2688_v27 = vadd.f32 %v2687_v35, %v5191_v28  ;;  %v4138_v6 = vpop.f32.mrb[57].mxu1 }
0x13b2   : > { %v2690_v15 = vpop.f32.mrb[58].mxu1 }
0x13b3   : > { %v4139_v31 = vpop.f32.mrb[59].mxu1  ;;  %v2693_v32 = vsel %vm2522_vm10, %v2688_v27, -inf }
0x13b4   : > { %2694 = vmax.xlane.f32.xlu0 %v2693_v32 }
0x13ca   : > { %2707 = vrot.lane.b32.xlu0 %v5136_v29, %s5648_s25 }
0x13ce   : > { %2711 = vrot.lane.b32.xlu0 %v5154_v47, %s5648_s25 }
0x13d2   : > { %2713 = vrot.lane.b32.xlu0 %v5161_v54, %s5648_s25 }
0x13d6   : > { %2717 = vrot.lane.b32.xlu0 %v5174_v10, %s5648_s25 }
0x13da   : > { %2775 = vrot.lane.b32.xlu0 %v5136_v29, %s5642_s29 }
0x13de   : > { %2779 = vrot.lane.b32.xlu0 %v5154_v47, %s5642_s29 }
0x13e2   : > { %2783 = vrot.lane.b32.xlu0 %v5168_v0, %s5642_s29 }
0x13e6   : > { %2771 = vrot.lane.b32.xlu0 %v5181_v26, %s5642_s29 }
0x13ea   : > { %2863 = vrot.lane.b32.xlu0 %v5129_v21, %s5646_s22 }
0x13ee   : > { %2865 = vrot.lane.b32.xlu0 %v5136_v29, %s5646_s22 }
0x13f2   : > { %2873 = vrot.lane.b32.xlu0 %v5168_v0, %s5646_s22 }
0x1441   : > { %v2695_v33 = vpop.xlane.xlu0 %2694 }
0x1442   : > { %v2696_v34 = vsub.f32 %v2688_v27, %v2695_v33 }
0x1444   : > { %v2697_v30 = vmul.f32 1.442695, %v2696_v34 }
0x1445   : > { %v2708_v36 = vpop.permute.xlu0 %2707 }
0x1446   : > { %4431 = vpow2.f32 %v2697_v30  ;;  %4143 = vmatpush3.bf16.msra.mxu0 %v2708_v36 }
0x1447   : > { %4144 = vmatprep.subr.bf16.mxu0 %v4519_v13 }
0x1449   : > { %v2712_v38 = vpop.permute.xlu0 %2711 }
0x144a   : > { %4145 = vmatpush3.bf16.msra.mxu0 %v2710_v37 }
0x144b   : > { %4146 = vmatprep.subr.bf16.mxu0 %v4519_v13 }
0x144d   : > { %v2714_v39 = vpop.permute.xlu0 %2713 }
0x144e   : > { %4147 = vmatpush3.bf16.msra.mxu0 %v2712_v38 }
0x144f   : > { %4148 = vmatprep.subr.bf16.mxu0 %v4519_v13 }
0x1450   : > { %v4432_v41 = vpop.eup %4431 }
0x1451   : > { %v2718_v42 = vpop.permute.xlu0 %2717  ;;  %v2699_v43 = vsel %vm2522_vm10, %v4432_v41, 0.0 }
0x1452   : > { %2700 = vadd.xlane.f32.xlu1 %v2699_v43  ;;  %4149 = vmatpush3.bf16.msra.mxu0 %v2714_v39  ;;  %v2729_v45 = vand.u32 %v2718_v42, %v5236_v48 }
0x1453   : > { %4150 = vmatprep.subr.bf16.mxu0 %v4519_v13 }
0x1455   : > { %v2776_v18 = vpop.permute.xlu0 %2775 }
0x1456   : > { %4151 = vmatpush3.bf16.msra.mxu0 %v2716_v44  ;;  %v2794_v60 = vsel %vm821_vm2, %v2776_v18, 0 }
0x1457   : > { %4152 = vmatprep.subr.bf16.mxu0 %v4519_v13 }
0x1459   : > { %v2780_v46 = vpop.permute.xlu0 %2779 }
0x145a   : > { %4153 = vmatpush3.bf16.msra.mxu0 %v2729_v45  ;;  %v2800_v63 = vsel %vm821_vm2, %v2780_v46, 0 }
0x145b   : > { %4158 = vmatprep.subr.bf16.mxu0 %v4519_v13 }
0x145d   : > { %v2784_v9 = vpop.permute.xlu0 %2783 }
0x145e   : > { %v2806_v5 = vsel %vm821_vm2, %v2784_v9, 0 }
0x1461   : > { %v2772_v49 = vpop.permute.xlu0 %2771 }
0x1463   : > { %2773 = vrot.lane.b32.xlu1 %v5129_v21, %s5642_s29 }
0x1465   : > { %v2864_v50 = vpop.permute.xlu0 %2863 }
0x1466   : > { %4177 = vmatpush3.bf16.msra.mxu1 %v2864_v50 }
0x1467   : > { %2777 = vrot.lane.b32.xlu1 %v5147_v40, %s5642_s29  ;;  %4178 = vmatprep.subr.bf16.mxu1 %v4519_v13 }
0x1469   : > { %v2866_v51 = vpop.permute.xlu0 %2865 }
0x146a   : > { %4179 = vmatpush3.bf16.msra.mxu1 %v2866_v51 }
0x146b   : > { %2781 = vrot.lane.b32.xlu1 %v5161_v54, %s5642_s29  ;;  %4180 = vmatprep.subr.bf16.mxu1 %v4519_v13 }
0x146f   : > { %2785 = vrot.lane.b32.xlu1 %v5174_v10, %s5642_s29 }
0x14df   : > { %v2701_v52 = vpop.xlane.xlu1 %2700 }
0x14e0   : > { %4433 = vrcp.f32 %v2701_v52 }
0x14e3   : > { %v2774_v55 = vpop.permute.xlu1 %2773 }
0x14e4   : > { %v2791_v59 = vsel %vm821_vm2, %v2774_v55, 0 }
0x14e7   : > { %v2778_v61 = vpop.permute.xlu1 %2777 }
0x14e8   : > { %v2797_v62 = vsel %vm821_vm2, %v2778_v61, 0 }
0x14ea   : > { %v4434_v53 = vpop.eup %4433 }
0x14eb   : > { %v2703_v19 = vmul.f32 %v4434_v53, %v4432_v41  ;;  %v2782_v1 = vpop.permute.xlu1 %2781 }
0x14ec   : > { %v2803_v4 = vsel %vm821_vm2, %v2782_v1, 0 }
0x14ed   : > { %v2704_v56 = vpack.c.bf16 %v2703_v19, %v2703_v19 }
0x14ef   : > { %4155 = vmatmul.mubr.msk.bf16.vlgmr.msra.gmra.mrb[68].mxu0 %vm2522_vm10, %v2704_v56  ;;  %v2786_v8 = vpop.permute.xlu1 %2785 }
0x14f0   : > { %4159 = vmatpush3.bf16.xpose.msra.mxu0 %v2791_v59  ;;  %4172 = vmatprep.mubr.msk.bf16.mxu0 %vm4520_vm1, %v4519_v13  ;;  %v2809_v16 = vsel %vm821_vm2, %v2786_v8, 0 }
0x14f1   : > { %4160 = vmatprep.subr.bf16.mxu0 %v4519_v13 }
0x14f8   : > { %4161 = vmatpush3.bf16.xpose.msra.mxu0 %v2794_v60 }
0x14f9   : > { %4162 = vmatprep.subr.bf16.mxu0 %v4519_v13 }
0x1500   : > { %4163 = vmatpush3.bf16.xpose.msra.mxu0 %v2797_v62 }
0x1501   : > { %4164 = vmatprep.subr.bf16.mxu0 %v4519_v13 }
0x1508   : > { %4165 = vmatpush3.bf16.xpose.msra.mxu0 %v2800_v63 }
0x1509   : > { %4166 = vmatprep.subr.bf16.mxu0 %v4519_v13 }
0x1510   : > { %4167 = vmatpush3.bf16.xpose.msra.mxu0 %v2803_v4 }
0x1511   : > { %4168 = vmatprep.subr.bf16.mxu0 %v4519_v13 }
0x1518   : > { %4169 = vmatpush3.bf16.xpose.msra.mxu0 %v2806_v5 }
0x1519   : > { %4170 = vmatprep.subr.bf16.mxu0 %v4519_v13 }
0x1520   : > { %4171 = vmatpush3.bf16.xpose.msra.mxu0 %v2809_v16 }
0x1521   : > { %4212 = vmatprep.subr.bf16.mxu0 %v4519_v13 }
0x1527   : > { %4173 = vmatmul.mubr.msk.bf16.vlgmr.msra.gmra.mrb[72].mxu0 %vm821_vm2, %v2772_v49 }
0x1528   : > { %4226 = vmatprep.mubr.msk.bf16.mxu0 %vm4520_vm1, %v4519_v13 }
0x15c2   : > { %v5328_v11 = vpop.f32.mrb[68].mxu0 }
0x15c3   : > { %v4156_v17 = vpop.f32.mrb[69].mxu0 }
0x15c4   : > { %v2768_v20 = vpop.f32.mrb[70].mxu0 }
0x15c5   : > { %v4157_v24 = vpop.f32.mrb[71].mxu0 }
0x15fa   : > { %v2845_v7 = vpop.f32.mrb[72].mxu0 }
0x15fb   : > { %v2846_v25 = vadd.f32 %v2845_v7, %v5191_v28  ;;  %v4174_v35 = vpop.f32.mrb[73].mxu0 }
0x15fc   : > { %v2848_v27 = vpop.f32.mrb[74].mxu0 }
0x15fd   : > { %v4175_v6 = vpop.f32.mrb[75].mxu0  ;;  %v2851_v15 = vsel %vm2522_vm10, %v2846_v25, -inf }
0x15fe   : > { %2852 = vmax.xlane.f32.xlu1 %v2851_v15 }
0x160f   : > { %2867 = vrot.lane.b32.xlu1 %v5147_v40, %s5646_s22 }
0x1613   : > { %2869 = vrot.lane.b32.xlu1 %v5154_v47, %s5646_s22 }
0x1617   : > { %2871 = vrot.lane.b32.xlu1 %v5161_v54, %s5646_s22 }
0x161b   : > { %2875 = vrot.lane.b32.xlu1 %v5174_v10, %s5646_s22 }
0x161f   : > { %2933 = vrot.lane.b32.xlu1 %v5136_v29, %s5643_s26 }
0x1623   : > { %2937 = vrot.lane.b32.xlu1 %v5154_v47, %s5643_s26 }
0x1627   : > { %2941 = vrot.lane.b32.xlu1 %v5168_v0, %s5643_s26 }
0x162b   : > { %2929 = vrot.lane.b32.xlu1 %v5181_v26, %s5643_s26  ;;  %v2874_v26 = vpop.permute.xlu0 %2873 }
0x162f   : > { %3023 = vrot.lane.b32.xlu1 %v5136_v29, %s5647_s24 }
0x1633   : > { %3027 = vrot.lane.b32.xlu1 %v5154_v47, %s5647_s24 }
0x168b   : > { %v2853_v31 = vpop.xlane.xlu1 %2852 }
0x168c   : > { %v2854_v32 = vsub.f32 %v2846_v25, %v2853_v31 }
0x168e   : > { %v2855_v33 = vmul.f32 1.442695, %v2854_v32 }
0x168f   : > { %v2868_v34 = vpop.permute.xlu1 %2867 }
0x1690   : > { %4435 = vpow2.f32 %v2855_v33  ;;  %4181 = vmatpush3.bf16.msra.mxu1 %v2868_v34 }
0x1691   : > { %4182 = vmatprep.subr.bf16.mxu1 %v4519_v13 }
0x1693   : > { %v2870_v30 = vpop.permute.xlu1 %2869 }
0x1694   : > { %4183 = vmatpush3.bf16.msra.mxu1 %v2870_v30 }
0x1695   : > { %4184 = vmatprep.subr.bf16.mxu1 %v4519_v13 }
0x1697   : > { %v2872_v36 = vpop.permute.xlu1 %2871 }
0x1698   : > { %4185 = vmatpush3.bf16.msra.mxu1 %v2872_v36  ;;  %v4376_v36 = vld [vmem:[%s5588_s13 + $0x58] sm:$0xff]  }
0x1699   : > { %4186 = vmatprep.subr.bf16.mxu1 %v4519_v13 }
0x169a   : > { %v4436_v29 = vpop.eup %4435 }
0x169b   : > { %v2876_v37 = vpop.permute.xlu1 %2875  ;;  %v2857_v47 = vsel %vm2522_vm10, %v4436_v29, 0.0 }
0x169c   : > { %2858 = vadd.xlane.f32.xlu0 %v2857_v47  ;;  %4187 = vmatpush3.bf16.msra.mxu1 %v2874_v26  ;;  %v2887_v38 = vand.u32 %v2876_v37, %v5236_v48 }
0x169d   : > { %4188 = vmatprep.subr.bf16.mxu1 %v4519_v13 }
0x169f   : > { %v2934_v45 = vpop.permute.xlu1 %2933 }
0x16a0   : > { %4189 = vmatpush3.bf16.msra.mxu1 %v2887_v38  ;;  %v2952_v46 = vsel %vm821_vm2, %v2934_v45, 0  ;;  %v3105_v45 = vsub.s32 6, %v4719_v12 }
0x16a1   : > { %4194 = vmatprep.subr.bf16.mxu1 %v4519_v13 }
0x16a3   : > { %v2938_v50 = vpop.permute.xlu1 %2937 }
0x16a4   : > { %v2958_v51 = vsel %vm821_vm2, %v2938_v50, 0 }
0x16a7   : > { %v2942_v19 = vpop.permute.xlu1 %2941 }
0x16a8   : > { %v2964_v55 = vsel %vm821_vm2, %v2942_v19, 0 }
0x16ab   : > { %v2930_v60 = vpop.permute.xlu1 %2929 }
0x16b2   : > { %2931 = vrot.lane.b32.xlu0 %v5129_v21, %s5643_s26 }
0x16b6   : > { %2935 = vrot.lane.b32.xlu0 %v5147_v40, %s5643_s26 }
0x16ba   : > { %2939 = vrot.lane.b32.xlu0 %v5161_v54, %s5643_s26 }
0x16be   : > { %2943 = vrot.lane.b32.xlu0 %v5174_v10, %s5643_s26  ;;  %s3727_s26 = sshll.u32 %s4646_s0, 7  ;;  %s4529_s0 = smov [#allocation2]  }
0x16bf   : > { %s4458_s5 = sshll.u32 %s4529_s0, 4  ;;  %s4459_s5 = int_to_ptr.vmem [resolvable:$false] %s4458_s5 }
0x16c0   : > { %s4460_s6 = scalar_lea.vmem %s4459_s5, 256 }
0x1729   : > { %v2859_v39 = vpop.xlane.xlu0 %2858 }
0x172a   : > { %4437 = vrcp.f32 %v2859_v39 }
0x172d   : > { %v2932_v43 = vpop.permute.xlu0 %2931 }
0x172e   : > { %v2949_v18 = vsel %vm821_vm2, %v2932_v43, 0 }
0x1731   : > { %v2936_v9 = vpop.permute.xlu0 %2935 }
0x1732   : > { %v2955_v49 = vsel %vm821_vm2, %v2936_v9, 0 }
0x1734   : > { %v4438_v41 = vpop.eup %4437 }
0x1735   : > { %v2861_v42 = vmul.f32 %v4438_v41, %v4436_v29  ;;  %v2940_v52 = vpop.permute.xlu0 %2939 }
0x1736   : > { %v2961_v53 = vsel %vm821_vm2, %v2940_v52, 0 }
0x1737   : > { %v2862_v44 = vpack.c.bf16 %v2861_v42, %v2861_v42 }
0x1739   : > { %4191 = vmatmul.mubr.msk.bf16.vlgmr.msra.gmra.mrb[60].mxu1 %vm2522_vm10, %v2862_v44  ;;  %v2944_v56 = vpop.permute.xlu0 %2943 }
0x173a   : > { %4195 = vmatpush3.bf16.xpose.msra.mxu1 %v2949_v18  ;;  %4208 = vmatprep.mubr.msk.bf16.mxu1 %vm4520_vm1, %v4519_v13  ;;  %v2967_v59 = vsel %vm821_vm2, %v2944_v56, 0 }
0x173b   : > { %4196 = vmatprep.subr.bf16.mxu1 %v4519_v13 }
0x1742   : > { %4197 = vmatpush3.bf16.xpose.msra.mxu1 %v2952_v46  ;;  %v4450_v46 = vld [vmem:[%s5592_s17] sm:$0xff] }
0x1743   : > { %4198 = vmatprep.subr.bf16.mxu1 %v4519_v13 }
0x174a   : > { %4199 = vmatpush3.bf16.xpose.msra.mxu1 %v2955_v49 }
0x174b   : > { %4200 = vmatprep.subr.bf16.mxu1 %v4519_v13 }
0x1752   : > { %4201 = vmatpush3.bf16.xpose.msra.mxu1 %v2958_v51 }
0x1753   : > { %4202 = vmatprep.subr.bf16.mxu1 %v4519_v13 }
0x175a   : > { %4203 = vmatpush3.bf16.xpose.msra.mxu1 %v2961_v53 }
0x175b   : > { %4204 = vmatprep.subr.bf16.mxu1 %v4519_v13 }
0x1762   : > { %4205 = vmatpush3.bf16.xpose.msra.mxu1 %v2964_v55 }
0x1763   : > { %4206 = vmatprep.subr.bf16.mxu1 %v4519_v13 }
0x176a   : > { %4207 = vmatpush3.bf16.xpose.msra.mxu1 %v2967_v59 }
0x176b   : > { %4242 = vmatprep.subr.bf16.mxu1 %v4519_v13 }
0x1771   : > { %4209 = vmatmul.mubr.msk.bf16.vlgmr.msra.gmra.mrb[64].mxu1 %vm821_vm2, %v2930_v60 }
0x1772   : > { %4250 = vmatprep.mubr.msk.bf16.mxu1 %vm4520_vm1, %v4519_v13 }
0x180c   : > { %v2923_v61 = vpop.f32.mrb[60].mxu1 }
0x180d   : > { %v4192_v62 = vpop.f32.mrb[61].mxu1 }
0x180e   : > { %v2926_v63 = vpop.f32.mrb[62].mxu1 }
0x180f   : > { %v4193_v1 = vpop.f32.mrb[63].mxu1 }
0x1844   : > { %v3003_v4 = vpop.f32.mrb[64].mxu1 }
0x1845   : > { %v3004_v5 = vadd.f32 %v3003_v4, %v5191_v28  ;;  %v4210_v8 = vpop.f32.mrb[65].mxu1  ;;  %v3190_v4 = vsub.s32 7, %v4719_v12 }
0x1846   : > { %v3006_v16 = vpop.f32.mrb[66].mxu1 }
0x1847   : > { %v4211_v17 = vpop.f32.mrb[67].mxu1  ;;  %v3009_v20 = vsel %vm2522_vm10, %v3004_v5, -inf }
0x1848   : > { %3010 = vmax.xlane.f32.xlu0 %v3009_v20  ;;  %v5453_v17 = vld [vmem:[%s5592_s17 + $0x8] sm:$0xff] }
0x1849   : > { %v3196_v20 = vrot.slane %v5453_v17, %v4724_v14  ;;  %v4377_v14 = vld [vmem:[%s5589_s14] sm:$0xff]  }
0x184a   : > { %4243 = vmatpush3.bf16.msra.mxu1 %v4377_v14 }
0x184b   : > { %4244 = vmatprep.subr.bf16.mxu1 %v4519_v13 }
0x185e   : > { %3021 = vrot.lane.b32.xlu0 %v5129_v21, %s5647_s24  ;;  %v3024_v21 = vpop.permute.xlu1 %3023 }
0x1862   : > { %3025 = vrot.lane.b32.xlu0 %v5147_v40, %s5647_s24 }
0x1866   : > { %3029 = vrot.lane.b32.xlu0 %v5161_v54, %s5647_s24 }
0x186a   : > { %3033 = vrot.lane.b32.xlu0 %v5174_v10, %s5647_s24  ;;  %v3028_v10 = vpop.permute.xlu1 %3027 }
0x186e   : > { %3092 = vrot.lane.b32.xlu0 %v2923_v61, %s5646_s22 }
0x18d5   : > { %v3011_v28 = vpop.xlane.xlu0 %3010 }
0x18d6   : > { %v3012_v24 = vsub.f32 %v3004_v5, %v3011_v28  ;;  %v3191_v5 = vrot.slane %v4450_v46, %v3190_v4 }
0x18d8   : > { %v3013_v7 = vmul.f32 1.442695, %v3012_v24 }
0x18d9   : > { %v3022_v25 = vpop.permute.xlu0 %3021 }
0x18da   : > { %4439 = vpow2.f32 %v3013_v7  ;;  %4213 = vmatpush3.bf16.msra.mxu0 %v3022_v25 }
0x18db   : > { %4214 = vmatprep.subr.bf16.mxu0 %v4519_v13 }
0x18dd   : > { %v3026_v40 = vpop.permute.xlu0 %3025 }
0x18de   : > { %4215 = vmatpush3.bf16.msra.mxu0 %v3024_v21 }
0x18df   : > { %4216 = vmatprep.subr.bf16.mxu0 %v4519_v13 }
0x18e1   : > { %v3030_v27 = vpop.permute.xlu0 %3029 }
0x18e2   : > { %4217 = vmatpush3.bf16.msra.mxu0 %v3026_v40 }
0x18e3   : > { %4218 = vmatprep.subr.bf16.mxu0 %v4519_v13 }
0x18e4   : > { %v4440_v54 = vpop.eup %4439 }
0x18e5   : > { %v3015_v35 = vsel %vm2522_vm10, %v4440_v54, 0.0  ;;  %v3034_v15 = vpop.permute.xlu0 %3033 }
0x18e6   : > { %3016 = vadd.xlane.f32.xlu1 %v3015_v35  ;;  %4219 = vmatpush3.bf16.msra.mxu0 %v3028_v10  ;;  %v3045_v32 = vand.u32 %v3034_v15, %v5236_v48  ;;  %v4374_v48 = vld [vmem:[%s5588_s13 + $0x48] sm:$0xff]   ;;  %v4380_v15 = vld [vmem:[%s5589_s14 + $0x18] sm:$0xff]  }
0x18e7   : > { %4220 = vmatprep.subr.bf16.mxu0 %v4519_v13 }
0x18e9   : > { %v3093_v41 = vpop.permute.xlu0 %3092 }
0x18ea   : > { %4221 = vmatpush3.bf16.msra.mxu0 %v3030_v27 }
0x18eb   : > { %4222 = vmatprep.subr.bf16.mxu0 %v4519_v13 }
0x18f7   : > { %3031 = vrot.lane.b32.xlu1 %v5168_v0, %s5647_s24  ;;  %v4373_v0 = vld [vmem:[%s5588_s13 + $0x40] sm:$0xff]  }
0x18fb   : > { %3088 = vrot.lane.b32.xlu1 %v5328_v11, %s5647_s24  ;;  %v4375_v11 = vld [vmem:[%s5588_s13 + $0x50] sm:$0xff]  }
0x1973   : > { %v3017_v6 = vpop.xlane.xlu1 %3016 }
0x1974   : > { %4441 = vrcp.f32 %v3017_v6 }
0x1977   : > { %v3032_v31 = vpop.permute.xlu1 %3031 }
0x1978   : > { %4223 = vmatpush3.bf16.msra.mxu0 %v3032_v31  ;;  %v4381_v31 = vld [vmem:[%s5590_s15] sm:$0xff]  }
0x1979   : > { %4224 = vmatprep.subr.bf16.mxu0 %v4519_v13 }
0x197b   : > { %v3089_v38 = vpop.permute.xlu1 %3088 }
0x197c   : > { %4225 = vmatpush3.bf16.msra.mxu0 %v3045_v32  ;;  %v3099_v39 = vsel %vm821_vm2, %v5264_v23, %v3089_v38  ;;  %v3106_v23 = vrot.slane %v4450_v46, %v3105_v45  ;;  %v4382_v32 = vld [vmem:[%s5590_s15 + $0x8] sm:$0xff]  }
0x197d   : > { %4230 = vmatprep.subr.bf16.mxu0 %v4519_v13  ;;  %v3100_v43 = vsel %vm1272_vm5, %v3099_v39, %v3093_v41  ;;  %v4452_v41 = vld [vmem:[%s4903_s27] sm:$0xff]  ;;  %s659_s27 = sand.u32 1, %s4508_s28  }
0x197e   : > { %v4442_v33 = vpop.eup %4441  ;;  %s3602_s29 = sshll.u32 %s659_s27, 3  ;;  %s3442_s23 = scalar_lea.sflag [#allocation3], %s659_s27 }
0x197f   : > { %v3019_v34 = vmul.f32 %v4442_v33, %v4440_v54  ;;  %v4383_v33 = vld [vmem:[%s5590_s15 + $0x10] sm:$0xff]   ;;  %s661_s20 = scalar_lea.vmem [#allocation2], %s3602_s29 }
0x1980   : > { %s3455_s22 = sshll.u32 %s661_s20, 4  ;;  %s5534_s22 = int_to_ptr.vmem [resolvable:$true] %s3455_s22 }
0x1981   : > { %v3020_v30 = vpack.c.bf16 %v3019_v34, %v3019_v34  ;;  %v4384_v34 = vld [vmem:[%s5590_s15 + $0x18] sm:$0xff]   ;;  %s4454_s4 = scalar_lea.vmem %s5534_s22, 128  ;;  %p4461_p0 = scmp.lt.s32.totalorder %s5534_s22, %s4459_s5 }
0x1982   : > { %p4455_p11 = scmp.ne.s32.totalorder %s5534_s22, %s4454_s4  ;;  %p4462_p1 = scmp.lt.s32.totalorder %s4460_s6, %s4454_s4 }
0x1983   : > { %4227 = vmatmul.mubr.msk.bf16.vlgmr.msra.gmra.mrb[76].mxu0 %vm2522_vm10, %v3020_v30  ;;  %v4385_v30 = vld [vmem:[%s5590_s15 + $0x20] sm:$0xff]  }
0x1984   : > { %4238 = vmatprep.mubr.msk.bf16.mxu0 %vm4520_vm1, %v4519_v13  ;;  %4231 = vmatpush3.bf16.msra.mxu0 %v4373_v0  ;;  %v4386_v0 = vld [vmem:[%s5590_s15 + $0x28] sm:$0xff]   ;;  %p4456_p12 = pnand %p4455_p11, %p4663_p5  ;;  %p4463_p2 = por %p4462_p1, %p4461_p0 }
0x1985   : > { %4232 = vmatprep.subr.bf16.mxu0 %v4519_v13 }
0x1986   : > { %p4457_p13 = pneg %p4456_p12 }
0x1988   : > { %4233 = vmatpush3.bf16.msra.mxu0 %v4374_v48  ;;  %p4464_p3 = pnand %p4463_p2, %p4457_p13 }
0x1989   : > { %4234 = vmatprep.subr.bf16.mxu0 %v4519_v13 }
0x198c   : > { %4235 = vmatpush3.bf16.msra.mxu0 %v4375_v11 }
0x198d   : > { %4236 = vmatprep.subr.bf16.mxu0 %v4519_v13 }
0x1990   : > { %4237 = vmatpush3.bf16.msra.mxu0 %v4376_v36 }
0x1991   : > { %4254 = vmatprep.subr.bf16.mxu0 %v4519_v13 }
0x1a56   : > { %v3081_v29 = vpop.f32.mrb[76].mxu0 }
0x1a57   : > { %3096 = vrot.lane.b32.xlu1 %v3081_v29, %s5648_s25  ;;  %v4228_v26 = vpop.f32.mrb[77].mxu0  ;;  %v3217_v29 = vrot.slane %v5453_v17, %v4925_v22  ;;  %v4388_v22 = vld [vmem:[%s5590_s15 + $0x38] sm:$0xff]   ;;  %s5649_s25 = sld [smem:[#allocation20_spill]] }
0x1a58   : > { %v3084_v37 = vpop.f32.mrb[78].mxu0 }
0x1a59   : > { %v4229_v47 = vpop.f32.mrb[79].mxu0 }
0x1a5a   : > { %v3222_v47 = vrot.slane %v5453_v17, %v5096_v57  ;;  %v4453_v57 = vld [vmem:[%s5591_s16] sm:$0x3f] }
0x1a5d   : > { %s5532_s1 = scalar_lea.hbm %s5649_s25, %s3727_s26 }
0x1ac9   : > { %v3097_v42 = vpop.permute.xlu1 %3096 }
0x1aca   : > { %v3101_v44 = vsel %vm1274_vm6, %v3100_v43, %v3097_v42 }
0x1acb   : > { %v3102_v18 = vpack.c.bf16 %v3101_v44, %v3101_v44  ;;  %v4387_v44 = vld [vmem:[%s5590_s15 + $0x30] sm:$0xff]  }
0x1acd   : > { %4239 = vmatmul.mubr.msk.bf16.vlgmr.msra.gmra.mrb[80].mxu0 %vm761_vm0, %v3102_v18  ;;  %v3237_v18 = vrot.slane %v4453_v57, %v5099_v58 }
0x1ace   : > { %4270 = vmatprep.mubr.msk.bf16.mxu0 %vm4520_vm1, %v4519_v13  ;;  %4255 = vmatpush3.bf16.msra.mxu0 %v4381_v31 }
0x1acf   : > { %4256 = vmatprep.subr.bf16.mxu0 %v4519_v13 }
0x1ad2   : > { %4257 = vmatpush3.bf16.msra.mxu0 %v4382_v32 }
0x1ad3   : > { %4258 = vmatprep.subr.bf16.mxu0 %v4519_v13 }
0x1ad6   : > { %4259 = vmatpush3.bf16.msra.mxu0 %v4383_v33 }
0x1ad7   : > { %4260 = vmatprep.subr.bf16.mxu0 %v4519_v13 }
0x1ada   : > { %4261 = vmatpush3.bf16.msra.mxu0 %v4384_v34 }
0x1adb   : > { %4262 = vmatprep.subr.bf16.mxu0 %v4519_v13 }
0x1ade   : > { %4263 = vmatpush3.bf16.msra.mxu0 %v4385_v30 }
0x1adf   : > { %4264 = vmatprep.subr.bf16.mxu0 %v4519_v13 }
0x1ae2   : > { %4265 = vmatpush3.bf16.msra.mxu0 %v4386_v0 }
0x1ae3   : > { %4266 = vmatprep.subr.bf16.mxu0 %v4519_v13 }
0x1ae6   : > { %4267 = vmatpush3.bf16.msra.mxu0 %v4387_v44 }
0x1ae7   : > { %4268 = vmatprep.subr.bf16.mxu0 %v4519_v13 }
0x1aea   : > { %4269 = vmatpush3.bf16.msra.mxu0 %v4388_v22 }
0x1ba0   : > { %v3168_v9 = vpop.f32.mrb[80].mxu0 }
0x1ba1   : > { %v3169_v49 = vadd.f32 %v3168_v9, %v3106_v23  ;;  %v4240_v50 = vpop.f32.mrb[81].mxu0 }
0x1ba2   : > { %v3171_v51 = vpop.f32.mrb[82].mxu0 }
0x1ba3   : > { %v3174_v52 = vadd.f32 %v3169_v49, %v4907_v3  ;;  %v4241_v53 = vpop.f32.mrb[83].mxu0 }
0x1ba5   : > { %v3175_v19 = vsel %vm761_vm0, %v3174_v52, 0.0 }
0x1ba6   : > { %3176 = vadd.xlane.f32.xlu0 %v3175_v19 }
0x1c33   : > { %v3177_v55 = vpop.xlane.xlu0 %3176 }
0x1c34   : > { %v3178_v56 = vmul.f32 0.015625, %v3177_v55 }
0x1c36   : > { %v3179_v59 = vsub.f32 %v3174_v52, %v3178_v56 }
0x1c38   : > { %v3180_v60 = vmul.f32 %v3179_v59, %v3179_v59 }
0x1c3a   : > { %v3181_v61 = vsel %vm761_vm0, %v3180_v60, 0.0 }
0x1c3b   : > { %3182 = vadd.xlane.f32.xlu1 %v3181_v61 }
0x1cc8   : > { %v3183_v62 = vpop.xlane.xlu1 %3182 }
0x1cc9   : > { %v3184_v63 = vmul.f32 0.015625, %v3183_v62 }
0x1ccb   : > { %v3185_v1 = vadd.f32 1e-05, %v3184_v63 }
0x1ccd   : > { %4443 = vrsqrt.f32 %v3185_v1 }
0x1cd7   : > { %v4444_v8 = vpop.eup %4443 }
0x1cd8   : > { %v3187_v16 = vmul.f32 %v4444_v8, %v3179_v59 }
0x1cda   : > { %v3192_v28 = vmul.f32 %v3191_v5, %v3187_v16 }
0x1cdc   : > { %v3197_v24 = vadd.f32 %v3196_v20, %v3192_v28  ;;  %v3432_v28 = vrot.slane %v5453_v17, %v5099_v58 }
0x1cde   : > { %v3198_v7 = vadd.f32 %v3197_v24, %v5114_v2  ;;  %v4379_v2 = vld [vmem:[%s5589_s14 + $0x10] sm:$0xff]  }
0x1ce0   : > { %v3199_v25 = vmul.f32 0.5, %v3198_v7  ;;  %v3437_v7 = vrot.slane %v5453_v17, %v3105_v45 }
0x1ce2   : > { %v3200_v21 = vadd.f32 %v3199_v25, %v4907_v3  ;;  %v4378_v3 = vld [vmem:[%s5589_s14 + $0x8] sm:$0xff]  }
0x1ce3   : > { %4245 = vmatpush3.bf16.msra.mxu1 %v4378_v3 }
0x1ce4   : > { %v3201_v40 = vsel %vm761_vm0, %v3200_v21, 0.0  ;;  %4246 = vmatprep.subr.bf16.mxu1 %v4519_v13 }
0x1ce5   : > { %3202 = vadd.xlane.f32.xlu0 %v3201_v40 }
0x1ce7   : > { %4247 = vmatpush3.bf16.msra.mxu1 %v4379_v2 }
0x1ce8   : > { %4248 = vmatprep.subr.bf16.mxu1 %v4519_v13  ;;  %v3326_v13 = vrot.slane %v5453_v17, %v3190_v4 }
0x1ceb   : > { %4249 = vmatpush3.bf16.msra.mxu1 %v4380_v15 }
0x1d72   : > { %v3203_v54 = vpop.xlane.xlu0 %3202 }
0x1d73   : > { %v3204_v10 = vmul.f32 0.015625, %v3203_v54 }
0x1d75   : > { %v3205_v35 = vsub.f32 %v3200_v21, %v3204_v10 }
0x1d77   : > { %v3206_v27 = vmul.f32 %v3205_v35, %v3205_v35 }
0x1d79   : > { %v3207_v6 = vsel %vm761_vm0, %v3206_v27, 0.0 }
0x1d7a   : > { %3208 = vadd.xlane.f32.xlu0 %v3207_v6 }
0x1e07   : > { %v3209_v48 = vpop.xlane.xlu0 %3208 }
0x1e08   : > { %v3210_v11 = vmul.f32 0.015625, %v3209_v48 }
0x1e0a   : > { %v3211_v36 = vadd.f32 1e-05, %v3210_v11 }
0x1e0c   : > { %4445 = vrsqrt.f32 %v3211_v36 }
0x1e16   : > { %v4446_v26 = vpop.eup %4445 }
0x1e17   : > { %v3213_v37 = vmul.f32 %v4446_v26, %v3205_v35 }
0x1e19   : > { %v3218_v38 = vmul.f32 %v3217_v29, %v3213_v37 }
0x1e1b   : > { %v3223_v39 = vadd.f32 %v3222_v47, %v3218_v38 }
0x1e1d   : > { %v3224_v42 = vmul.f32 %v4452_v41, %v3223_v39 }
0x1e1f   : > { %v3233_v43 = vpack.c.bf16 %v3224_v42, %v3224_v42 }
0x1e21   : > { %4251 = vmatmul.mubr.msk.bf16.vlgmr.msra.gmra.mrb[68].mxu1 %vm761_vm0, %v3233_v43 }
0x1ef4   : > { %v3299_v46 = vpop.f32.mrb[68].mxu1 }
0x1ef5   : > { %v3300_v23 = vadd.f32 %v3299_v46, %v3237_v18  ;;  %v4252_v9 = vpop.f32.mrb[69].mxu1 }
0x1ef6   : > { %v3302_v49 = vpop.f32.mrb[70].mxu1 }
0x1ef7   : > { %v3305_v50 = vmax.f32 %v3300_v23, 0.0  ;;  %v4253_v51 = vpop.f32.mrb[71].mxu1 }
0x1ef9   : > { %v3322_v52 = vpack.c.bf16 %v3305_v50, %v3305_v50 }
0x1efb   : > { %4271 = vmatmul.mubr.bf16.vlgmr.msra.gmra.mrb[84].mxu0 %v3322_v52 }
0x1fce   : > { %v3409_v53 = vpop.f32.mrb[84].mxu0 }
0x1fcf   : > { %v3410_v19 = vadd.f32 %v3409_v53, %v3326_v13  ;;  %v4272_v55 = vpop.f32.mrb[85].mxu0 }
0x1fd0   : > { %v3412_v56 = vpop.f32.mrb[86].mxu0 }
0x1fd1   : > { %v3415_v59 = vadd.f32 %v3410_v19, %v3224_v42  ;;  %v4273_v60 = vpop.f32.mrb[87].mxu0 }
0x1fd3   : > { %v3416_v61 = vsel %vm761_vm0, %v3415_v59, 0.0 }
0x1fd4   : > { %3417 = vadd.xlane.f32.xlu0 %v3416_v61 }
0x2061   : > { %v3418_v62 = vpop.xlane.xlu0 %3417 }
0x2062   : > { %v3419_v63 = vmul.f32 0.015625, %v3418_v62 }
0x2064   : > { %v3420_v1 = vsub.f32 %v3415_v59, %v3419_v63 }
0x2066   : > { %v3421_v5 = vmul.f32 %v3420_v1, %v3420_v1 }
0x2068   : > { %v3422_v8 = vsel %vm761_vm0, %v3421_v5, 0.0 }
0x2069   : > { %3423 = vadd.xlane.f32.xlu1 %v3422_v8 }
0x20f6   : > { %v3424_v16 = vpop.xlane.xlu1 %3423 }
0x20f7   : > { %v3425_v4 = vmul.f32 0.015625, %v3424_v16 }
0x20f9   : > { %v3426_v20 = vadd.f32 1e-05, %v3425_v4 }
0x20fb   : > { %4447 = vrsqrt.f32 %v3426_v20 }
0x2105   : > { %v4448_v24 = vpop.eup %4447 }
0x2106   : > { %v3428_v25 = vmul.f32 %v4448_v24, %v3420_v1 }
0x2108   : > { %v3433_v21 = vmul.f32 %v3432_v28, %v3428_v25 }
0x210a   : > { %v3438_v40 = vadd.f32 %v3437_v7, %v3433_v21 }
0x210c   : > { %v3439_v54 = vmul.f32 %v4452_v41, %v3438_v40 }
0x210e   : > { %3440 = vst.msk [vmem:[%s661_s20] sm:$0xff] %vm761_vm0, %v3439_v54 }
0x210f   : > { %4467 = shalt.err (!%p4464_p3)
}
0x2110   : > { %s4468_s8 = scalar_lea.hbm %s5532_s1, 128  ;;  %s4472_s9 = scalar_lea.hbm %s5649_s25, 256 }
0x2111   : > { %p4469_p4 = scmp.ne.s32.totalorder %s5532_s1, %s4468_s8  ;;  %p4473_p9 = scmp.lt.u32.totalorder %s5532_s1, %s5649_s25 }
0x2112   : > { %p4474_p10 = scmp.lt.u32.totalorder %s4472_s9, %s4468_s8  ;;  %p4476_p12 = scmp.lt.u32.totalorder %s4468_s8, %s5532_s1 }
0x2113   : > { %p4470_p7 = pnand %p4469_p4, %p4663_p5 }
0x2114   : > { %p4475_p11 = por %p4474_p10, %p4473_p9 }
0x2115   : > { %p4471_p8 = pneg %p4470_p7 }
0x2116   : > { %p4477_p13 = por %p4476_p12, %p4475_p11 }
0x2118   : > { %p4478_p0 = pnand %p4477_p13, %p4471_p8 }
0x211a   : > { %4481 = shalt.err (!%p4478_p0)
}
0x211b   : > { %4275 = dma.vmem_to_hbm [thread:$0]  (%p4663_p5), %s5534_s22, 128, %s5532_s1, %s3442_s23  }
0x211c PF: > { %s5650_s27 = sld [smem:[#allocation7_spill]]  ;;  %s5651_s29 = sld [smem:[#allocation5_spill]] }
0x2122   : > { %p4281_p1 = scmp.ge.s32.totalorder %s5650_s27, 2  ;;  %s3467_s20 = sand.u32 1, %s5651_s29  }
0x2123   : > { %s3468_s24 = scalar_lea.sflag [#allocation3], %s3467_s20 }
0x2124   : > { %p4278_p2 = pnand %p4281_p1, %p4667_p6 }
0x2126   : > { %4499 = dma.done.wait (!%p4278_p2), %s3468_s24, 128  }
0x2127   : > { %4501 = vsyncadd (!%p4278_p2), %s3468_s24, 4294967168  ;;  %s5653_s30 = sld [smem:[#allocation8_spill]]  ;;  %s5654_s10 = sld [smem:[#allocation6_spill]] }
0x2128   : > { %s5655_s29 = sld [smem:[#allocation9_spill]]  ;;  %s5656_s27 = smov %s4508_s28 }
0x212d   : > { %p28_p3 = scmp.ge.s32.totalorder %s5653_s30, 4   ;;  %s5657_s28 = smov %s5654_s10 }
0x212f   :  { %30 = sbr.rel (!%p28_p3) target bundleno = 14 (0xe), region = 150 }
0x2136   :  { %3473 = vsyncpa [#allocation3], 1 }
0x2137   :  { %3475 = vsyncpa [#allocation3 + $0x1], 1 }

</bundles_post_ra>
